<compile_context>
chip_gen: v6e
topology: v6e:2x2x1
jax: 0.10.0
libtpu: 0.0.40
codegen_flags: <defaults>
</compile_context>

<pallas_src>
import numpy as np

import jax
import jax.numpy as jnp
from jax import lax
from jax.experimental import pallas as pl
from jax.experimental.pallas import tpu as pltpu

EPS = 1e-5
MXU_BF16 = False


def _const_spec(shape, index_map, single_buffer):
    """BlockSpec for a grid-invariant input; single-buffered when requested."""
    if single_buffer:
        return pl.BlockSpec(shape, index_map, pipeline_mode=pl.Buffered(1))
    return pl.BlockSpec(shape, index_map)


# ----------------------------------------------------------------------------
# Host-side weight preprocessing: fold the 3x3 (kh, kw) taps (with implicit
# zero padding via band clipping) into one (H*W*Cin, H*W*Cout) matrix per kd.
# Lane ordering is row-major (h, w, c) and must stay consistent with every
# folded-layout reshape below.
# ----------------------------------------------------------------------------
def build_banded_weights(w, H, W):
    # w: (3, 3, 3, Cin, Cout)  (kd, kh, kw, ci, co)  ->  (3, H*W*Cin, H*W*Cout)
    w = np.asarray(w, np.float32)
    Cin, Cout = w.shape[3], w.shape[4]
    wb = np.zeros((3, H * W * Cin, H * W * Cout), np.float32)
    for kd in range(3):
        for kh in range(3):
            for kw in range(3):
                for h in range(H):
                    hs = h + kh - 1
                    if hs < 0 or hs >= H:
                        continue
                    for wo in range(W):
                        ws = wo + kw - 1
                        if ws < 0 or ws >= W:
                            continue
                        r0 = (hs * W + ws) * Cin
                        c0 = (h * W + wo) * Cout
                        wb[kd, r0:r0 + Cin, c0:c0 + Cout] = w[kd, kh, kw]
    return jnp.asarray(wb)


# ----------------------------------------------------------------------------
# Host-side maxpool helpers: 0/1 lane-compaction matrices (one per (hy, wx)
# tap) mapping the folded (h, w, c) = 512 lanes onto the pooled (ho, wo, c) =
# 128 lanes, and the flat D*H*W spatial base index per pooled lane.
# ----------------------------------------------------------------------------
def build_pool_selectors(H, W, C):
    Ho, Wo = H // 2, W // 2
    sel = np.zeros((4, H * W * C, Ho * Wo * C), np.float32)
    for hy in range(2):
        for wx in range(2):
            t = 2 * hy + wx
            for ho in range(Ho):
                for wo in range(Wo):
                    for c in range(C):
                        lo = (ho * Wo + wo) * C + c
                        li = ((2 * ho + hy) * W + (2 * wo + wx)) * C + c
                        sel[t, li, lo] = 1.0
    return jnp.asarray(sel)


def build_pool_base(D, H, W, C):
    Do, Ho, Wo = D // 2, H // 2, W // 2
    base = np.zeros((Do, Ho * Wo * C), np.int32)
    for do in range(Do):
        for ho in range(Ho):
            for wo in range(Wo):
                for c in range(C):
                    lo = (ho * Wo + wo) * C + c
                    base[do, lo] = (2 * do) * H * W + (2 * ho) * W + (2 * wo)
    return jnp.asarray(base)


# ----------------------------------------------------------------------------
# Kernel 1: (optional BN+ReLU prologue) -> 3x3x3 conv (SAME pad fused into the
# band weights / D-halo scratch rows) + per-step per-lane partial sums for
# training-mode BatchNorm stats.  Activations use the folded lane-dense layout;
# the conv output is emitted as (N*D, H*W*Cout) rows so the accumulator stores
# straight through without reshapes.
# ----------------------------------------------------------------------------
def conv3d_banded(x_fold, wband, bias_t, scale_t, shift_t, *,
                  apply_act, D, H, W, Cin, Cout, nb, mxu_bf16=False):
    N = x_fold.shape[0]
    assert N % nb == 0
    G = N // nb
    HWCin = H * W * Cin
    HWCout = H * W * Cout
    M = nb * D  # MXU LHS rows (batch folded in)

    def kernel(x_ref, sc_ref, sh_ref, wb_ref, b_ref, y_ref, s_ref, ss_ref,
               pad_ref):
        # fused BN+ReLU of the previous block (conv2 only)
        if apply_act:
            a = jnp.maximum(x_ref[...] * sc_ref[...] + sh_ref[...], 0.0)
        else:
            a = x_ref[...]

        # D-halo = two zero rows per batch element in the persistent scratch;
        # written once (interior writes never touch them).
        @pl.when(pl.program_id(0) == 0)
        def _init_halo():
            z = jnp.zeros((nb, 1, HWCin), jnp.float32)
            pad_ref[:, 0:1, :] = z
            pad_ref[:, D + 1:D + 2, :] = z

        pad_ref[:, 1:D + 1, :] = a

        # local accumulator (no output-Ref round trips); 3 large-K MXU matmuls
        acc = jnp.broadcast_to(b_ref[...], (M, HWCout))
        for kd in range(3):
            win = pad_ref[:, kd:kd + D, :].reshape(M, HWCin)
            if mxu_bf16:
                win = win.astype(jnp.bfloat16)
            acc = acc + jnp.dot(win, wb_ref[kd],
                                preferred_element_type=jnp.float32)

        y_ref[...] = acc
        # per-step partial sums for BN (reduced over grid steps / H*W in JAX
        # glue); no revisited output block -> grid axis stays "parallel".
        s_ref[...] = jnp.sum(acc, axis=0, keepdims=True)
        ss_ref[...] = jnp.sum(acc * acc, axis=0, keepdims=True)

    wb_itemsize = 2 if mxu_bf16 else 4
    vmem_limit = int(
        2 * 3 * HWCin * HWCout * wb_itemsize        # band weights (<= 2 buffers)
        + 2 * (nb * D * HWCin + M * HWCout) * 4     # activation blocks (x, y)
        + nb * (D + 2) * HWCin * 4                  # halo scratch
        + 2 * (2 * HWCin + 3 * HWCout) * 4          # scale/shift/bias/stats
        + (4 << 20))                                # headroom

    def _call(single_buffer):
        in_specs = [
            pl.BlockSpec((nb, D, HWCin), lambda g: (g, 0, 0)),
            _const_spec((1, HWCin), lambda g: (0, 0), single_buffer),
            _const_spec((1, HWCin), lambda g: (0, 0), single_buffer),
            _const_spec((3, HWCin, HWCout), lambda g: (0, 0, 0), single_buffer),
            _const_spec((1, HWCout), lambda g: (0, 0), single_buffer),
        ]
        out_specs = (pl.BlockSpec((M, HWCout), lambda g: (g, 0)),
                     pl.BlockSpec((1, HWCout), lambda g: (g, 0)),
                     pl.BlockSpec((1, HWCout), lambda g: (g, 0)))
        return pl.pallas_call(
            kernel,
            out_shape=(jax.ShapeDtypeStruct((N * D, HWCout), jnp.float32),
                       jax.ShapeDtypeStruct((G, HWCout), jnp.float32),
                       jax.ShapeDtypeStruct((G, HWCout), jnp.float32)),
            grid=(G,),
            in_specs=in_specs,
            out_specs=out_specs,
            scratch_shapes=[pltpu.VMEM((nb, D + 2, HWCin), jnp.float32)],
            compiler_params=pltpu.CompilerParams(
                dimension_semantics=("parallel",),
                vmem_limit_bytes=vmem_limit),
        )(x_fold, scale_t, shift_t, wband, bias_t)

    try:
        return _call(True)
    except Exception:
        # pl.Buffered(1) not supported by this build -> default double-buffering.
        return _call(False)


# ----------------------------------------------------------------------------
# Kernel 2: fused BN2 + ReLU + MaxPool3d(2, stride 2) with argmax indices
# (flat D*H*W index, first-tap-wins tie rule).  Lane-dense input (512 lanes),
# lane-dense output (128 lanes); window lane-compaction done on the MXU with
# host-built 0/1 selection matrices.
# ----------------------------------------------------------------------------
def maxpool_bn_relu(y_split, scale_t, shift_t, sel, base, *, D, H, W, C):
    N = y_split.shape[0]
    Do, Ho, Wo = D // 2, H // 2, W // 2
    HWC = H * W * C
    HoWoC = Ho * Wo * C

    def kernel(y_ref, sc_ref, sh_ref, sel_ref, base_ref, v_ref, i_ref):
        scv = sc_ref[...]
        shv = sh_ref[...]
        best = None
        off = None
        for dz in range(2):
            # fused BN+ReLU on lane-dense (Do, H*W*C) rows
            act = jnp.maximum(y_ref[0, :, dz, :] * scv + shv, 0.0)
            for hy in range(2):
                for wx in range(2):
                    # lane compaction (h,w,c interleave -> ho*wo*c) via MXU
                    cand = jnp.dot(act, sel_ref[2 * hy + wx],
                                   preferred_element_type=jnp.float32)
                    o = dz * (H * W) + hy * W + wx
                    if best is None:
                        best = cand
                        off = jnp.zeros(cand.shape, jnp.int32)  # first tap: o==0
                    else:
                        upd = cand > best        # strict > => first tap wins
                        best = jnp.where(upd, cand, best)
                        off = jnp.where(upd, np.int32(o), off)
        v_ref[0] = best
        i_ref[0] = base_ref[...] + off

    vmem_limit = int(
        2 * Do * 2 * HWC * 4            # input block
        + 2 * 2 * HWC * 4               # scale/shift
        + 2 * 4 * HWC * HoWoC * 4       # selection matrices (<= 2 buffers)
        + 2 * Do * HoWoC * 4            # base indices
        + 2 * 2 * Do * HoWoC * 4        # outputs
        + (4 << 20))                    # headroom

    def _call(single_buffer):
        in_specs = [
            pl.BlockSpec((1, Do, 2, HWC), lambda n: (n, 0, 0, 0)),
            _const_spec((1, HWC), lambda n: (0, 0), single_buffer),
            _const_spec((1, HWC), lambda n: (0, 0), single_buffer),
            _const_spec((4, HWC, HoWoC), lambda n: (0, 0, 0), single_buffer),
            _const_spec((Do, HoWoC), lambda n: (0, 0), single_buffer),
        ]
        return pl.pallas_call(
            kernel,
            out_shape=(jax.ShapeDtypeStruct((N, Do, HoWoC), jnp.float32),
                       jax.ShapeDtypeStruct((N, Do, HoWoC), jnp.int32)),
            grid=(N,),
            in_specs=in_specs,
            out_specs=(pl.BlockSpec((1, Do, HoWoC), lambda n: (n, 0, 0)),
                       pl.BlockSpec((1, Do, HoWoC), lambda n: (n, 0, 0))),
            compiler_params=pltpu.CompilerParams(
                dimension_semantics=("parallel",),
                vmem_limit_bytes=vmem_limit),
        )(y_split, scale_t, shift_t, sel, base)

    try:
        return _call(True)
    except Exception:
        return _call(False)


# ----------------------------------------------------------------------------
# BN glue: reduce per-step partial sums, produce per-channel scale/shift
# (training-mode batch stats, biased variance, eps=1e-5).
# ----------------------------------------------------------------------------
def _bn_scale_shift(s_out, ss_out, gamma, beta, count, H, W, Cout):
    s = s_out.reshape(-1, H * W, Cout).sum(axis=(0, 1))
    ss = ss_out.reshape(-1, H * W, Cout).sum(axis=(0, 1))
    mean = s / count
    # NOTE: single-pass variance (E[x^2]-E[x]^2); fine at these magnitudes.
    # TODO(synk): two-pass / Welford reduction before scaling to large activations.
    var = ss / count - mean * mean
    scale = gamma / jnp.sqrt(var + EPS)
    shift = beta - mean * scale
    return scale, shift


# ----------------------------------------------------------------------------
# Full Down.forward
# ----------------------------------------------------------------------------
def down_forward(x_ncdhw, p, mxu_bf16=MXU_BF16):
    x = jnp.transpose(x_ncdhw, (0, 2, 3, 4, 1)).astype(jnp.float32)  # NDHWC
    N, D, H, W, Cin = x.shape
    Cout = p["w1"].shape[-1]
    assert D % 2 == 0 and H % 2 == 0 and W % 2 == 0
    count = float(N * D * H * W)

    x_fold = x.reshape(N, D, H * W * Cin)          # free row-major reinterpret

    wdt = jnp.bfloat16 if mxu_bf16 else jnp.float32
    wb1 = build_banded_weights(p["w1"], H, W).astype(wdt)
    wb2 = build_banded_weights(p["w2"], H, W).astype(wdt)
    b1_t = jnp.tile(p["b1"][None, :], (1, H * W))
    b2_t = jnp.tile(p["b2"][None, :], (1, H * W))
    ones_in = jnp.ones((1, H * W * Cin), jnp.float32)
    zeros_in = jnp.zeros((1, H * W * Cin), jnp.float32)

    # batch tile: fold the whole (small) batch into the MXU LHS -> M = N*D and
    # no per-step grid overhead.  TODO(synk): use nb < N (grid over batch
    # tiles, still "parallel") for large N / v7x megacore sharding.
    nb = N

    # conv1 (pad fused; BN stats as per-step partials)
    y1, s1, ss1 = conv3d_banded(x_fold, wb1, b1_t, ones_in, zeros_in,
                                apply_act=False, D=D, H=H, W=W,
                                Cin=Cin, Cout=Cout, nb=nb, mxu_bf16=mxu_bf16)
    sc1, sh1 = _bn_scale_shift(s1, ss1, p["g1"], p["be1"], count, H, W, Cout)

    # conv2 with BN1 + ReLU fused into its input prologue
    sc1_t = jnp.tile(sc1[None, :], (1, H * W))
    sh1_t = jnp.tile(sh1[None, :], (1, H * W))
    y2, s2, ss2 = conv3d_banded(y1.reshape(N, D, H * W * Cout), wb2, b2_t,
                                sc1_t, sh1_t, apply_act=True,
                                D=D, H=H, W=W, Cin=Cout, Cout=Cout,
                                nb=nb, mxu_bf16=mxu_bf16)
    sc2, sh2 = _bn_scale_shift(s2, ss2, p["g2"], p["be2"], count, H, W, Cout)

    # BN2 + ReLU fused into the maxpool/argmax kernel
    sc2_t = jnp.tile(sc2[None, :], (1, H * W))
    sh2_t = jnp.tile(sh2[None, :], (1, H * W))
    sel = build_pool_selectors(H, W, Cout)
    base = build_pool_base(D, H, W, Cout)
    vals, idx = maxpool_bn_relu(y2.reshape(N, D // 2, 2, H * W * Cout),
                                sc2_t, sh2_t, sel, base,
                                D=D, H=H, W=W, C=Cout)

    Do, Ho, Wo = D // 2, H // 2, W // 2
    vals = vals.reshape(N, Do, Ho, Wo, Cout).transpose(0, 4, 1, 2, 3)
    idx = idx.reshape(N, Do, Ho, Wo, Cout).transpose(0, 4, 1, 2, 3)
    return vals, idx


# ----------------------------------------------------------------------------
# Pure-JAX reference (validation only)
# ----------------------------------------------------------------------------
def reference(x_ncdhw, p):
    x = jnp.transpose(x_ncdhw, (0, 2, 3, 4, 1)).astype(jnp.float32)

    def conv_bn_relu(x, w, b, g, be):
        y = lax.conv_general_dilated(
            x, w, (1, 1, 1), "SAME",
            dimension_numbers=("NDHWC", "DHWIO", "NDHWC"),
            precision=lax.Precision.HIGHEST) + b
        mean = jnp.mean(y, axis=(0, 1, 2, 3))
        var = jnp.mean((y - mean) ** 2, axis=(0, 1, 2, 3))
        return jnp.maximum((y - mean) / jnp.sqrt(var + EPS) * g + be, 0.0)

    a = conv_bn_relu(x, p["w1"], p["b1"], p["g1"], p["be1"])
    a = conv_bn_relu(a, p["w2"], p["b2"], p["g2"], p["be2"])
    N, D, H, W, C = a.shape
    ar = a.reshape(N, D // 2, 2, H // 2, 2, W // 2, 2, C)
    pooled = ar.max(axis=(2, 4, 6))
    return jnp.transpose(pooled, (0, 4, 1, 2, 3)), a


if __name__ == "__main__":
    # Small shapes: N=2, Cin=4, Cout=8, spatial 8^3  (PyTorch NCDHW input)
    N, Cin, Cout, D, H, W = 2, 4, 8, 8, 8, 8
    key = jax.random.PRNGKey(0)
    ks = jax.random.split(key, 9)

    params = {
        "w1": 0.2 * jax.random.normal(ks[0], (3, 3, 3, Cin, Cout), jnp.float32),
        "b1": 0.1 * jax.random.normal(ks[1], (Cout,), jnp.float32),
        "g1": 1.0 + 0.1 * jax.random.normal(ks[2], (Cout,), jnp.float32),
        "be1": 0.1 * jax.random.normal(ks[3], (Cout,), jnp.float32),
        "w2": 0.2 * jax.random.normal(ks[4], (3, 3, 3, Cout, Cout), jnp.float32),
        "b2": 0.1 * jax.random.normal(ks[5], (Cout,), jnp.float32),
        "g2": 1.0 + 0.1 * jax.random.normal(ks[6], (Cout,), jnp.float32),
        "be2": 0.1 * jax.random.normal(ks[7], (Cout,), jnp.float32),
    }
    x = jax.random.normal(ks[8], (N, Cin, D, H, W), jnp.float32)

    vals, idx = down_forward(x, params)
    jax.block_until_ready((vals, idx))

    # --- validation ---
    ref_vals, ref_act = reference(x, params)
    assert vals.shape == (N, Cout, D // 2, H // 2, W // 2)
    assert idx.shape == (N, Cout, D // 2, H // 2, W // 2)
    assert jnp.allclose(vals, ref_vals, atol=1e-3, rtol=1e-3), \
        "pooled values mismatch"

    # index consistency: gathering (reference) pre-pool activations at the
    # returned flat D*H*W spatial indices reproduces the pooled values.
    a_flat = jnp.transpose(ref_act, (0, 4, 1, 2, 3)).reshape(N, Cout, D * H * W)
    gathered = jnp.take_along_axis(a_flat, idx.reshape(N, Cout, -1), axis=2)
    assert jnp.allclose(gathered, vals.reshape(N, Cout, -1),
                        atol=1e-3, rtol=1e-3), "indices mismatch"
    assert bool(jnp.all((idx >= 0) & (idx < D * H * W)))

    print("KERNEL_OK")
</pallas_src>

<mosaic_0001>
module attributes {stable_mosaic.version = 11 : i64} {
  func.func @kernel(%arg0: i32, %arg1: memref<2x8x256xf32, #tpu.memory_space<vmem>>, %arg2: memref<1x256xf32, #tpu.memory_space<vmem>>, %arg3: memref<1x256xf32, #tpu.memory_space<vmem>>, %arg4: memref<3x256x512xf32, #tpu.memory_space<vmem>>, %arg5: memref<1x512xf32, #tpu.memory_space<vmem>>, %arg6: memref<16x512xf32, #tpu.memory_space<vmem>>, %arg7: memref<1x512xf32, #tpu.memory_space<vmem>>, %arg8: memref<1x512xf32, #tpu.memory_space<vmem>>, %arg9: memref<2x10x256xf32, #tpu.memory_space<vmem>>) attributes {dimension_semantics = [#tpu.dimension_semantics<parallel>], iteration_bounds = array<i64: 1>, scalar_prefetch = 0 : i64, scratch_operands = 1 : i64, tpu.core_type = #tpu.core_type<tc>, window_params = [{transform_indices = @transform_0, window_bounds = array<i64: 2, 8, 256>}, {pipeline_mode = #tpu.pipeline_mode<synchronous>, transform_indices = @transform_1, window_bounds = array<i64: 1, 256>}, {pipeline_mode = #tpu.pipeline_mode<synchronous>, transform_indices = @transform_2, window_bounds = array<i64: 1, 256>}, {pipeline_mode = #tpu.pipeline_mode<synchronous>, transform_indices = @transform_3, window_bounds = array<i64: 3, 256, 512>}, {pipeline_mode = #tpu.pipeline_mode<synchronous>, transform_indices = @transform_4, window_bounds = array<i64: 1, 512>}, {transform_indices = @transform_5, window_bounds = array<i64: 16, 512>}, {transform_indices = @transform_6, window_bounds = array<i64: 1, 512>}, {transform_indices = @transform_7, window_bounds = array<i64: 1, 512>}]} {
    %c0 = arith.constant 0 : index
    %c0_0 = arith.constant 0 : index
    %c0_1 = arith.constant 0 : index
    %0 = vector.load %arg1[%c0, %c0_0, %c0_1] : memref<2x8x256xf32, #tpu.memory_space<vmem>>, vector<2x8x256xf32>
    %c0_i32 = arith.constant 0 : i32
    %1 = arith.cmpi eq, %arg0, %c0_i32 : i32
    %2 = arith.extui %1 : i1 to i32
    %c0_i32_2 = arith.constant 0 : i32
    %3 = arith.cmpi ne, %2, %c0_i32_2 : i32
    scf.if %3 {
      %cst_34 = arith.constant 0.000000e+00 : f32
      %34 = vector.broadcast %cst_34 : f32 to vector<2x1x256xf32>
      %c0_35 = arith.constant 0 : index
      %c0_36 = arith.constant 0 : index
      %c0_37 = arith.constant 0 : index
      %35 = vector.load %arg9[%c0_35, %c0_36, %c0_37] : memref<2x10x256xf32, #tpu.memory_space<vmem>>, vector<2x1x256xf32>
      tpu.vector_store %arg9[%c0_35, %c0_36, %c0_37], %34 {strides = array<i32>} : memref<2x10x256xf32, #tpu.memory_space<vmem>>, vector<2x1x256xf32>,
      %c0_38 = arith.constant 0 : index
      %c9 = arith.constant 9 : index
      %c0_39 = arith.constant 0 : index
      %36 = vector.load %arg9[%c0_38, %c9, %c0_39] : memref<2x10x256xf32, #tpu.memory_space<vmem>>, vector<2x1x256xf32>
      tpu.vector_store %arg9[%c0_38, %c9, %c0_39], %34 {strides = array<i32>} : memref<2x10x256xf32, #tpu.memory_space<vmem>>, vector<2x1x256xf32>,
    } else {
    }
    %c0_3 = arith.constant 0 : index
    %c1 = arith.constant 1 : index
    %c0_4 = arith.constant 0 : index
    %4 = vector.load %arg9[%c0_3, %c1, %c0_4] : memref<2x10x256xf32, #tpu.memory_space<vmem>>, vector<2x8x256xf32>
    tpu.vector_store %arg9[%c0_3, %c1, %c0_4], %0 {strides = array<i32>} : memref<2x10x256xf32, #tpu.memory_space<vmem>>, vector<2x8x256xf32>,
    %c0_5 = arith.constant 0 : index
    %c0_6 = arith.constant 0 : index
    %5 = vector.load %arg5[%c0_5, %c0_6] : memref<1x512xf32, #tpu.memory_space<vmem>>, vector<1x512xf32>
    %6 = vector.shape_cast %5 : vector<1x512xf32> to vector<1x512xf32>
    %7 = vector.broadcast %6 : vector<1x512xf32> to vector<16x512xf32>
    %c0_7 = arith.constant 0 : index
    %c0_8 = arith.constant 0 : index
    %c0_9 = arith.constant 0 : index
    %8 = vector.load %arg9[%c0_7, %c0_8, %c0_9] : memref<2x10x256xf32, #tpu.memory_space<vmem>>, vector<2x8x256xf32>
    %9 = vector.shape_cast %8 : vector<2x8x256xf32> to vector<16x256xf32>
    %c0_10 = arith.constant 0 : index
    %c0_11 = arith.constant 0 : index
    %c0_12 = arith.constant 0 : index
    %10 = vector.load %arg4[%c0_10, %c0_11, %c0_12] : memref<3x256x512xf32, #tpu.memory_space<vmem>>, vector<1x256x512xf32>
    %11 = vector.shape_cast %10 : vector<1x256x512xf32> to vector<256x512xf32>
    %cst = arith.constant dense<0.000000e+00> : vector<16x512xf32>
    %12 = tpu.matmul %9, %11, %cst {dimension_numbers = #tpu.dot_dimension_numbers<[1], [0], [0], [1], [0, 0, 1, 1], [], []>} : vector<16x256xf32>, vector<256x512xf32>, vector<16x512xf32> -> vector<16x512xf32>
    %13 = arith.addf %7, %12 : vector<16x512xf32>
    %c0_13 = arith.constant 0 : index
    %c1_14 = arith.constant 1 : index
    %c0_15 = arith.constant 0 : index
    %14 = vector.load %arg9[%c0_13, %c1_14, %c0_15] : memref<2x10x256xf32, #tpu.memory_space<vmem>>, vector<2x8x256xf32>
    %15 = vector.shape_cast %14 : vector<2x8x256xf32> to vector<16x256xf32>
    %c1_16 = arith.constant 1 : index
    %c0_17 = arith.constant 0 : index
    %c0_18 = arith.constant 0 : index
    %16 = vector.load %arg4[%c1_16, %c0_17, %c0_18] : memref<3x256x512xf32, #tpu.memory_space<vmem>>, vector<1x256x512xf32>
    %17 = vector.shape_cast %16 : vector<1x256x512xf32> to vector<256x512xf32>
    %cst_19 = arith.constant dense<0.000000e+00> : vector<16x512xf32>
    %18 = tpu.matmul %15, %17, %cst_19 {dimension_numbers = #tpu.dot_dimension_numbers<[1], [0], [0], [1], [0, 0, 1, 1], [], []>} : vector<16x256xf32>, vector<256x512xf32>, vector<16x512xf32> -> vector<16x512xf32>
    %19 = arith.addf %13, %18 : vector<16x512xf32>
    %c0_20 = arith.constant 0 : index
    %c2 = arith.constant 2 : index
    %c0_21 = arith.constant 0 : index
    %20 = vector.load %arg9[%c0_20, %c2, %c0_21] : memref<2x10x256xf32, #tpu.memory_space<vmem>>, vector<2x8x256xf32>
    %21 = vector.shape_cast %20 : vector<2x8x256xf32> to vector<16x256xf32>
    %c2_22 = arith.constant 2 : index
    %c0_23 = arith.constant 0 : index
    %c0_24 = arith.constant 0 : index
    %22 = vector.load %arg4[%c2_22, %c0_23, %c0_24] : memref<3x256x512xf32, #tpu.memory_space<vmem>>, vector<1x256x512xf32>
    %23 = vector.shape_cast %22 : vector<1x256x512xf32> to vector<256x512xf32>
    %cst_25 = arith.constant dense<0.000000e+00> : vector<16x512xf32>
    %24 = tpu.matmul %21, %23, %cst_25 {dimension_numbers = #tpu.dot_dimension_numbers<[1], [0], [0], [1], [0, 0, 1, 1], [], []>} : vector<16x256xf32>, vector<256x512xf32>, vector<16x512xf32> -> vector<16x512xf32>
    %25 = arith.addf %19, %24 : vector<16x512xf32>
    %c0_26 = arith.constant 0 : index
    %c0_27 = arith.constant 0 : index
    %26 = vector.load %arg6[%c0_26, %c0_27] : memref<16x512xf32, #tpu.memory_space<vmem>>, vector<16x512xf32>
    tpu.vector_store %arg6[%c0_26, %c0_27], %25 {strides = array<i32>} : memref<16x512xf32, #tpu.memory_space<vmem>>, vector<16x512xf32>,
    %cst_28 = arith.constant dense<0.000000e+00> : vector<512xf32>
    %27 = vector.multi_reduction <add>, %25, %cst_28 [0] : vector<16x512xf32> to vector<512xf32>
    %28 = vector.shape_cast %27 : vector<512xf32> to vector<1x512xf32>
    %c0_29 = arith.constant 0 : index
    %c0_30 = arith.constant 0 : index
    %29 = vector.load %arg7[%c0_29, %c0_30] : memref<1x512xf32, #tpu.memory_space<vmem>>, vector<1x512xf32>
    tpu.vector_store %arg7[%c0_29, %c0_30], %28 {strides = array<i32>} : memref<1x512xf32, #tpu.memory_space<vmem>>, vector<1x512xf32>,
    %30 = arith.mulf %25, %25 : vector<16x512xf32>
    %cst_31 = arith.constant dense<0.000000e+00> : vector<512xf32>
    %31 = vector.multi_reduction <add>, %30, %cst_31 [0] : vector<16x512xf32> to vector<512xf32>
    %32 = vector.shape_cast %31 : vector<512xf32> to vector<1x512xf32>
    %c0_32 = arith.constant 0 : index
    %c0_33 = arith.constant 0 : index
    %33 = vector.load %arg8[%c0_32, %c0_33] : memref<1x512xf32, #tpu.memory_space<vmem>>, vector<1x512xf32>
    tpu.vector_store %arg8[%c0_32, %c0_33], %32 {strides = array<i32>} : memref<1x512xf32, #tpu.memory_space<vmem>>, vector<1x512xf32>,
    return
  }
  func.func @transform_0(%arg0: i32) -> (i32, i32, i32) {
    %c0_i32 = arith.constant 0 : i32
    %c0_i32_0 = arith.constant 0 : i32
    %c0_i32_1 = arith.constant 0 : i32
    return %arg0, %c0_i32, %c0_i32_0 : i32, i32, i32
  }
  func.func @transform_1(%arg0: i32) -> (i32, i32) {
    %c0_i32 = arith.constant 0 : i32
    %c0_i32_0 = arith.constant 0 : i32
    %c0_i32_1 = arith.constant 0 : i32
    return %c0_i32, %c0_i32_0 : i32, i32
  }
  func.func @transform_2(%arg0: i32) -> (i32, i32) {
    %c0_i32 = arith.constant 0 : i32
    %c0_i32_0 = arith.constant 0 : i32
    %c0_i32_1 = arith.constant 0 : i32
    return %c0_i32, %c0_i32_0 : i32, i32
  }
  func.func @transform_3(%arg0: i32) -> (i32, i32, i32) {
    %c0_i32 = arith.constant 0 : i32
    %c0_i32_0 = arith.constant 0 : i32
    %c0_i32_1 = arith.constant 0 : i32
    %c0_i32_2 = arith.constant 0 : i32
    return %c0_i32, %c0_i32_0, %c0_i32_1 : i32, i32, i32
  }
  func.func @transform_4(%arg0: i32) -> (i32, i32) {
    %c0_i32 = arith.constant 0 : i32
    %c0_i32_0 = arith.constant 0 : i32
    %c0_i32_1 = arith.constant 0 : i32
    return %c0_i32, %c0_i32_0 : i32, i32
  }
  func.func @transform_5(%arg0: i32) -> (i32, i32) {
    %c0_i32 = arith.constant 0 : i32
    %c0_i32_0 = arith.constant 0 : i32
    return %arg0, %c0_i32 : i32, i32
  }
  func.func @transform_6(%arg0: i32) -> (i32, i32) {
    %c0_i32 = arith.constant 0 : i32
    %c0_i32_0 = arith.constant 0 : i32
    return %arg0, %c0_i32 : i32, i32
  }
  func.func @transform_7(%arg0: i32) -> (i32, i32) {
    %c0_i32 = arith.constant 0 : i32
    %c0_i32_0 = arith.constant 0 : i32
    return %arg0, %c0_i32 : i32, i32
  }
}

module attributes {stable_mosaic.version = 11 : i64} {
  func.func @kernel(%arg0: i32, %arg1: memref<2x8x256xf32, #tpu.memory_space<vmem>>, %arg2: memref<1x256xf32, #tpu.memory_space<vmem>>, %arg3: memref<1x256xf32, #tpu.memory_space<vmem>>, %arg4: memref<3x256x512xf32, #tpu.memory_space<vmem>>, %arg5: memref<1x512xf32, #tpu.memory_space<vmem>>, %arg6: memref<16x512xf32, #tpu.memory_space<vmem>>, %arg7: memref<1x512xf32, #tpu.memory_space<vmem>>, %arg8: memref<1x512xf32, #tpu.memory_space<vmem>>, %arg9: memref<2x10x256xf32, #tpu.memory_space<vmem>>) attributes {dimension_semantics = [#tpu.dimension_semantics<parallel>], iteration_bounds = array<i64: 1>, scalar_prefetch = 0 : i64, scratch_operands = 1 : i64, tpu.core_type = #tpu.core_type<tc>, window_params = [{transform_indices = @transform_0, window_bounds = array<i64: 2, 8, 256>}, {pipeline_mode = #tpu.pipeline_mode<synchronous>, transform_indices = @transform_1, window_bounds = array<i64: 1, 256>}, {pipeline_mode = #tpu.pipeline_mode<synchronous>, transform_indices = @transform_2, window_bounds = array<i64: 1, 256>}, {pipeline_mode = #tpu.pipeline_mode<synchronous>, transform_indices = @transform_3, window_bounds = array<i64: 3, 256, 512>}, {pipeline_mode = #tpu.pipeline_mode<synchronous>, transform_indices = @transform_4, window_bounds = array<i64: 1, 512>}, {transform_indices = @transform_5, window_bounds = array<i64: 16, 512>}, {transform_indices = @transform_6, window_bounds = array<i64: 1, 512>}, {transform_indices = @transform_7, window_bounds = array<i64: 1, 512>}]} {
    %c0 = arith.constant 0 : index
    %c0_0 = arith.constant 0 : index
    %c0_1 = arith.constant 0 : index
    %0 = vector.load %arg1[%c0, %c0_0, %c0_1] : memref<2x8x256xf32, #tpu.memory_space<vmem>>, vector<2x8x256xf32>
    %c0_i32 = arith.constant 0 : i32
    %1 = arith.cmpi eq, %arg0, %c0_i32 : i32
    %2 = arith.extui %1 : i1 to i32
    %c0_i32_2 = arith.constant 0 : i32
    %3 = arith.cmpi ne, %2, %c0_i32_2 : i32
    scf.if %3 {
      %cst_34 = arith.constant 0.000000e+00 : f32
      %34 = vector.broadcast %cst_34 : f32 to vector<2x1x256xf32>
      %c0_35 = arith.constant 0 : index
      %c0_36 = arith.constant 0 : index
      %c0_37 = arith.constant 0 : index
      %35 = vector.load %arg9[%c0_35, %c0_36, %c0_37] : memref<2x10x256xf32, #tpu.memory_space<vmem>>, vector<2x1x256xf32>
      tpu.vector_store %arg9[%c0_35, %c0_36, %c0_37], %34 {strides = array<i32>} : memref<2x10x256xf32, #tpu.memory_space<vmem>>, vector<2x1x256xf32>,
      %c0_38 = arith.constant 0 : index
      %c9 = arith.constant 9 : index
      %c0_39 = arith.constant 0 : index
      %36 = vector.load %arg9[%c0_38, %c9, %c0_39] : memref<2x10x256xf32, #tpu.memory_space<vmem>>, vector<2x1x256xf32>
      tpu.vector_store %arg9[%c0_38, %c9, %c0_39], %34 {strides = array<i32>} : memref<2x10x256xf32, #tpu.memory_space<vmem>>, vector<2x1x256xf32>,
    } else {
    }
    %c0_3 = arith.constant 0 : index
    %c1 = arith.constant 1 : index
    %c0_4 = arith.constant 0 : index
    %4 = vector.load %arg9[%c0_3, %c1, %c0_4] : memref<2x10x256xf32, #tpu.memory_space<vmem>>, vector<2x8x256xf32>
    tpu.vector_store %arg9[%c0_3, %c1, %c0_4], %0 {strides = array<i32>} : memref<2x10x256xf32, #tpu.memory_space<vmem>>, vector<2x8x256xf32>,
    %c0_5 = arith.constant 0 : index
    %c0_6 = arith.constant 0 : index
    %5 = vector.load %arg5[%c0_5, %c0_6] : memref<1x512xf32, #tpu.memory_space<vmem>>, vector<1x512xf32>
    %6 = vector.shape_cast %5 : vector<1x512xf32> to vector<1x512xf32>
    %7 = vector.broadcast %6 : vector<1x512xf32> to vector<16x512xf32>
    %c0_7 = arith.constant 0 : index
    %c0_8 = arith.constant 0 : index
    %c0_9 = arith.constant 0 : index
    %8 = vector.load %arg9[%c0_7, %c0_8, %c0_9] : memref<2x10x256xf32, #tpu.memory_space<vmem>>, vector<2x8x256xf32>
    %9 = vector.shape_cast %8 : vector<2x8x256xf32> to vector<16x256xf32>
    %c0_10 = arith.constant 0 : index
    %c0_11 = arith.constant 0 : index
    %c0_12 = arith.constant 0 : index
    %10 = vector.load %arg4[%c0_10, %c0_11, %c0_12] : memref<3x256x512xf32, #tpu.memory_space<vmem>>, vector<1x256x512xf32>
    %11 = vector.shape_cast %10 : vector<1x256x512xf32> to vector<256x512xf32>
    %cst = arith.constant dense<0.000000e+00> : vector<16x512xf32>
    %12 = tpu.matmul %9, %11, %cst {dimension_numbers = #tpu.dot_dimension_numbers<[1], [0], [0], [1], [0, 0, 1, 1], [], []>} : vector<16x256xf32>, vector<256x512xf32>, vector<16x512xf32> -> vector<16x512xf32>
    %13 = arith.addf %7, %12 : vector<16x512xf32>
    %c0_13 = arith.constant 0 : index
    %c1_14 = arith.constant 1 : index
    %c0_15 = arith.constant 0 : index
    %14 = vector.load %arg9[%c0_13, %c1_14, %c0_15] : memref<2x10x256xf32, #tpu.memory_space<vmem>>, vector<2x8x256xf32>
    %15 = vector.shape_cast %14 : vector<2x8x256xf32> to vector<16x256xf32>
    %c1_16 = arith.constant 1 : index
    %c0_17 = arith.constant 0 : index
    %c0_18 = arith.constant 0 : index
    %16 = vector.load %arg4[%c1_16, %c0_17, %c0_18] : memref<3x256x512xf32, #tpu.memory_space<vmem>>, vector<1x256x512xf32>
    %17 = vector.shape_cast %16 : vector<1x256x512xf32> to vector<256x512xf32>
    %cst_19 = arith.constant dense<0.000000e+00> : vector<16x512xf32>
    %18 = tpu.matmul %15, %17, %cst_19 {dimension_numbers = #tpu.dot_dimension_numbers<[1], [0], [0], [1], [0, 0, 1, 1], [], []>} : vector<16x256xf32>, vector<256x512xf32>, vector<16x512xf32> -> vector<16x512xf32>
    %19 = arith.addf %13, %18 : vector<16x512xf32>
    %c0_20 = arith.constant 0 : index
    %c2 = arith.constant 2 : index
    %c0_21 = arith.constant 0 : index
    %20 = vector.load %arg9[%c0_20, %c2, %c0_21] : memref<2x10x256xf32, #tpu.memory_space<vmem>>, vector<2x8x256xf32>
    %21 = vector.shape_cast %20 : vector<2x8x256xf32> to vector<16x256xf32>
    %c2_22 = arith.constant 2 : index
    %c0_23 = arith.constant 0 : index
    %c0_24 = arith.constant 0 : index
    %22 = vector.load %arg4[%c2_22, %c0_23, %c0_24] : memref<3x256x512xf32, #tpu.memory_space<vmem>>, vector<1x256x512xf32>
    %23 = vector.shape_cast %22 : vector<1x256x512xf32> to vector<256x512xf32>
    %cst_25 = arith.constant dense<0.000000e+00> : vector<16x512xf32>
    %24 = tpu.matmul %21, %23, %cst_25 {dimension_numbers = #tpu.dot_dimension_numbers<[1], [0], [0], [1], [0, 0, 1, 1], [], []>} : vector<16x256xf32>, vector<256x512xf32>, vector<16x512xf32> -> vector<16x512xf32>
    %25 = arith.addf %19, %24 : vector<16x512xf32>
    %c0_26 = arith.constant 0 : index
    %c0_27 = arith.constant 0 : index
    %26 = vector.load %arg6[%c0_26, %c0_27] : memref<16x512xf32, #tpu.memory_space<vmem>>, vector<16x512xf32>
    tpu.vector_store %arg6[%c0_26, %c0_27], %25 {strides = array<i32>} : memref<16x512xf32, #tpu.memory_space<vmem>>, vector<16x512xf32>,
    %cst_28 = arith.constant dense<0.000000e+00> : vector<512xf32>
    %27 = vector.multi_reduction <add>, %25, %cst_28 [0] : vector<16x512xf32> to vector<512xf32>
    %28 = vector.shape_cast %27 : vector<512xf32> to vector<1x512xf32>
    %c0_29 = arith.constant 0 : index
    %c0_30 = arith.constant 0 : index
    %29 = vector.load %arg7[%c0_29, %c0_30] : memref<1x512xf32, #tpu.memory_space<vmem>>, vector<1x512xf32>
    tpu.vector_store %arg7[%c0_29, %c0_30], %28 {strides = array<i32>} : memref<1x512xf32, #tpu.memory_space<vmem>>, vector<1x512xf32>,
    %30 = arith.mulf %25, %25 : vector<16x512xf32>
    %cst_31 = arith.constant dense<0.000000e+00> : vector<512xf32>
    %31 = vector.multi_reduction <add>, %30, %cst_31 [0] : vector<16x512xf32> to vector<512xf32>
    %32 = vector.shape_cast %31 : vector<512xf32> to vector<1x512xf32>
    %c0_32 = arith.constant 0 : index
    %c0_33 = arith.constant 0 : index
    %33 = vector.load %arg8[%c0_32, %c0_33] : memref<1x512xf32, #tpu.memory_space<vmem>>, vector<1x512xf32>
    tpu.vector_store %arg8[%c0_32, %c0_33], %32 {strides = array<i32>} : memref<1x512xf32, #tpu.memory_space<vmem>>, vector<1x512xf32>,
    return
  }
  func.func @transform_0(%arg0: i32) -> (i32, i32, i32) {
    %c0_i32 = arith.constant 0 : i32
    %c0_i32_0 = arith.constant 0 : i32
    %c0_i32_1 = arith.constant 0 : i32
    return %arg0, %c0_i32, %c0_i32_0 : i32, i32, i32
  }
  func.func @transform_1(%arg0: i32) -> (i32, i32) {
    %c0_i32 = arith.constant 0 : i32
    %c0_i32_0 = arith.constant 0 : i32
    %c0_i32_1 = arith.constant 0 : i32
    return %c0_i32, %c0_i32_0 : i32, i32
  }
  func.func @transform_2(%arg0: i32) -> (i32, i32) {
    %c0_i32 = arith.constant 0 : i32
    %c0_i32_0 = arith.constant 0 : i32
    %c0_i32_1 = arith.constant 0 : i32
    return %c0_i32, %c0_i32_0 : i32, i32
  }
  func.func @transform_3(%arg0: i32) -> (i32, i32, i32) {
    %c0_i32 = arith.constant 0 : i32
    %c0_i32_0 = arith.constant 0 : i32
    %c0_i32_1 = arith.constant 0 : i32
    %c0_i32_2 = arith.constant 0 : i32
    return %c0_i32, %c0_i32_0, %c0_i32_1 : i32, i32, i32
  }
  func.func @transform_4(%arg0: i32) -> (i32, i32) {
    %c0_i32 = arith.constant 0 : i32
    %c0_i32_0 = arith.constant 0 : i32
    %c0_i32_1 = arith.constant 0 : i32
    return %c0_i32, %c0_i32_0 : i32, i32
  }
  func.func @transform_5(%arg0: i32) -> (i32, i32) {
    %c0_i32 = arith.constant 0 : i32
    %c0_i32_0 = arith.constant 0 : i32
    return %arg0, %c0_i32 : i32, i32
  }
  func.func @transform_6(%arg0: i32) -> (i32, i32) {
    %c0_i32 = arith.constant 0 : i32
    %c0_i32_0 = arith.constant 0 : i32
    return %arg0, %c0_i32 : i32, i32
  }
  func.func @transform_7(%arg0: i32) -> (i32, i32) {
    %c0_i32 = arith.constant 0 : i32
    %c0_i32_0 = arith.constant 0 : i32
    return %arg0, %c0_i32 : i32, i32
  }
}

</mosaic_0001>

<bundles_post_ra>
// kernel: tpu_custom_call.1
= control target key start
LH: loop header
LB: loop body
LE: loop exit
PB: predicated region body
PF: predicated region fallthrough
CT: control target
= control target key end

     0   :  { %13 = vsyncpa [#allocation4], 0  ;;  %s1575_s0 = inlined_call_operand.hbm [shape: f32[2,8,256], index: 0, kind: input, shape index: {}]   ;;  %s1576_s1 = inlined_call_operand.hbm [shape: f32[1,256], index: 1, kind: input, shape index: {}]   ;;  %s1577_s2 = inlined_call_operand.hbm [shape: f32[1,256], index: 2, kind: input, shape index: {}]   ;;  %s1578_s3 = inlined_call_operand.hbm [shape: f32[3,256,512], index: 3, kind: input, shape index: {}]   ;;  %s1579_s4 = inlined_call_operand.hbm [shape: f32[1,512], index: 4, kind: input, shape index: {}]   ;;  %s1580_s5 = inlined_call_operand.hbm [shape: f32[16,512], index: 5, kind: output, shape index: {0}]   ;;  %s1581_s6 = inlined_call_operand.hbm [shape: f32[1,512], index: 6, kind: output, shape index: {1}]   ;;  %s1582_s7 = inlined_call_operand.hbm [shape: f32[1,512], index: 7, kind: output, shape index: {2}]  }
   0x1   :  { %14 = vsyncpa [#allocation7], 0 }
   0x2   :  { %15 = vsyncpa [#allocation10], 0 }
   0x3   :  { %16 = vsyncpa [#allocation5], 0 }
   0x4   :  { %17 = vsyncpa [#allocation14], 0  ;;  %s1460_s24 = smov [#allocation6]   ;;  %s1461_s26 = smov [#allocation9]  }
   0x5   :  { %s36_s25 = sshll.u32 %s1460_s24, 4  ;;  %s55_s27 = sshll.u32 %s1461_s26, 4  ;;  %s37_s25 = int_to_ptr.vmem [resolvable:$true] %s36_s25  ;;  %s56_s27 = int_to_ptr.vmem [resolvable:$true] %s55_s27 }
   0x6   :  { %s1298_s28 = scalar_lea.vmem %s37_s25, 32  ;;  %p1303_p1 = scmp.lt.s32.totalorder %s37_s25, %s37_s25 }
   0x7   :  { %p1299_p0 = scmp.ne.s32.totalorder %s37_s25, %s1298_s28  ;;  %p1304_p2 = scmp.lt.s32.totalorder %s1298_s28, %s1298_s28 }
   0x9   :  { %p1305_p3 = por %p1304_p2, %p1303_p1 }
   0xb   :  { %p1306_p4 = pnand %p1305_p3, %p1299_p0 }
   0xd   :  { %1309 = shalt.err (!%p1306_p4)
}
   0xe   :  { %39 = dma.hbm_to_vmem [thread:$0]  %s1576_s1, 32, %s37_s25, [#allocation7]  }
   0xf   :  { %s1318_s8 = scalar_lea.vmem %s56_s27, 49152  ;;  %p1323_p6 = scmp.lt.s32.totalorder %s56_s27, %s56_s27 }
  0x10   :  { %p1319_p5 = scmp.ne.s32.totalorder %s56_s27, %s1318_s8  ;;  %p1324_p7 = scmp.lt.s32.totalorder %s1318_s8, %s1318_s8 }
  0x12   :  { %p1325_p8 = por %p1324_p7, %p1323_p6 }
  0x14   :  { %p1326_p9 = pnand %p1325_p8, %p1319_p5 }
  0x16   :  { %1329 = shalt.err (!%p1326_p9)
}
  0x17   :  { %s1462_s9 = smov 512   ;;  %s1463_s10 = smov 32  }
  0x18   :  { %61 = dma.hbm_to_vmem [thread:$0]  %s1578_s3, 49152, %s56_s27, [#allocation10], %s1462_s9, %s1462_s9, %s1463_s10  }
  0x19   :  { %s1464_s13 = smov [#allocation3]  }
  0x1a   :  { %s23_s14 = sshll.u32 %s1464_s13, 4  ;;  %s24_s14 = int_to_ptr.vmem [resolvable:$true] %s23_s14 }
  0x1b   :  { %s1338_s1 = scalar_lea.vmem %s24_s14, 512  ;;  %p1343_p11 = scmp.lt.s32.totalorder %s24_s14, %s24_s14 }
  0x1c   :  { %p1339_p10 = scmp.ne.s32.totalorder %s24_s14, %s1338_s1  ;;  %p1344_p12 = scmp.lt.s32.totalorder %s1338_s1, %s1338_s1 }
  0x1e   :  { %p1345_p13 = por %p1344_p12, %p1343_p11 }
  0x20   :  { %p1346_p0 = pnand %p1345_p13, %p1339_p10 }
  0x22   :  { %1349 = shalt.err (!%p1346_p0)
}
  0x23   :  { %s1465_s15 = smov 256   ;;  %s1466_s16 = smov 16  }
  0x24   :  { %29 = dma.hbm_to_vmem [thread:$0]  %s1575_s0, 512, %s24_s14, [#allocation4], %s1465_s15, %s1465_s15, %s1466_s16  }
  0x25   :  { %s1467_s19 = smov [#allocation8]   ;;  %s1468_s3 = smov [#allocation11]  }
  0x26   :  { %s46_s20 = sshll.u32 %s1467_s19, 4  ;;  %s68_s21 = sshll.u32 %s1468_s3, 4  ;;  %s47_s20 = int_to_ptr.vmem [resolvable:$true] %s46_s20  ;;  %s69_s21 = int_to_ptr.vmem [resolvable:$true] %s68_s21 }
  0x27   :  { %s1358_s22 = scalar_lea.vmem %s47_s20, 32  ;;  %p1363_p2 = scmp.lt.s32.totalorder %s47_s20, %s47_s20 }
  0x28   :  { %p1359_p1 = scmp.ne.s32.totalorder %s47_s20, %s1358_s22  ;;  %p1364_p3 = scmp.lt.s32.totalorder %s1358_s22, %s1358_s22 }
  0x2a   :  { %p1365_p4 = por %p1364_p3, %p1363_p2 }
  0x2c   :  { %p1366_p5 = pnand %p1365_p4, %p1359_p1 }
  0x2e   :  { %1369 = shalt.err (!%p1366_p5)
}
  0x2f   :  { %49 = dma.hbm_to_vmem [thread:$0]  %s1577_s2, 32, %s47_s20, [#allocation7]  }
  0x30   :  { %s1378_s25 = scalar_lea.vmem %s69_s21, 64  ;;  %p1383_p7 = scmp.lt.s32.totalorder %s69_s21, %s69_s21 }
  0x31   :  { %p1379_p6 = scmp.ne.s32.totalorder %s69_s21, %s1378_s25  ;;  %p1384_p8 = scmp.lt.s32.totalorder %s1378_s25, %s1378_s25 }
  0x33   :  { %p1385_p9 = por %p1384_p8, %p1383_p7 }
  0x35   :  { %p1386_p10 = pnand %p1385_p9, %p1379_p6 }
  0x37   :  { %1389 = shalt.err (!%p1386_p10)
}
  0x38   :  { %71 = dma.hbm_to_vmem [thread:$0]  %s1579_s4, 64, %s69_s21, [#allocation10]  }
  0x39   :  { %1450 = dma.done.wait [#allocation4], 512  }
  0x3a   :  { %1451 = vsyncadd [#allocation4], 4294966784 }
  0x3b   :  { %1452 = dma.done.wait [#allocation7], 64  }
  0x3c   :  { %1453 = vsyncadd [#allocation7], 4294967232 }
  0x3d   :  { %1454 = dma.done.wait [#allocation10], 49216  }
  0x3e   :  { %1455 = vsyncadd [#allocation10], 4294918080  ;;  %v95_v0 = vlaneseq  ;;  %v1469_v1 = vmov 0.0   ;;  %v217_v2 = vld [vmem:[#allocation9 + $0x1e8] sm:$0xff]  ;;  %v219_v3 = vld [vmem:[#allocation9 + $0x1f8] sm:$0xff]  ;;  %vm462_vm1 = vcmask 1046528  }
  0x3f   :  { %v216_v4 = vld [vmem:[#allocation9 + $0x1e0] sm:$0xff]  ;;  %284 = vmatprep.subr.mxu0 %v217_v2  ;;  %361 = vmatprep.subr.mxu1 %v219_v3  ;;  %v218_v5 = vld [vmem:[#allocation9 + $0x1f0] sm:$0xff]  ;;  %v213_v6 = vld [vmem:[#allocation9 + $0x1c8] sm:$0xff]  ;;  %vm786_vm2 = vcmask 1045504   ;;  %s1471_s2 = smov [#allocation12]  }
  0x40   :  { %vm97_vm0 = vcmp.lt.s32.totalorder %v95_v0, 256  ;;  %v215_v7 = vld [vmem:[#allocation9 + $0x1d8] sm:$0xff]  ;;  %285 = vmatpush1.msra.mxu0 %v216_v4  ;;  %362 = vmatpush1.msra.mxu1 %v218_v5  ;;  %v212_v8 = vld [vmem:[#allocation9 + $0x1c0] sm:$0xff]  ;;  %v214_v9 = vld [vmem:[#allocation9 + $0x1d0] sm:$0xff]  ;;  %s1235_s4 = sshll.u32 %s1471_s2, 4  ;;  %s1236_s4 = int_to_ptr.vmem [resolvable:$true] %s1235_s4 }
  0x41   :  { %99 = vst.msk [vmem:[#allocation2] ss:$8 sm:$0x3] %vm97_vm0, %v1469_v1  ;;  %102 = vst.msk [vmem:[#allocation2 + $0x20] ss:$8 sm:$0x3] %vm97_vm0, %v1469_v1  ;;  %286 = vmatprep.subr.mxu0 %v213_v6  ;;  %363 = vmatprep.subr.mxu1 %v215_v7  ;;  %p1395_p12 = scmp.lt.s32.totalorder %s1236_s4, %s1236_s4 }
  0x42   :  { %105 = vst.msk [vmem:[#allocation2 + $0x11] ss:$8 sm:$0x3] %vm97_vm0, %v1469_v1  ;;  %108 = vst.msk [vmem:[#allocation2 + $0x31] ss:$8 sm:$0x3] %vm97_vm0, %v1469_v1  ;;  %287 = vmatpush1.msra.mxu0 %v212_v8  ;;  %364 = vmatpush1.msra.mxu1 %v214_v9 }
  0x43   :  { %v209_v10 = vld [vmem:[#allocation9 + $0x1a8] sm:$0xff]  ;;  %v211_v11 = vld [vmem:[#allocation9 + $0x1b8] sm:$0xff]  ;;  %v208_v12 = vld [vmem:[#allocation9 + $0x1a0] sm:$0xff]  ;;  %s1390_s27 = scalar_lea.vmem %s1236_s4, 1024 }
  0x44   :  { %v210_v13 = vld [vmem:[#allocation9 + $0x1b0] sm:$0xff]  ;;  %v205_v14 = vld [vmem:[#allocation9 + $0x188] sm:$0xff]  ;;  %v207_v15 = vld [vmem:[#allocation9 + $0x198] sm:$0xff]  ;;  %288 = vmatprep.subr.mxu0 %v209_v10  ;;  %365 = vmatprep.subr.mxu1 %v211_v11  ;;  %p1391_p11 = scmp.ne.s32.totalorder %s1236_s4, %s1390_s27  ;;  %p1396_p13 = scmp.lt.s32.totalorder %s1390_s27, %s1390_s27 }
  0x45   :  { %v204_v16 = vld [vmem:[#allocation9 + $0x180] sm:$0xff]  ;;  %v206_v17 = vld [vmem:[#allocation9 + $0x190] sm:$0xff]  ;;  %289 = vmatpush1.msra.mxu0 %v208_v12  ;;  %366 = vmatpush1.msra.mxu1 %v210_v13  ;;  %v201_v18 = vld [vmem:[#allocation9 + $0x168] sm:$0xff] }
  0x46   :  { %v203_v19 = vld [vmem:[#allocation9 + $0x178] sm:$0xff]  ;;  %290 = vmatprep.subr.mxu0 %v205_v14  ;;  %367 = vmatprep.subr.mxu1 %v207_v15  ;;  %v200_v20 = vld [vmem:[#allocation9 + $0x160] sm:$0xff]  ;;  %v202_v21 = vld [vmem:[#allocation9 + $0x170] sm:$0xff]  ;;  %p1397_p0 = por %p1396_p13, %p1395_p12 }
  0x47   :  { %291 = vmatpush1.msra.mxu0 %v204_v16  ;;  %368 = vmatpush1.msra.mxu1 %v206_v17  ;;  %v197_v22 = vld [vmem:[#allocation9 + $0x148] sm:$0xff]  ;;  %v199_v23 = vld [vmem:[#allocation9 + $0x158] sm:$0xff]  ;;  %v196_v24 = vld [vmem:[#allocation9 + $0x140] sm:$0xff] }
  0x48   :  { %292 = vmatprep.subr.mxu0 %v201_v18  ;;  %369 = vmatprep.subr.mxu1 %v203_v19  ;;  %v198_v25 = vld [vmem:[#allocation9 + $0x150] sm:$0xff]  ;;  %v193_v26 = vld [vmem:[#allocation9 + $0x128] sm:$0xff]  ;;  %v195_v27 = vld [vmem:[#allocation9 + $0x138] sm:$0xff]  ;;  %p1398_p1 = pnand %p1397_p0, %p1391_p11 }
  0x49   :  { %293 = vmatpush1.msra.mxu0 %v200_v20  ;;  %370 = vmatpush1.msra.mxu1 %v202_v21  ;;  %v192_v28 = vld [vmem:[#allocation9 + $0x120] sm:$0xff]  ;;  %v194_v29 = vld [vmem:[#allocation9 + $0x130] sm:$0xff]  ;;  %v189_v30 = vld [vmem:[#allocation9 + $0x108] sm:$0xff] }
  0x4a   :  { %294 = vmatprep.subr.mxu0 %v197_v22  ;;  %371 = vmatprep.subr.mxu1 %v199_v23  ;;  %v191_v31 = vld [vmem:[#allocation9 + $0x118] sm:$0xff]  ;;  %v188_v32 = vld [vmem:[#allocation9 + $0x100] sm:$0xff]  ;;  %v190_v33 = vld [vmem:[#allocation9 + $0x110] sm:$0xff] }
  0x4b   :  { %295 = vmatpush1.msra.mxu0 %v196_v24  ;;  %372 = vmatpush1.msra.mxu1 %v198_v25  ;;  %v185_v34 = vld [vmem:[#allocation9 + $0xe8] sm:$0xff]  ;;  %v187_v35 = vld [vmem:[#allocation9 + $0xf8] sm:$0xff]  ;;  %v184_v36 = vld [vmem:[#allocation9 + $0xe0] sm:$0xff] }
  0x4c   :  { %296 = vmatprep.subr.mxu0 %v193_v26  ;;  %373 = vmatprep.subr.mxu1 %v195_v27  ;;  %v186_v37 = vld [vmem:[#allocation9 + $0xf0] sm:$0xff]  ;;  %v181_v38 = vld [vmem:[#allocation9 + $0xc8] sm:$0xff]  ;;  %v183_v39 = vld [vmem:[#allocation9 + $0xd8] sm:$0xff] }
  0x4d   :  { %297 = vmatpush1.msra.mxu0 %v192_v28  ;;  %374 = vmatpush1.msra.mxu1 %v194_v29  ;;  %v180_v40 = vld [vmem:[#allocation9 + $0xc0] sm:$0xff]  ;;  %v182_v41 = vld [vmem:[#allocation9 + $0xd0] sm:$0xff]  ;;  %v177_v42 = vld [vmem:[#allocation9 + $0xa8] sm:$0xff] }
  0x4e   :  { %298 = vmatprep.subr.mxu0 %v189_v30  ;;  %375 = vmatprep.subr.mxu1 %v191_v31  ;;  %v179_v43 = vld [vmem:[#allocation9 + $0xb8] sm:$0xff]  ;;  %v176_v44 = vld [vmem:[#allocation9 + $0xa0] sm:$0xff]  ;;  %v178_v45 = vld [vmem:[#allocation9 + $0xb0] sm:$0xff] }
  0x4f   :  { %299 = vmatpush1.msra.mxu0 %v188_v32  ;;  %376 = vmatpush1.msra.mxu1 %v190_v33  ;;  %v173_v46 = vld [vmem:[#allocation9 + $0x88] sm:$0xff]  ;;  %v175_v47 = vld [vmem:[#allocation9 + $0x98] sm:$0xff]  ;;  %v172_v48 = vld [vmem:[#allocation9 + $0x80] sm:$0xff] }
  0x50   :  { %300 = vmatprep.subr.mxu0 %v185_v34  ;;  %377 = vmatprep.subr.mxu1 %v187_v35  ;;  %v174_v49 = vld [vmem:[#allocation9 + $0x90] sm:$0xff]  ;;  %v169_v50 = vld [vmem:[#allocation9 + $0x68] sm:$0xff]  ;;  %v171_v51 = vld [vmem:[#allocation9 + $0x78] sm:$0xff] }
  0x51   :  { %301 = vmatpush1.msra.mxu0 %v184_v36  ;;  %378 = vmatpush1.msra.mxu1 %v186_v37  ;;  %v168_v52 = vld [vmem:[#allocation9 + $0x60] sm:$0xff]  ;;  %v170_v53 = vld [vmem:[#allocation9 + $0x70] sm:$0xff]  ;;  %v165_v54 = vld [vmem:[#allocation9 + $0x48] sm:$0xff] }
  0x52   :  { %302 = vmatprep.subr.mxu0 %v181_v38  ;;  %379 = vmatprep.subr.mxu1 %v183_v39  ;;  %v167_v55 = vld [vmem:[#allocation9 + $0x58] sm:$0xff]  ;;  %v164_v56 = vld [vmem:[#allocation9 + $0x40] sm:$0xff]  ;;  %v166_v57 = vld [vmem:[#allocation9 + $0x50] sm:$0xff] }
  0x53   :  { %303 = vmatpush1.msra.mxu0 %v180_v40  ;;  %380 = vmatpush1.msra.mxu1 %v182_v41  ;;  %v161_v58 = vld [vmem:[#allocation9 + $0x28] sm:$0xff]  ;;  %v163_v59 = vld [vmem:[#allocation9 + $0x38] sm:$0xff]  ;;  %v160_v60 = vld [vmem:[#allocation9 + $0x20] sm:$0xff] }
  0x54   :  { %304 = vmatprep.subr.mxu0 %v177_v42  ;;  %381 = vmatprep.subr.mxu1 %v179_v43  ;;  %v162_v61 = vld [vmem:[#allocation9 + $0x30] sm:$0xff]  ;;  %v157_v62 = vld [vmem:[#allocation9 + $0x8] sm:$0xff]  ;;  %v159_v63 = vld [vmem:[#allocation9 + $0x18] sm:$0xff] }
  0x55   :  { %305 = vmatpush1.msra.mxu0 %v176_v44  ;;  %382 = vmatpush1.msra.mxu1 %v178_v45  ;;  %v156_v1 = vld [vmem:[#allocation9] sm:$0xff]  ;;  %v158_v2 = vld [vmem:[#allocation9 + $0x10] sm:$0xff]  ;;  %v281_v3 = vld [vmem:[#allocation9 + $0x3e8] sm:$0xff] }
  0x56   :  { %306 = vmatprep.subr.mxu0 %v173_v46  ;;  %383 = vmatprep.subr.mxu1 %v175_v47  ;;  %v283_v4 = vld [vmem:[#allocation9 + $0x3f8] sm:$0xff]  ;;  %v280_v5 = vld [vmem:[#allocation9 + $0x3e0] sm:$0xff]  ;;  %v282_v6 = vld [vmem:[#allocation9 + $0x3f0] sm:$0xff] }
  0x57   :  { %307 = vmatpush1.msra.mxu0 %v172_v48  ;;  %384 = vmatpush1.msra.mxu1 %v174_v49  ;;  %v277_v7 = vld [vmem:[#allocation9 + $0x3c8] sm:$0xff]  ;;  %v279_v8 = vld [vmem:[#allocation9 + $0x3d8] sm:$0xff]  ;;  %v276_v9 = vld [vmem:[#allocation9 + $0x3c0] sm:$0xff] }
  0x58   :  { %308 = vmatprep.subr.mxu0 %v169_v50  ;;  %385 = vmatprep.subr.mxu1 %v171_v51  ;;  %v278_v10 = vld [vmem:[#allocation9 + $0x3d0] sm:$0xff]  ;;  %v273_v11 = vld [vmem:[#allocation9 + $0x3a8] sm:$0xff]  ;;  %v275_v12 = vld [vmem:[#allocation9 + $0x3b8] sm:$0xff] }
  0x59   :  { %309 = vmatpush1.msra.mxu0 %v168_v52  ;;  %386 = vmatpush1.msra.mxu1 %v170_v53  ;;  %v272_v13 = vld [vmem:[#allocation9 + $0x3a0] sm:$0xff]  ;;  %v274_v14 = vld [vmem:[#allocation9 + $0x3b0] sm:$0xff]  ;;  %v269_v15 = vld [vmem:[#allocation9 + $0x388] sm:$0xff] }
  0x5a   :  { %310 = vmatprep.subr.mxu0 %v165_v54  ;;  %387 = vmatprep.subr.mxu1 %v167_v55  ;;  %v271_v16 = vld [vmem:[#allocation9 + $0x398] sm:$0xff]  ;;  %v268_v17 = vld [vmem:[#allocation9 + $0x380] sm:$0xff]  ;;  %v270_v18 = vld [vmem:[#allocation9 + $0x390] sm:$0xff] }
  0x5b   :  { %311 = vmatpush1.msra.mxu0 %v164_v56  ;;  %388 = vmatpush1.msra.mxu1 %v166_v57  ;;  %v265_v19 = vld [vmem:[#allocation9 + $0x368] sm:$0xff]  ;;  %v267_v20 = vld [vmem:[#allocation9 + $0x378] sm:$0xff]  ;;  %v264_v21 = vld [vmem:[#allocation9 + $0x360] sm:$0xff] }
  0x5c   :  { %312 = vmatprep.subr.mxu0 %v161_v58  ;;  %389 = vmatprep.subr.mxu1 %v163_v59  ;;  %v266_v22 = vld [vmem:[#allocation9 + $0x370] sm:$0xff]  ;;  %v261_v23 = vld [vmem:[#allocation9 + $0x348] sm:$0xff]  ;;  %v263_v24 = vld [vmem:[#allocation9 + $0x358] sm:$0xff] }
  0x5d   :  { %313 = vmatpush1.msra.mxu0 %v160_v60  ;;  %390 = vmatpush1.msra.mxu1 %v162_v61  ;;  %v260_v25 = vld [vmem:[#allocation9 + $0x340] sm:$0xff]  ;;  %v262_v26 = vld [vmem:[#allocation9 + $0x350] sm:$0xff]  ;;  %v257_v27 = vld [vmem:[#allocation9 + $0x328] sm:$0xff] }
  0x5e   :  { %314 = vmatprep.subr.mxu0 %v157_v62  ;;  %391 = vmatprep.subr.mxu1 %v159_v63  ;;  %v259_v28 = vld [vmem:[#allocation9 + $0x338] sm:$0xff]  ;;  %v88_v29 = vld [vmem:[#allocation3 + $0x8] sm:$0xff]  ;;  %v258_v31 = vld [vmem:[#allocation9 + $0x330] sm:$0xff] }
  0x5f   :  { %315 = vmatpush1.msra.mxu0 %v156_v1  ;;  %392 = vmatpush1.msra.mxu1 %v158_v2  ;;  %v256_v30 = vld [vmem:[#allocation9 + $0x320] sm:$0xff]  ;;  %v115_v32 = vrot.slane %v88_v29, 7  ;;  %v253_v34 = vld [vmem:[#allocation9 + $0x308] sm:$0xff]  ;;  %v255_v35 = vld [vmem:[#allocation9 + $0x318] sm:$0xff] }
  0x60   :  { %316 = vmatprep.subr.mxu0 %v281_v3  ;;  %393 = vmatprep.subr.mxu1 %v283_v4  ;;  %v87_v33 = vld [vmem:[#allocation3] sm:$0xff]  ;;  %v254_v38 = vld [vmem:[#allocation9 + $0x310] sm:$0xff]  ;;  %v249_v39 = vld [vmem:[#allocation9 + $0x2e8] sm:$0xff] }
  0x61   :  { %317 = vmatpush2.msra.mxu0 %v280_v5  ;;  %394 = vmatpush2.msra.mxu1 %v282_v6  ;;  %v114_v36 = vrot.slane %v87_v33, 7  ;;  %v252_v37 = vld [vmem:[#allocation9 + $0x300] sm:$0xff]  ;;  %123 = vst [vmem:[#allocation2 + $0x8] sm:$0xfe] %v115_v32  ;;  %125 = vst [vmem:[#allocation2 + $0x18] sm:$0x1] %v115_v32 }
  0x62   :  { %318 = vmatprep.subr.mxu0 %v277_v7  ;;  %395 = vmatprep.subr.mxu1 %v279_v8  ;;  %v251_v40 = vld [vmem:[#allocation9 + $0x2f8] sm:$0xff]  ;;  %v248_v41 = vld [vmem:[#allocation9 + $0x2e0] sm:$0xff]  ;;  %v250_v42 = vld [vmem:[#allocation9 + $0x2f0] sm:$0xff] }
  0x63   :  { %319 = vmatpush2.msra.mxu0 %v276_v9  ;;  %396 = vmatpush2.msra.mxu1 %v278_v10  ;;  %122 = vst [vmem:[#allocation2] sm:$0xfe] %v114_v36  ;;  %124 = vst [vmem:[#allocation2 + $0x10] sm:$0x1] %v114_v36  ;;  %v245_v43 = vld [vmem:[#allocation9 + $0x2c8] sm:$0xff]  ;;  %v247_v44 = vld [vmem:[#allocation9 + $0x2d8] sm:$0xff] }
  0x64   :  { %320 = vmatprep.subr.mxu0 %v273_v11  ;;  %397 = vmatprep.subr.mxu1 %v275_v12  ;;  %v244_v45 = vld [vmem:[#allocation9 + $0x2c0] sm:$0xff]  ;;  %v246_v46 = vld [vmem:[#allocation9 + $0x2d0] sm:$0xff]  ;;  %v241_v47 = vld [vmem:[#allocation9 + $0x2a8] sm:$0xff] }
  0x65   :  { %321 = vmatpush2.msra.mxu0 %v272_v13  ;;  %398 = vmatpush2.msra.mxu1 %v274_v14  ;;  %v243_v48 = vld [vmem:[#allocation9 + $0x2b8] sm:$0xff]  ;;  %v240_v49 = vld [vmem:[#allocation9 + $0x2a0] sm:$0xff]  ;;  %v242_v50 = vld [vmem:[#allocation9 + $0x2b0] sm:$0xff] }
  0x66   :  { %322 = vmatprep.subr.mxu0 %v269_v15  ;;  %399 = vmatprep.subr.mxu1 %v271_v16  ;;  %v237_v51 = vld [vmem:[#allocation9 + $0x288] sm:$0xff]  ;;  %v239_v52 = vld [vmem:[#allocation9 + $0x298] sm:$0xff]  ;;  %v236_v53 = vld [vmem:[#allocation9 + $0x280] sm:$0xff] }
  0x67   :  { %323 = vmatpush2.msra.mxu0 %v268_v17  ;;  %400 = vmatpush2.msra.mxu1 %v270_v18  ;;  %v238_v54 = vld [vmem:[#allocation9 + $0x290] sm:$0xff]  ;;  %v233_v55 = vld [vmem:[#allocation9 + $0x268] sm:$0xff]  ;;  %v235_v56 = vld [vmem:[#allocation9 + $0x278] sm:$0xff] }
  0x68   :  { %324 = vmatprep.subr.mxu0 %v265_v19  ;;  %401 = vmatprep.subr.mxu1 %v267_v20  ;;  %v232_v57 = vld [vmem:[#allocation9 + $0x260] sm:$0xff]  ;;  %v234_v58 = vld [vmem:[#allocation9 + $0x270] sm:$0xff]  ;;  %v229_v59 = vld [vmem:[#allocation9 + $0x248] sm:$0xff] }
  0x69   :  { %325 = vmatpush2.msra.mxu0 %v264_v21  ;;  %402 = vmatpush2.msra.mxu1 %v266_v22  ;;  %v231_v60 = vld [vmem:[#allocation9 + $0x258] sm:$0xff]  ;;  %v228_v61 = vld [vmem:[#allocation9 + $0x240] sm:$0xff]  ;;  %v230_v62 = vld [vmem:[#allocation9 + $0x250] sm:$0xff] }
  0x6a   :  { %326 = vmatprep.subr.mxu0 %v261_v23  ;;  %403 = vmatprep.subr.mxu1 %v263_v24  ;;  %v225_v63 = vld [vmem:[#allocation9 + $0x228] sm:$0xff]  ;;  %v227_v1 = vld [vmem:[#allocation9 + $0x238] sm:$0xff]  ;;  %v224_v2 = vld [vmem:[#allocation9 + $0x220] sm:$0xff] }
  0x6b   :  { %327 = vmatpush2.msra.mxu0 %v260_v25  ;;  %404 = vmatpush2.msra.mxu1 %v262_v26  ;;  %v226_v3 = vld [vmem:[#allocation9 + $0x230] sm:$0xff]  ;;  %v221_v4 = vld [vmem:[#allocation9 + $0x208] sm:$0xff]  ;;  %v223_v5 = vld [vmem:[#allocation9 + $0x218] sm:$0xff] }
  0x6c   :  { %328 = vmatprep.subr.mxu0 %v257_v27  ;;  %405 = vmatprep.subr.mxu1 %v259_v28  ;;  %v220_v6 = vld [vmem:[#allocation9 + $0x200] sm:$0xff]  ;;  %v222_v8 = vld [vmem:[#allocation9 + $0x210] sm:$0xff]  ;;  %v541_v10 = vld [vmem:[#allocation9 + $0x5e8] sm:$0xff] }
  0x6d   :  { %329 = vmatpush2.msra.mxu0 %v256_v30  ;;  %406 = vmatpush2.msra.mxu1 %v258_v31  ;;  %v153_v7 = vld [vmem:[#allocation2 + $0x8] sm:$0xff]  ;;  %v152_v9 = vld [vmem:[#allocation2] sm:$0xff]  ;;  %v542_v13 = vld [vmem:[#allocation9 + $0x5f0] sm:$0xff] }
  0x6e   :  { %330 = vmatprep.subr.mxu0 %v253_v34  ;;  %407 = vmatprep.subr.mxu1 %v255_v35  ;;  %v543_v11 = vld [vmem:[#allocation9 + $0x5f8] sm:$0xff]  ;;  %v540_v12 = vld [vmem:[#allocation9 + $0x5e0] sm:$0xff]  ;;  %v537_v14 = vld [vmem:[#allocation9 + $0x5c8] sm:$0xff] }
  0x6f   :  { %331 = vmatpush2.msra.mxu0 %v252_v37  ;;  %408 = vmatpush2.msra.mxu1 %v254_v38  ;;  %v539_v15 = vld [vmem:[#allocation9 + $0x5d8] sm:$0xff]  ;;  %v536_v16 = vld [vmem:[#allocation9 + $0x5c0] sm:$0xff]  ;;  %v538_v17 = vld [vmem:[#allocation9 + $0x5d0] sm:$0xff] }
  0x70   :  { %332 = vmatprep.subr.mxu0 %v249_v39  ;;  %409 = vmatprep.subr.mxu1 %v251_v40  ;;  %v533_v18 = vld [vmem:[#allocation9 + $0x5a8] sm:$0xff]  ;;  %v535_v19 = vld [vmem:[#allocation9 + $0x5b8] sm:$0xff]  ;;  %v532_v20 = vld [vmem:[#allocation9 + $0x5a0] sm:$0xff] }
  0x71   :  { %333 = vmatpush2.msra.mxu0 %v248_v41  ;;  %410 = vmatpush2.msra.mxu1 %v250_v42  ;;  %v534_v21 = vld [vmem:[#allocation9 + $0x5b0] sm:$0xff]  ;;  %v529_v22 = vld [vmem:[#allocation9 + $0x588] sm:$0xff]  ;;  %v531_v23 = vld [vmem:[#allocation9 + $0x598] sm:$0xff] }
  0x72   :  { %334 = vmatprep.subr.mxu0 %v245_v43  ;;  %411 = vmatprep.subr.mxu1 %v247_v44  ;;  %v528_v24 = vld [vmem:[#allocation9 + $0x580] sm:$0xff]  ;;  %v530_v25 = vld [vmem:[#allocation9 + $0x590] sm:$0xff]  ;;  %v525_v26 = vld [vmem:[#allocation9 + $0x568] sm:$0xff] }
  0x73   :  { %335 = vmatpush2.msra.mxu0 %v244_v45  ;;  %412 = vmatpush2.msra.mxu1 %v246_v46  ;;  %v527_v27 = vld [vmem:[#allocation9 + $0x578] sm:$0xff]  ;;  %v524_v28 = vld [vmem:[#allocation9 + $0x560] sm:$0xff]  ;;  %v526_v29 = vld [vmem:[#allocation9 + $0x570] sm:$0xff] }
  0x74   :  { %336 = vmatprep.subr.mxu0 %v241_v47  ;;  %413 = vmatprep.subr.mxu1 %v243_v48  ;;  %v521_v30 = vld [vmem:[#allocation9 + $0x548] sm:$0xff]  ;;  %v523_v31 = vld [vmem:[#allocation9 + $0x558] sm:$0xff]  ;;  %v520_v32 = vld [vmem:[#allocation9 + $0x540] sm:$0xff] }
  0x75   :  { %337 = vmatpush2.msra.mxu0 %v240_v49  ;;  %414 = vmatpush2.msra.mxu1 %v242_v50  ;;  %v522_v33 = vld [vmem:[#allocation9 + $0x550] sm:$0xff]  ;;  %v517_v34 = vld [vmem:[#allocation9 + $0x528] sm:$0xff]  ;;  %v519_v35 = vld [vmem:[#allocation9 + $0x538] sm:$0xff] }
  0x76   :  { %338 = vmatprep.subr.mxu0 %v237_v51  ;;  %415 = vmatprep.subr.mxu1 %v239_v52  ;;  %v516_v36 = vld [vmem:[#allocation9 + $0x520] sm:$0xff]  ;;  %v518_v37 = vld [vmem:[#allocation9 + $0x530] sm:$0xff]  ;;  %v513_v38 = vld [vmem:[#allocation9 + $0x508] sm:$0xff] }
  0x77   :  { %339 = vmatpush2.msra.mxu0 %v236_v53  ;;  %416 = vmatpush2.msra.mxu1 %v238_v54  ;;  %v515_v39 = vld [vmem:[#allocation9 + $0x518] sm:$0xff]  ;;  %v512_v40 = vld [vmem:[#allocation9 + $0x500] sm:$0xff]  ;;  %v514_v41 = vld [vmem:[#allocation9 + $0x510] sm:$0xff] }
  0x78   :  { %340 = vmatprep.subr.mxu0 %v233_v55  ;;  %417 = vmatprep.subr.mxu1 %v235_v56  ;;  %v509_v42 = vld [vmem:[#allocation9 + $0x4e8] sm:$0xff]  ;;  %v511_v43 = vld [vmem:[#allocation9 + $0x4f8] sm:$0xff]  ;;  %v508_v44 = vld [vmem:[#allocation9 + $0x4e0] sm:$0xff] }
  0x79   :  { %341 = vmatpush2.msra.mxu0 %v232_v57  ;;  %418 = vmatpush2.msra.mxu1 %v234_v58  ;;  %v510_v45 = vld [vmem:[#allocation9 + $0x4f0] sm:$0xff]  ;;  %v505_v46 = vld [vmem:[#allocation9 + $0x4c8] sm:$0xff]  ;;  %v507_v47 = vld [vmem:[#allocation9 + $0x4d8] sm:$0xff] }
  0x7a   :  { %342 = vmatprep.subr.mxu0 %v229_v59  ;;  %419 = vmatprep.subr.mxu1 %v231_v60  ;;  %v90_v48 = vld [vmem:[#allocation3 + $0x18] sm:$0xff]  ;;  %v504_v49 = vld [vmem:[#allocation9 + $0x4c0] sm:$0xff]  ;;  %v89_v52 = vld [vmem:[#allocation3 + $0x10] sm:$0xff] }
  0x7b   :  { %343 = vmatpush2.msra.mxu0 %v228_v61  ;;  %420 = vmatpush2.msra.mxu1 %v230_v62  ;;  %v506_v50 = vld [vmem:[#allocation9 + $0x4d0] sm:$0xff]  ;;  %v117_v51 = vrot.slane %v90_v48, 7  ;;  %v501_v53 = vld [vmem:[#allocation9 + $0x4a8] sm:$0xff]  ;;  %v503_v54 = vld [vmem:[#allocation9 + $0x4b8] sm:$0xff]  ;;  %v116_v55 = vrot.slane %v89_v52, 7 }
  0x7c   :  { %344 = vmatprep.subr.mxu0 %v225_v63  ;;  %421 = vmatprep.subr.mxu1 %v227_v1  ;;  %v500_v56 = vld [vmem:[#allocation9 + $0x4a0] sm:$0xff]  ;;  %v502_v57 = vld [vmem:[#allocation9 + $0x4b0] sm:$0xff]  ;;  %v497_v58 = vld [vmem:[#allocation9 + $0x488] sm:$0xff] }
  0x7d   :  { %345 = vmatpush2.msra.mxu0 %v224_v2  ;;  %422 = vmatpush2.msra.mxu1 %v226_v3  ;;  %127 = vst [vmem:[#allocation2 + $0x28] sm:$0xfe] %v117_v51  ;;  %129 = vst [vmem:[#allocation2 + $0x38] sm:$0x1] %v117_v51  ;;  %v499_v59 = vld [vmem:[#allocation9 + $0x498] sm:$0xff]  ;;  %v496_v60 = vld [vmem:[#allocation9 + $0x480] sm:$0xff] }
  0x7e   :  { %346 = vmatprep.subr.mxu0 %v221_v4  ;;  %423 = vmatprep.subr.mxu1 %v223_v5  ;;  %126 = vst [vmem:[#allocation2 + $0x20] sm:$0xfe] %v116_v55  ;;  %128 = vst [vmem:[#allocation2 + $0x30] sm:$0x1] %v116_v55  ;;  %v498_v61 = vld [vmem:[#allocation9 + $0x490] sm:$0xff]  ;;  %v493_v62 = vld [vmem:[#allocation9 + $0x468] sm:$0xff] }
  0x7f   :  { %347 = vmatpush2.msra.mxu0 %v220_v6  ;;  %348 = vmatprep.mubr.f32.mxu0 %v153_v7  ;;  %v495_v63 = vld [vmem:[#allocation9 + $0x478] sm:$0xff]  ;;  %v492_v1 = vld [vmem:[#allocation9 + $0x460] sm:$0xff]  ;;  %v494_v2 = vld [vmem:[#allocation9 + $0x470] sm:$0xff] }
  0x80   :  { %424 = vmatpush2.msra.mxu1 %v222_v8  ;;  %425 = vmatprep.mubr.f32.mxu1 %v153_v7  ;;  %v489_v3 = vld [vmem:[#allocation9 + $0x448] sm:$0xff]  ;;  %v491_v4 = vld [vmem:[#allocation9 + $0x458] sm:$0xff]  ;;  %v488_v5 = vld [vmem:[#allocation9 + $0x440] sm:$0xff] }
  0x81   :  { %349 = vmatmul.mubr.f32.vlgmr.msra.gmra.mxu0 %v152_v9  ;;  %426 = vmatmul.mubr.f32.vlgmr.msra.gmra.mxu1 %v152_v9  ;;  %v490_v6 = vld [vmem:[#allocation9 + $0x450] sm:$0xff]  ;;  %v485_v7 = vld [vmem:[#allocation9 + $0x428] sm:$0xff]  ;;  %v487_v8 = vld [vmem:[#allocation9 + $0x438] sm:$0xff] }
  0x82   :  { %608 = vmatprep.subr.mxu0 %v541_v10  ;;  %685 = vmatprep.subr.mxu1 %v543_v11  ;;  %v484_v9 = vld [vmem:[#allocation9 + $0x420] sm:$0xff]  ;;  %v486_v10 = vld [vmem:[#allocation9 + $0x430] sm:$0xff]  ;;  %v481_v11 = vld [vmem:[#allocation9 + $0x408] sm:$0xff] }
  0x83   :  { %609 = vmatpush1.msra.mxu0 %v540_v12  ;;  %686 = vmatpush1.msra.mxu1 %v542_v13  ;;  %v483_v12 = vld [vmem:[#allocation9 + $0x418] sm:$0xff]  ;;  %v480_v13 = vld [vmem:[#allocation9 + $0x400] sm:$0xff]  ;;  %v569_v51 = vld [vmem:[#allocation9 + $0x6c8] sm:$0xff] }
  0x84   :  { %610 = vmatprep.subr.mxu0 %v537_v14  ;;  %687 = vmatprep.subr.mxu1 %v539_v15  ;;  %v482_v14 = vld [vmem:[#allocation9 + $0x410] sm:$0xff]  ;;  %v605_v15 = vld [vmem:[#allocation9 + $0x7e8] sm:$0xff]  ;;  %v575_v48 = vld [vmem:[#allocation9 + $0x6f8] sm:$0xff] }
  0x85   :  { %611 = vmatpush1.msra.mxu0 %v536_v16  ;;  %688 = vmatpush1.msra.mxu1 %v538_v17  ;;  %v607_v16 = vld [vmem:[#allocation9 + $0x7f8] sm:$0xff]  ;;  %v604_v17 = vld [vmem:[#allocation9 + $0x7e0] sm:$0xff]  ;;  %v565_v55 = vld [vmem:[#allocation9 + $0x6a8] sm:$0xff] }
  0x86   :  { %612 = vmatprep.subr.mxu0 %v533_v18  ;;  %689 = vmatprep.subr.mxu1 %v535_v19  ;;  %v606_v18 = vld [vmem:[#allocation9 + $0x7f0] sm:$0xff]  ;;  %v601_v19 = vld [vmem:[#allocation9 + $0x7c8] sm:$0xff]  ;;  %v571_v52 = vld [vmem:[#allocation9 + $0x6d8] sm:$0xff] }
  0x87   :  { %613 = vmatpush1.msra.mxu0 %v532_v20  ;;  %690 = vmatpush1.msra.mxu1 %v534_v21  ;;  %v603_v20 = vld [vmem:[#allocation9 + $0x7d8] sm:$0xff]  ;;  %v600_v21 = vld [vmem:[#allocation9 + $0x7c0] sm:$0xff] }
  0x88   :  { %614 = vmatprep.subr.mxu0 %v529_v22  ;;  %691 = vmatprep.subr.mxu1 %v531_v23  ;;  %v602_v22 = vld [vmem:[#allocation9 + $0x7d0] sm:$0xff]  ;;  %v597_v23 = vld [vmem:[#allocation9 + $0x7a8] sm:$0xff] }
  0x89   :  { %615 = vmatpush1.msra.mxu0 %v528_v24  ;;  %692 = vmatpush1.msra.mxu1 %v530_v25  ;;  %v599_v24 = vld [vmem:[#allocation9 + $0x7b8] sm:$0xff]  ;;  %v596_v25 = vld [vmem:[#allocation9 + $0x7a0] sm:$0xff] }
  0x8a   :  { %616 = vmatprep.subr.mxu0 %v525_v26  ;;  %693 = vmatprep.subr.mxu1 %v527_v27  ;;  %v598_v26 = vld [vmem:[#allocation9 + $0x7b0] sm:$0xff]  ;;  %v593_v27 = vld [vmem:[#allocation9 + $0x788] sm:$0xff] }
  0x8b   :  { %617 = vmatpush1.msra.mxu0 %v524_v28  ;;  %694 = vmatpush1.msra.mxu1 %v526_v29  ;;  %v595_v28 = vld [vmem:[#allocation9 + $0x798] sm:$0xff]  ;;  %v592_v29 = vld [vmem:[#allocation9 + $0x780] sm:$0xff] }
  0x8c   :  { %618 = vmatprep.subr.mxu0 %v521_v30  ;;  %695 = vmatprep.subr.mxu1 %v523_v31  ;;  %v594_v30 = vld [vmem:[#allocation9 + $0x790] sm:$0xff]  ;;  %v589_v31 = vld [vmem:[#allocation9 + $0x768] sm:$0xff] }
  0x8d   :  { %619 = vmatpush1.msra.mxu0 %v520_v32  ;;  %696 = vmatpush1.msra.mxu1 %v522_v33  ;;  %v591_v32 = vld [vmem:[#allocation9 + $0x778] sm:$0xff]  ;;  %v588_v33 = vld [vmem:[#allocation9 + $0x760] sm:$0xff] }
  0x8e   :  { %620 = vmatprep.subr.mxu0 %v517_v34  ;;  %697 = vmatprep.subr.mxu1 %v519_v35  ;;  %v590_v34 = vld [vmem:[#allocation9 + $0x770] sm:$0xff]  ;;  %v585_v35 = vld [vmem:[#allocation9 + $0x748] sm:$0xff] }
  0x8f   :  { %621 = vmatpush1.msra.mxu0 %v516_v36  ;;  %698 = vmatpush1.msra.mxu1 %v518_v37  ;;  %v587_v36 = vld [vmem:[#allocation9 + $0x758] sm:$0xff]  ;;  %v584_v37 = vld [vmem:[#allocation9 + $0x740] sm:$0xff] }
  0x90   :  { %622 = vmatprep.subr.mxu0 %v513_v38  ;;  %699 = vmatprep.subr.mxu1 %v515_v39  ;;  %v586_v38 = vld [vmem:[#allocation9 + $0x750] sm:$0xff]  ;;  %v581_v39 = vld [vmem:[#allocation9 + $0x728] sm:$0xff] }
  0x91   :  { %623 = vmatpush1.msra.mxu0 %v512_v40  ;;  %700 = vmatpush1.msra.mxu1 %v514_v41  ;;  %v583_v40 = vld [vmem:[#allocation9 + $0x738] sm:$0xff]  ;;  %v580_v41 = vld [vmem:[#allocation9 + $0x720] sm:$0xff] }
  0x92   :  { %624 = vmatprep.subr.mxu0 %v509_v42  ;;  %701 = vmatprep.subr.mxu1 %v511_v43  ;;  %v582_v42 = vld [vmem:[#allocation9 + $0x730] sm:$0xff]  ;;  %v577_v43 = vld [vmem:[#allocation9 + $0x708] sm:$0xff] }
  0x93   :  { %625 = vmatpush1.msra.mxu0 %v508_v44  ;;  %702 = vmatpush1.msra.mxu1 %v510_v45  ;;  %v579_v44 = vld [vmem:[#allocation9 + $0x718] sm:$0xff]  ;;  %v576_v45 = vld [vmem:[#allocation9 + $0x700] sm:$0xff] }
  0x94   :  { %626 = vmatprep.subr.mxu0 %v505_v46  ;;  %703 = vmatprep.subr.mxu1 %v507_v47  ;;  %v578_v46 = vld [vmem:[#allocation9 + $0x710] sm:$0xff]  ;;  %v573_v47 = vld [vmem:[#allocation9 + $0x6e8] sm:$0xff] }
  0x95   :  { %627 = vmatpush1.msra.mxu0 %v504_v49  ;;  %704 = vmatpush1.msra.mxu1 %v506_v50  ;;  %v572_v49 = vld [vmem:[#allocation9 + $0x6e0] sm:$0xff]  ;;  %v574_v50 = vld [vmem:[#allocation9 + $0x6f0] sm:$0xff] }
  0x96   :  { %628 = vmatprep.subr.mxu0 %v501_v53  ;;  %705 = vmatprep.subr.mxu1 %v503_v54  ;;  %v568_v53 = vld [vmem:[#allocation9 + $0x6c0] sm:$0xff]  ;;  %v570_v54 = vld [vmem:[#allocation9 + $0x6d0] sm:$0xff] }
  0x97   :  { %629 = vmatpush1.msra.mxu0 %v500_v56  ;;  %706 = vmatpush1.msra.mxu1 %v502_v57  ;;  %v567_v56 = vld [vmem:[#allocation9 + $0x6b8] sm:$0xff]  ;;  %v564_v57 = vld [vmem:[#allocation9 + $0x6a0] sm:$0xff] }
  0x98   :  { %630 = vmatprep.subr.mxu0 %v497_v58  ;;  %707 = vmatprep.subr.mxu1 %v499_v59  ;;  %v566_v58 = vld [vmem:[#allocation9 + $0x6b0] sm:$0xff]  ;;  %v561_v59 = vld [vmem:[#allocation9 + $0x688] sm:$0xff] }
  0x99   :  { %631 = vmatpush1.msra.mxu0 %v496_v60  ;;  %708 = vmatpush1.msra.mxu1 %v498_v61  ;;  %v563_v60 = vld [vmem:[#allocation9 + $0x698] sm:$0xff]  ;;  %v560_v61 = vld [vmem:[#allocation9 + $0x680] sm:$0xff] }
  0x9a   :  { %632 = vmatprep.subr.mxu0 %v493_v62  ;;  %709 = vmatprep.subr.mxu1 %v495_v63  ;;  %v562_v62 = vld [vmem:[#allocation9 + $0x690] sm:$0xff]  ;;  %v557_v63 = vld [vmem:[#allocation9 + $0x668] sm:$0xff] }
  0x9b   :  { %633 = vmatpush1.msra.mxu0 %v492_v1  ;;  %710 = vmatpush1.msra.mxu1 %v494_v2  ;;  %v559_v1 = vld [vmem:[#allocation9 + $0x678] sm:$0xff]  ;;  %v556_v2 = vld [vmem:[#allocation9 + $0x660] sm:$0xff] }
  0x9c   :  { %634 = vmatprep.subr.mxu0 %v489_v3  ;;  %711 = vmatprep.subr.mxu1 %v491_v4  ;;  %v558_v3 = vld [vmem:[#allocation9 + $0x670] sm:$0xff]  ;;  %v155_v4 = vld [vmem:[#allocation2 + $0x28] sm:$0xff] }
  0x9d   :  { %635 = vmatpush1.msra.mxu0 %v488_v5  ;;  %712 = vmatpush1.msra.mxu1 %v490_v6  ;;  %v447_v5 = vld [vmem:[#allocation2 + $0x8] sm:$0xfe]  ;;  %v449_v6 = vld [vmem:[#allocation2 + $0x18] sm:$0x1] }
  0x9e   :  { %636 = vmatprep.subr.mxu0 %v485_v7  ;;  %713 = vmatprep.subr.mxu1 %v487_v8  ;;  %v553_v7 = vld [vmem:[#allocation9 + $0x648] sm:$0xff]  ;;  %v555_v8 = vld [vmem:[#allocation9 + $0x658] sm:$0xff] }
  0x9f   :  { %637 = vmatpush1.msra.mxu0 %v484_v9  ;;  %714 = vmatpush1.msra.mxu1 %v486_v10  ;;  %v154_v9 = vld [vmem:[#allocation2 + $0x20] sm:$0xff] }
  0xa0   :  { %638 = vmatprep.subr.mxu0 %v481_v11  ;;  %715 = vmatprep.subr.mxu1 %v483_v12  ;;  %v446_v10 = vld [vmem:[#allocation2] sm:$0xfe]  ;;  %v448_v11 = vld [vmem:[#allocation2 + $0x10] sm:$0x1] }
  0xa1   :  { %639 = vmatpush1.msra.mxu0 %v480_v13  ;;  %716 = vmatpush1.msra.mxu1 %v482_v14  ;;  %v552_v12 = vld [vmem:[#allocation9 + $0x640] sm:$0xff]  ;;  %v554_v13 = vld [vmem:[#allocation9 + $0x650] sm:$0xff]  ;;  %v466_v14 = vrot.slane %v447_v5, 1 }
  0xa2   :  { %640 = vmatprep.subr.mxu0 %v605_v15  ;;  %717 = vmatprep.subr.mxu1 %v607_v16  ;;  %v467_v15 = vrot.slane %v449_v6, 1  ;;  %v549_v16 = vld [vmem:[#allocation9 + $0x628] sm:$0xff]  ;;  %v836_v5 = vld [vmem:[#allocation9 + $0x900] sm:$0xff]  ;;  %v838_v6 = vld [vmem:[#allocation9 + $0x910] sm:$0xff] }
  0xa3   :  { %641 = vmatpush2.msra.mxu0 %v604_v17  ;;  %718 = vmatpush2.msra.mxu1 %v606_v18  ;;  %v551_v17 = vld [vmem:[#allocation9 + $0x638] sm:$0xff]  ;;  %v548_v18 = vld [vmem:[#allocation9 + $0x620] sm:$0xff] }
  0xa4   :  { %642 = vmatprep.subr.mxu0 %v601_v19  ;;  %719 = vmatprep.subr.mxu1 %v603_v20  ;;  %v550_v19 = vld [vmem:[#allocation9 + $0x630] sm:$0xff]  ;;  %v545_v20 = vld [vmem:[#allocation9 + $0x608] sm:$0xff] }
  0xa5   :  { %643 = vmatpush2.msra.mxu0 %v600_v21  ;;  %720 = vmatpush2.msra.mxu1 %v602_v22  ;;  %v463_v21 = vrot.slane %v446_v10, 1  ;;  %v464_v22 = vrot.slane %v448_v11, 1  ;;  %v834_v10 = vld [vmem:[#allocation9 + $0x8f0] sm:$0xff]  ;;  %v829_v11 = vld [vmem:[#allocation9 + $0x8c8] sm:$0xff] }
  0xa6   :  { %644 = vmatprep.subr.mxu0 %v597_v23  ;;  %721 = vmatprep.subr.mxu1 %v599_v24  ;;  %v547_v23 = vld [vmem:[#allocation9 + $0x618] sm:$0xff]  ;;  %v451_v24 = vld [vmem:[#allocation2 + $0x28] sm:$0xfe] }
  0xa7   :  { %645 = vmatpush2.msra.mxu0 %v596_v25  ;;  %722 = vmatpush2.msra.mxu1 %v598_v26  ;;  %v453_v25 = vld [vmem:[#allocation2 + $0x38] sm:$0x1]  ;;  %v544_v26 = vld [vmem:[#allocation9 + $0x600] sm:$0xff] }
  0xa8   :  { %646 = vmatprep.subr.mxu0 %v593_v27  ;;  %723 = vmatprep.subr.mxu1 %v595_v28  ;;  %v468_v27 = vsel %vm462_vm1, %v466_v14, %v467_v15  ;;  %v546_v28 = vld [vmem:[#allocation9 + $0x610] sm:$0xff]  ;;  %v825_v15 = vld [vmem:[#allocation9 + $0x8a8] sm:$0xff] }
  0xa9   :  { %647 = vmatpush2.msra.mxu0 %v592_v29  ;;  %724 = vmatpush2.msra.mxu1 %v594_v30  ;;  %v450_v29 = vld [vmem:[#allocation2 + $0x20] sm:$0xfe]  ;;  %v452_v30 = vld [vmem:[#allocation2 + $0x30] sm:$0x1]  ;;  %v830_v14 = vld [vmem:[#allocation9 + $0x8d0] sm:$0xff] }
  0xaa   :  { %648 = vmatprep.subr.mxu0 %v589_v31  ;;  %725 = vmatprep.subr.mxu1 %v591_v32  ;;  %v465_v31 = vsel %vm462_vm1, %v463_v21, %v464_v22  ;;  %v472_v32 = vrot.slane %v451_v24, 1  ;;  %v820_v21 = vld [vmem:[#allocation9 + $0x880] sm:$0xff]  ;;  %v822_v22 = vld [vmem:[#allocation9 + $0x890] sm:$0xff]  ;;  %v819_v24 = vld [vmem:[#allocation9 + $0x878] sm:$0xff] }
  0xab   :  { %649 = vmatpush2.msra.mxu0 %v588_v33  ;;  %726 = vmatpush2.msra.mxu1 %v590_v34  ;;  %v473_v33 = vrot.slane %v453_v25, 1  ;;  %v865_v34 = vld [vmem:[#allocation9 + $0x9e8] sm:$0xff]  ;;  %v816_v25 = vld [vmem:[#allocation9 + $0x860] sm:$0xff] }
  0xac   :  { %650 = vmatprep.subr.mxu0 %v585_v35  ;;  %727 = vmatprep.subr.mxu1 %v587_v36  ;;  %v867_v35 = vld [vmem:[#allocation9 + $0x9f8] sm:$0xff]  ;;  %v864_v36 = vld [vmem:[#allocation9 + $0x9e0] sm:$0xff] }
  0xad   :  { %651 = vmatpush2.msra.mxu0 %v584_v37  ;;  %728 = vmatpush2.msra.mxu1 %v586_v38  ;;  %v866_v37 = vld [vmem:[#allocation9 + $0x9f0] sm:$0xff]  ;;  %v469_v38 = vrot.slane %v450_v29, 1  ;;  %v812_v29 = vld [vmem:[#allocation9 + $0x840] sm:$0xff] }
  0xae   :  { %652 = vmatprep.subr.mxu0 %v581_v39  ;;  %729 = vmatprep.subr.mxu1 %v583_v40  ;;  %v470_v39 = vrot.slane %v452_v30, 1  ;;  %v861_v40 = vld [vmem:[#allocation9 + $0x9c8] sm:$0xff]  ;;  %v814_v30 = vld [vmem:[#allocation9 + $0x850] sm:$0xff] }
  0xaf   :  { %653 = vmatpush2.msra.mxu0 %v580_v41  ;;  %730 = vmatpush2.msra.mxu1 %v582_v42  ;;  %v863_v41 = vld [vmem:[#allocation9 + $0x9d8] sm:$0xff]  ;;  %v474_v42 = vsel %vm462_vm1, %v472_v32, %v473_v33  ;;  %v808_v33 = vld [vmem:[#allocation9 + $0x820] sm:$0xff] }
  0xb0   :  { %654 = vmatprep.subr.mxu0 %v577_v43  ;;  %731 = vmatprep.subr.mxu1 %v579_v44  ;;  %v860_v43 = vld [vmem:[#allocation9 + $0x9c0] sm:$0xff]  ;;  %v862_v44 = vld [vmem:[#allocation9 + $0x9d0] sm:$0xff]  ;;  %v811_v32 = vld [vmem:[#allocation9 + $0x838] sm:$0xff] }
  0xb1   :  { %655 = vmatpush2.msra.mxu0 %v576_v45  ;;  %732 = vmatpush2.msra.mxu1 %v578_v46  ;;  %v471_v45 = vsel %vm462_vm1, %v469_v38, %v470_v39  ;;  %v857_v46 = vld [vmem:[#allocation9 + $0x9a8] sm:$0xff]  ;;  %v806_v38 = vld [vmem:[#allocation9 + $0x810] sm:$0xff] }
  0xb2   :  { %656 = vmatprep.subr.mxu0 %v573_v47  ;;  %733 = vmatprep.subr.mxu1 %v575_v48  ;;  %v859_v47 = vld [vmem:[#allocation9 + $0x9b8] sm:$0xff]  ;;  %v856_v48 = vld [vmem:[#allocation9 + $0x9a0] sm:$0xff]  ;;  %v929_v39 = vld [vmem:[#allocation9 + $0xbe8] sm:$0xff] }
  0xb3   :  { %657 = vmatpush2.msra.mxu0 %v572_v49  ;;  %734 = vmatpush2.msra.mxu1 %v574_v50  ;;  %v858_v49 = vld [vmem:[#allocation9 + $0x9b0] sm:$0xff]  ;;  %v853_v50 = vld [vmem:[#allocation9 + $0x988] sm:$0xff] }
  0xb4   :  { %658 = vmatprep.subr.mxu0 %v569_v51  ;;  %735 = vmatprep.subr.mxu1 %v571_v52  ;;  %v855_v51 = vld [vmem:[#allocation9 + $0x998] sm:$0xff]  ;;  %v852_v52 = vld [vmem:[#allocation9 + $0x980] sm:$0xff] }
  0xb5   :  { %659 = vmatpush2.msra.mxu0 %v568_v53  ;;  %736 = vmatpush2.msra.mxu1 %v570_v54  ;;  %v854_v53 = vld [vmem:[#allocation9 + $0x990] sm:$0xff]  ;;  %v849_v54 = vld [vmem:[#allocation9 + $0x968] sm:$0xff] }
  0xb6   :  { %660 = vmatprep.subr.mxu0 %v565_v55  ;;  %737 = vmatprep.subr.mxu1 %v567_v56  ;;  %v851_v55 = vld [vmem:[#allocation9 + $0x978] sm:$0xff]  ;;  %v848_v56 = vld [vmem:[#allocation9 + $0x960] sm:$0xff] }
  0xb7   :  { %661 = vmatpush2.msra.mxu0 %v564_v57  ;;  %738 = vmatpush2.msra.mxu1 %v566_v58  ;;  %v850_v57 = vld [vmem:[#allocation9 + $0x970] sm:$0xff]  ;;  %v845_v58 = vld [vmem:[#allocation9 + $0x948] sm:$0xff] }
  0xb8   :  { %662 = vmatprep.subr.mxu0 %v561_v59  ;;  %739 = vmatprep.subr.mxu1 %v563_v60  ;;  %v847_v59 = vld [vmem:[#allocation9 + $0x958] sm:$0xff]  ;;  %v844_v60 = vld [vmem:[#allocation9 + $0x940] sm:$0xff] }
  0xb9   :  { %663 = vmatpush2.msra.mxu0 %v560_v61  ;;  %740 = vmatpush2.msra.mxu1 %v562_v62  ;;  %v846_v61 = vld [vmem:[#allocation9 + $0x950] sm:$0xff]  ;;  %v841_v62 = vld [vmem:[#allocation9 + $0x928] sm:$0xff] }
  0xba   :  { %664 = vmatprep.subr.mxu0 %v557_v63  ;;  %741 = vmatprep.subr.mxu1 %v559_v1  ;;  %v843_v63 = vld [vmem:[#allocation9 + $0x938] sm:$0xff]  ;;  %v840_v1 = vld [vmem:[#allocation9 + $0x920] sm:$0xff] }
  0xbb   :  { %665 = vmatpush2.msra.mxu0 %v556_v2  ;;  %742 = vmatpush2.msra.mxu1 %v558_v3  ;;  %v842_v2 = vld [vmem:[#allocation9 + $0x930] sm:$0xff]  ;;  %v837_v3 = vld [vmem:[#allocation9 + $0x908] sm:$0xff] }
  0xbc   :  { %354 = vmatprep.mubr.f32.mxu0 %v155_v4  ;;  %431 = vmatprep.mubr.f32.mxu1 %v155_v4  ;;  %v839_v4 = vld [vmem:[#allocation9 + $0x918] sm:$0xff] }
  0xbd   :  { %666 = vmatprep.subr.mxu0 %v553_v7  ;;  %743 = vmatprep.subr.mxu1 %v555_v8  ;;  %v833_v7 = vld [vmem:[#allocation9 + $0x8e8] sm:$0xff]  ;;  %v835_v8 = vld [vmem:[#allocation9 + $0x8f8] sm:$0xff] }
  0xbe   :  { %355 = vmatmul.mubr.f32.gmra.mxu0 %v154_v9  ;;  %432 = vmatmul.mubr.f32.gmra.mxu1 %v154_v9  ;;  %v832_v9 = vld [vmem:[#allocation9 + $0x8e0] sm:$0xff] }
  0xbf   :  { %667 = vmatpush2.msra.mxu0 %v552_v12  ;;  %744 = vmatpush2.msra.mxu1 %v554_v13  ;;  %v831_v12 = vld [vmem:[#allocation9 + $0x8d8] sm:$0xff]  ;;  %v828_v13 = vld [vmem:[#allocation9 + $0x8c0] sm:$0xff] }
  0xc0   :  { %668 = vmatprep.subr.mxu0 %v549_v16  ;;  %745 = vmatprep.subr.mxu1 %v551_v17  ;;  %v827_v16 = vld [vmem:[#allocation9 + $0x8b8] sm:$0xff]  ;;  %v824_v17 = vld [vmem:[#allocation9 + $0x8a0] sm:$0xff] }
  0xc1   :  { %669 = vmatpush2.msra.mxu0 %v548_v18  ;;  %746 = vmatpush2.msra.mxu1 %v550_v19  ;;  %v826_v18 = vld [vmem:[#allocation9 + $0x8b0] sm:$0xff]  ;;  %v821_v19 = vld [vmem:[#allocation9 + $0x888] sm:$0xff] }
  0xc2   :  { %670 = vmatprep.subr.mxu0 %v545_v20  ;;  %747 = vmatprep.subr.mxu1 %v547_v23  ;;  %v823_v20 = vld [vmem:[#allocation9 + $0x898] sm:$0xff]  ;;  %v817_v23 = vld [vmem:[#allocation9 + $0x868] sm:$0xff] }
  0xc3   :  { %671 = vmatpush2.msra.mxu0 %v544_v26  ;;  %672 = vmatprep.mubr.f32.mxu0 %v468_v27  ;;  %v818_v26 = vld [vmem:[#allocation9 + $0x870] sm:$0xff] }
  0xc4   :  { %748 = vmatpush2.msra.mxu1 %v546_v28  ;;  %749 = vmatprep.mubr.f32.mxu1 %v468_v27  ;;  %v813_v27 = vld [vmem:[#allocation9 + $0x848] sm:$0xff]  ;;  %v815_v28 = vld [vmem:[#allocation9 + $0x858] sm:$0xff] }
  0xc5   :  { %673 = vmatmul.mubr.f32.vlgmr.msra.gmra.mxu0 %v465_v31  ;;  %750 = vmatmul.mubr.f32.vlgmr.msra.gmra.mxu1 %v465_v31  ;;  %v809_v31 = vld [vmem:[#allocation9 + $0x828] sm:$0xff] }
  0xc6   :  { %932 = vmatprep.subr.mxu0 %v865_v34  ;;  %1009 = vmatprep.subr.mxu1 %v867_v35  ;;  %v810_v34 = vld [vmem:[#allocation9 + $0x830] sm:$0xff]  ;;  %v805_v35 = vld [vmem:[#allocation9 + $0x808] sm:$0xff] }
  0xc7   :  { %933 = vmatpush1.msra.mxu0 %v864_v36  ;;  %1010 = vmatpush1.msra.mxu1 %v866_v37  ;;  %v807_v36 = vld [vmem:[#allocation9 + $0x818] sm:$0xff]  ;;  %v804_v37 = vld [vmem:[#allocation9 + $0x800] sm:$0xff] }
  0xc8   :  { %934 = vmatprep.subr.mxu0 %v861_v40  ;;  %1011 = vmatprep.subr.mxu1 %v863_v41  ;;  %v931_v40 = vld [vmem:[#allocation9 + $0xbf8] sm:$0xff]  ;;  %v928_v41 = vld [vmem:[#allocation9 + $0xbe0] sm:$0xff] }
  0xc9   :  { %678 = vmatprep.mubr.f32.mxu0 %v474_v42  ;;  %755 = vmatprep.mubr.f32.mxu1 %v474_v42  ;;  %v930_v42 = vld [vmem:[#allocation9 + $0xbf0] sm:$0xff] }
  0xca   :  { %935 = vmatpush1.msra.mxu0 %v860_v43  ;;  %1012 = vmatpush1.msra.mxu1 %v862_v44  ;;  %v925_v43 = vld [vmem:[#allocation9 + $0xbc8] sm:$0xff]  ;;  %v927_v44 = vld [vmem:[#allocation9 + $0xbd8] sm:$0xff] }
  0xcb   :  { %679 = vmatmul.mubr.f32.gmra.mxu0 %v471_v45  ;;  %756 = vmatmul.mubr.f32.gmra.mxu1 %v471_v45  ;;  %v924_v45 = vld [vmem:[#allocation9 + $0xbc0] sm:$0xff] }
  0xcc   :  { %936 = vmatprep.subr.mxu0 %v857_v46  ;;  %1013 = vmatprep.subr.mxu1 %v859_v47  ;;  %v926_v46 = vld [vmem:[#allocation9 + $0xbd0] sm:$0xff]  ;;  %v921_v47 = vld [vmem:[#allocation9 + $0xba8] sm:$0xff] }
  0xcd   :  { %937 = vmatpush1.msra.mxu0 %v856_v48  ;;  %1014 = vmatpush1.msra.mxu1 %v858_v49  ;;  %v923_v48 = vld [vmem:[#allocation9 + $0xbb8] sm:$0xff]  ;;  %v920_v49 = vld [vmem:[#allocation9 + $0xba0] sm:$0xff] }
  0xce   :  { %938 = vmatprep.subr.mxu0 %v853_v50  ;;  %1015 = vmatprep.subr.mxu1 %v855_v51  ;;  %v922_v50 = vld [vmem:[#allocation9 + $0xbb0] sm:$0xff]  ;;  %v917_v51 = vld [vmem:[#allocation9 + $0xb88] sm:$0xff] }
  0xcf   :  { %939 = vmatpush1.msra.mxu0 %v852_v52  ;;  %1016 = vmatpush1.msra.mxu1 %v854_v53  ;;  %v919_v52 = vld [vmem:[#allocation9 + $0xb98] sm:$0xff]  ;;  %v916_v53 = vld [vmem:[#allocation9 + $0xb80] sm:$0xff] }
  0xd0   :  { %940 = vmatprep.subr.mxu0 %v849_v54  ;;  %1017 = vmatprep.subr.mxu1 %v851_v55  ;;  %v918_v54 = vld [vmem:[#allocation9 + $0xb90] sm:$0xff]  ;;  %v913_v55 = vld [vmem:[#allocation9 + $0xb68] sm:$0xff] }
  0xd1   :  { %941 = vmatpush1.msra.mxu0 %v848_v56  ;;  %1018 = vmatpush1.msra.mxu1 %v850_v57  ;;  %v915_v56 = vld [vmem:[#allocation9 + $0xb78] sm:$0xff]  ;;  %v912_v57 = vld [vmem:[#allocation9 + $0xb60] sm:$0xff] }
  0xd2   :  { %942 = vmatprep.subr.mxu0 %v845_v58  ;;  %1019 = vmatprep.subr.mxu1 %v847_v59  ;;  %v914_v58 = vld [vmem:[#allocation9 + $0xb70] sm:$0xff]  ;;  %v909_v59 = vld [vmem:[#allocation9 + $0xb48] sm:$0xff] }
  0xd3   :  { %943 = vmatpush1.msra.mxu0 %v844_v60  ;;  %1020 = vmatpush1.msra.mxu1 %v846_v61  ;;  %v911_v60 = vld [vmem:[#allocation9 + $0xb58] sm:$0xff]  ;;  %v908_v61 = vld [vmem:[#allocation9 + $0xb40] sm:$0xff] }
  0xd4   :  { %944 = vmatprep.subr.mxu0 %v841_v62  ;;  %1021 = vmatprep.subr.mxu1 %v843_v63  ;;  %v910_v62 = vld [vmem:[#allocation9 + $0xb50] sm:$0xff]  ;;  %v905_v63 = vld [vmem:[#allocation9 + $0xb28] sm:$0xff] }
  0xd5   :  { %945 = vmatpush1.msra.mxu0 %v840_v1  ;;  %1022 = vmatpush1.msra.mxu1 %v842_v2  ;;  %v907_v1 = vld [vmem:[#allocation9 + $0xb38] sm:$0xff]  ;;  %v904_v2 = vld [vmem:[#allocation9 + $0xb20] sm:$0xff] }
  0xd6   :  { %946 = vmatprep.subr.mxu0 %v837_v3  ;;  %1023 = vmatprep.subr.mxu1 %v839_v4  ;;  %v906_v3 = vld [vmem:[#allocation9 + $0xb30] sm:$0xff]  ;;  %v901_v4 = vld [vmem:[#allocation9 + $0xb08] sm:$0xff] }
  0xd7   :  { %947 = vmatpush1.msra.mxu0 %v836_v5  ;;  %1024 = vmatpush1.msra.mxu1 %v838_v6  ;;  %v903_v5 = vld [vmem:[#allocation9 + $0xb18] sm:$0xff]  ;;  %v900_v6 = vld [vmem:[#allocation9 + $0xb00] sm:$0xff] }
  0xd8   :  { %948 = vmatprep.subr.mxu0 %v833_v7  ;;  %1025 = vmatprep.subr.mxu1 %v835_v8  ;;  %v902_v7 = vld [vmem:[#allocation9 + $0xb10] sm:$0xff]  ;;  %v897_v8 = vld [vmem:[#allocation9 + $0xae8] sm:$0xff] }
  0xd9   :  { %949 = vmatpush1.msra.mxu0 %v832_v9  ;;  %1026 = vmatpush1.msra.mxu1 %v834_v10  ;;  %v899_v9 = vld [vmem:[#allocation9 + $0xaf8] sm:$0xff]  ;;  %v896_v10 = vld [vmem:[#allocation9 + $0xae0] sm:$0xff] }
  0xda   :  { %950 = vmatprep.subr.mxu0 %v829_v11  ;;  %1027 = vmatprep.subr.mxu1 %v831_v12  ;;  %v898_v11 = vld [vmem:[#allocation9 + $0xaf0] sm:$0xff]  ;;  %v893_v12 = vld [vmem:[#allocation9 + $0xac8] sm:$0xff] }
  0xdb   :  { %951 = vmatpush1.msra.mxu0 %v828_v13  ;;  %1028 = vmatpush1.msra.mxu1 %v830_v14  ;;  %v895_v13 = vld [vmem:[#allocation9 + $0xad8] sm:$0xff]  ;;  %v892_v14 = vld [vmem:[#allocation9 + $0xac0] sm:$0xff] }
  0xdc   :  { %952 = vmatprep.subr.mxu0 %v825_v15  ;;  %1029 = vmatprep.subr.mxu1 %v827_v16  ;;  %v894_v15 = vld [vmem:[#allocation9 + $0xad0] sm:$0xff]  ;;  %v889_v16 = vld [vmem:[#allocation9 + $0xaa8] sm:$0xff] }
  0xdd   :  { %953 = vmatpush1.msra.mxu0 %v824_v17  ;;  %1030 = vmatpush1.msra.mxu1 %v826_v18  ;;  %v891_v17 = vld [vmem:[#allocation9 + $0xab8] sm:$0xff]  ;;  %v888_v18 = vld [vmem:[#allocation9 + $0xaa0] sm:$0xff] }
  0xde   :  { %954 = vmatprep.subr.mxu0 %v821_v19  ;;  %1031 = vmatprep.subr.mxu1 %v823_v20  ;;  %v890_v19 = vld [vmem:[#allocation9 + $0xab0] sm:$0xff]  ;;  %v885_v20 = vld [vmem:[#allocation9 + $0xa88] sm:$0xff] }
  0xdf   :  { %955 = vmatpush1.msra.mxu0 %v820_v21  ;;  %1032 = vmatpush1.msra.mxu1 %v822_v22  ;;  %v887_v21 = vld [vmem:[#allocation9 + $0xa98] sm:$0xff]  ;;  %v884_v22 = vld [vmem:[#allocation9 + $0xa80] sm:$0xff] }
  0xe0   :  { %956 = vmatprep.subr.mxu0 %v817_v23  ;;  %1033 = vmatprep.subr.mxu1 %v819_v24  ;;  %v886_v23 = vld [vmem:[#allocation9 + $0xa90] sm:$0xff]  ;;  %v881_v24 = vld [vmem:[#allocation9 + $0xa68] sm:$0xff] }
  0xe1   :  { %957 = vmatpush1.msra.mxu0 %v816_v25  ;;  %1034 = vmatpush1.msra.mxu1 %v818_v26  ;;  %v883_v25 = vld [vmem:[#allocation9 + $0xa78] sm:$0xff]  ;;  %v880_v26 = vld [vmem:[#allocation9 + $0xa60] sm:$0xff] }
  0xe2   :  { %958 = vmatprep.subr.mxu0 %v813_v27  ;;  %1035 = vmatprep.subr.mxu1 %v815_v28  ;;  %v882_v27 = vld [vmem:[#allocation9 + $0xa70] sm:$0xff]  ;;  %v771_v28 = vld [vmem:[#allocation2 + $0x8] sm:$0xfc] }
  0xe3   :  { %959 = vmatpush1.msra.mxu0 %v812_v29  ;;  %1036 = vmatpush1.msra.mxu1 %v814_v30  ;;  %v773_v29 = vld [vmem:[#allocation2 + $0x18] sm:$0x3]  ;;  %v877_v30 = vld [vmem:[#allocation9 + $0xa48] sm:$0xff] }
  0xe4   :  { %960 = vmatprep.subr.mxu0 %v809_v31  ;;  %1037 = vmatprep.subr.mxu1 %v811_v32  ;;  %v879_v31 = vld [vmem:[#allocation9 + $0xa58] sm:$0xff]  ;;  %v876_v32 = vld [vmem:[#allocation9 + $0xa40] sm:$0xff] }
  0xe5   :  { %961 = vmatpush1.msra.mxu0 %v808_v33  ;;  %1038 = vmatpush1.msra.mxu1 %v810_v34  ;;  %v878_v33 = vld [vmem:[#allocation9 + $0xa50] sm:$0xff]  ;;  %v770_v34 = vld [vmem:[#allocation2] sm:$0xfc] }
  0xe6   :  { %962 = vmatprep.subr.mxu0 %v805_v35  ;;  %1039 = vmatprep.subr.mxu1 %v807_v36  ;;  %v772_v35 = vld [vmem:[#allocation2 + $0x10] sm:$0x3]  ;;  %v790_v36 = vrot.slane %v771_v28, 2 }
  0xe7   :  { %963 = vmatpush1.msra.mxu0 %v804_v37  ;;  %1040 = vmatpush1.msra.mxu1 %v806_v38  ;;  %v791_v37 = vrot.slane %v773_v29, 2  ;;  %v775_v38 = vld [vmem:[#allocation2 + $0x28] sm:$0xfc] }
  0xe8   :  { %964 = vmatprep.subr.mxu0 %v929_v39  ;;  %1041 = vmatprep.subr.mxu1 %v931_v40  ;;  %v777_v39 = vld [vmem:[#allocation2 + $0x38] sm:$0x3]  ;;  %v873_v40 = vld [vmem:[#allocation9 + $0xa28] sm:$0xff] }
  0xe9   :  { %965 = vmatpush2.msra.mxu0 %v928_v41  ;;  %1042 = vmatpush2.msra.mxu1 %v930_v42  ;;  %v875_v41 = vld [vmem:[#allocation9 + $0xa38] sm:$0xff]  ;;  %v872_v42 = vld [vmem:[#allocation9 + $0xa20] sm:$0xff] }
  0xea   :  { %966 = vmatprep.subr.mxu0 %v925_v43  ;;  %1043 = vmatprep.subr.mxu1 %v927_v44  ;;  %v874_v43 = vld [vmem:[#allocation9 + $0xa30] sm:$0xff]  ;;  %v869_v44 = vld [vmem:[#allocation9 + $0xa08] sm:$0xff] }
  0xeb   :  { %967 = vmatpush2.msra.mxu0 %v924_v45  ;;  %1044 = vmatpush2.msra.mxu1 %v926_v46  ;;  %v871_v45 = vld [vmem:[#allocation9 + $0xa18] sm:$0xff]  ;;  %v787_v46 = vrot.slane %v770_v34, 2 }
  0xec   :  { %968 = vmatprep.subr.mxu0 %v921_v47  ;;  %1045 = vmatprep.subr.mxu1 %v923_v48  ;;  %v788_v47 = vrot.slane %v772_v35, 2  ;;  %v796_v48 = vrot.slane %v775_v38, 2 }
  0xed   :  { %969 = vmatpush2.msra.mxu0 %v920_v49  ;;  %1046 = vmatpush2.msra.mxu1 %v922_v50  ;;  %v797_v49 = vrot.slane %v777_v39, 2  ;;  %v774_v50 = vld [vmem:[#allocation2 + $0x20] sm:$0xfc] }
  0xee   :  { %970 = vmatprep.subr.mxu0 %v917_v51  ;;  %1047 = vmatprep.subr.mxu1 %v919_v52  ;;  %v776_v51 = vld [vmem:[#allocation2 + $0x30] sm:$0x3]  ;;  %v868_v52 = vld [vmem:[#allocation9 + $0xa00] sm:$0xff] }
  0xef   :  { %971 = vmatpush2.msra.mxu0 %v916_v53  ;;  %1048 = vmatpush2.msra.mxu1 %v918_v54  ;;  %v792_v53 = vsel %vm786_vm2, %v790_v36, %v791_v37  ;;  %v870_v54 = vld [vmem:[#allocation9 + $0xa10] sm:$0xff] }
  0xf0   :  { %972 = vmatprep.subr.mxu0 %v913_v55  ;;  %1049 = vmatprep.subr.mxu1 %v915_v56  ;;  %v789_v55 = vsel %vm786_vm2, %v787_v46, %v788_v47  ;;  %v793_v56 = vrot.slane %v774_v50, 2 }
  0xf1   :  { %973 = vmatpush2.msra.mxu0 %v912_v57  ;;  %1050 = vmatpush2.msra.mxu1 %v914_v58  ;;  %v794_v57 = vrot.slane %v776_v51, 2  ;;  %v798_v58 = vsel %vm786_vm2, %v796_v48, %v797_v49 }
  0xf2   :  { %974 = vmatprep.subr.mxu0 %v909_v59  ;;  %1051 = vmatprep.subr.mxu1 %v911_v60 }
  0xf3   :  { %975 = vmatpush2.msra.mxu0 %v908_v61  ;;  %1052 = vmatpush2.msra.mxu1 %v910_v62  ;;  %v795_v59 = vsel %vm786_vm2, %v793_v56, %v794_v57 }
  0xf4   :  { %976 = vmatprep.subr.mxu0 %v905_v63  ;;  %1053 = vmatprep.subr.mxu1 %v907_v1 }
  0xf5   :  { %977 = vmatpush2.msra.mxu0 %v904_v2  ;;  %1054 = vmatpush2.msra.mxu1 %v906_v3 }
  0xf6   :  { %978 = vmatprep.subr.mxu0 %v901_v4  ;;  %1055 = vmatprep.subr.mxu1 %v903_v5  ;;  %v1542_v5 = vshrl.u32 %v95_v0, 7 }
  0xf7   :  { %979 = vmatpush2.msra.mxu0 %v900_v6  ;;  %1056 = vmatpush2.msra.mxu1 %v902_v7 }
  0xf8   :  { %980 = vmatprep.subr.mxu0 %v897_v8  ;;  %1057 = vmatprep.subr.mxu1 %v899_v9  ;;  %v134_v8 = vsub.s32 0, %v1542_v5  ;;  %v142_v9 = vsub.s32 2, %v1542_v5 }
  0xf9   :  { %981 = vmatpush2.msra.mxu0 %v896_v10  ;;  %1058 = vmatpush2.msra.mxu1 %v898_v11  ;;  %v130_v10 = vld [vmem:[#allocation11] sm:$0xf] }
  0xfa   :  { %982 = vmatprep.subr.mxu0 %v893_v12  ;;  %1059 = vmatprep.subr.mxu1 %v895_v13  ;;  %v138_v13 = vsub.s32 1, %v1542_v5 }
  0xfb   :  { %983 = vmatpush2.msra.mxu0 %v892_v14  ;;  %1060 = vmatpush2.msra.mxu1 %v894_v15  ;;  %v146_v14 = vsub.s32 3, %v1542_v5  ;;  %v135_v15 = vrot.slane %v130_v10, %v134_v8 }
  0xfc   :  { %984 = vmatprep.subr.mxu0 %v889_v16  ;;  %1061 = vmatprep.subr.mxu1 %v891_v17  ;;  %v143_v16 = vrot.slane %v130_v10, %v142_v9 }
  0xfd   :  { %985 = vmatpush2.msra.mxu0 %v888_v18  ;;  %1062 = vmatpush2.msra.mxu1 %v890_v19  ;;  %v139_v19 = vrot.slane %v130_v10, %v138_v13 }
  0xfe   :  { %986 = vmatprep.subr.mxu0 %v885_v20  ;;  %1063 = vmatprep.subr.mxu1 %v887_v21  ;;  %v147_v20 = vrot.slane %v130_v10, %v146_v14 }
  0xff   :  { %987 = vmatpush2.msra.mxu0 %v884_v22  ;;  %1064 = vmatpush2.msra.mxu1 %v886_v23 }
 0x100   :  { %988 = vmatprep.subr.mxu0 %v881_v24  ;;  %1065 = vmatprep.subr.mxu1 %v883_v25 }
 0x101   :  { %989 = vmatpush2.msra.mxu0 %v880_v26  ;;  %1066 = vmatpush2.msra.mxu1 %v882_v27 }
 0x102   :  { %990 = vmatprep.subr.mxu0 %v877_v30  ;;  %1067 = vmatprep.subr.mxu1 %v879_v31 }
 0x103   :  { %991 = vmatpush2.msra.mxu0 %v876_v32  ;;  %1068 = vmatpush2.msra.mxu1 %v878_v33  ;;  %v1470_v33 = vmov 1966171168  }
 0x104   :  { %992 = vmatprep.subr.mxu0 %v873_v40  ;;  %1069 = vmatprep.subr.mxu1 %v875_v41  ;;  %v1548_v34 = vunpack.c.l.s4 %v1470_v33 }
 0x105   :  { %993 = vmatpush2.msra.mxu0 %v872_v42  ;;  %1070 = vmatpush2.msra.mxu1 %v874_v43 }
 0x106   :  { %994 = vmatprep.subr.mxu0 %v869_v44  ;;  %1071 = vmatprep.subr.mxu1 %v871_v45  ;;  %v1138_v51 = vunpack.c.0.s8 %v1548_v34 }
 0x107   :  { %995 = vmatpush2.msra.mxu0 %v868_v52  ;;  %996 = vmatprep.mubr.f32.mxu0 %v792_v53 }
 0x108   :  { %1072 = vmatpush2.msra.mxu1 %v870_v54  ;;  %1073 = vmatprep.mubr.f32.mxu1 %v792_v53 }
 0x109   :  { %997 = vmatmul.mubr.f32.vlgmr.msra.gmra.mxu0 %v789_v55  ;;  %1074 = vmatmul.mubr.f32.vlgmr.msra.gmra.mxu1 %v789_v55 }
 0x10a   :  { %1002 = vmatprep.mubr.f32.mxu0 %v798_v58  ;;  %1079 = vmatprep.mubr.f32.mxu1 %v798_v58 }
 0x10d   :  { %1003 = vmatmul.mubr.f32.gmra.mxu0 %v795_v59  ;;  %1080 = vmatmul.mubr.f32.gmra.mxu1 %v795_v59 }
 0x141   :  { %v350_v60 = vpop.f32.mrf.mxu0  ;;  %v427_v61 = vpop.f32.mrf.mxu1 }
 0x142   :  { %v438_v21 = vadd.f32 %v350_v60, %v135_v15  ;;  %v440_v22 = vadd.f32 %v427_v61, %v143_v16 }
 0x143   :  { %v352_v62 = vpop.f32.mrf.mxu0  ;;  %v429_v63 = vpop.f32.mrf.mxu1 }
 0x144   :  { %v439_v25 = vadd.f32 %v352_v62, %v139_v19  ;;  %v441_v26 = vadd.f32 %v429_v63, %v147_v20 }
 0x17e   :  { %v356_v1 = vpop.f32.mrf.mxu0  ;;  %v433_v2 = vpop.f32.mrf.mxu1 }
 0x17f   :  { %v442_v29 = vadd.f32 %v356_v1, %v135_v15  ;;  %v444_v30 = vadd.f32 %v433_v2, %v143_v16 }
 0x180   :  { %v358_v3 = vpop.f32.mrf.mxu0  ;;  %v435_v4 = vpop.f32.mrf.mxu1 }
 0x181   :  { %v443_v45 = vadd.f32 %v358_v3, %v139_v19  ;;  %v445_v46 = vadd.f32 %v435_v4, %v147_v20 }
 0x185   :  { %v674_v6 = vpop.f32.mrf.mxu0  ;;  %v751_v7 = vpop.f32.mrf.mxu1 }
 0x186   :  { %v762_v27 = vadd.f32 %v674_v6, %v438_v21  ;;  %v764_v28 = vadd.f32 %v751_v7, %v440_v22 }
 0x187   :  { %v676_v11 = vpop.f32.mrf.mxu0  ;;  %v753_v12 = vpop.f32.mrf.mxu1 }
 0x188   :  { %v763_v35 = vadd.f32 %v676_v11, %v439_v25  ;;  %v765_v36 = vadd.f32 %v753_v12, %v441_v26 }
 0x18b   :  { %v680_v17 = vpop.f32.mrf.mxu0  ;;  %v757_v18 = vpop.f32.mrf.mxu1 }
 0x18c   :  { %v766_v41 = vadd.f32 %v680_v17, %v442_v29  ;;  %v768_v42 = vadd.f32 %v757_v18, %v444_v30 }
 0x18d   :  { %v682_v23 = vpop.f32.mrf.mxu0  ;;  %v759_v24 = vpop.f32.mrf.mxu1 }
 0x18e   :  { %v767_v52 = vadd.f32 %v682_v23, %v443_v45  ;;  %v769_v53 = vadd.f32 %v759_v24, %v445_v46 }
 0x1c9   :  { %v998_v31 = vpop.f32.mrf.mxu0  ;;  %v1075_v32 = vpop.f32.mrf.mxu1 }
 0x1ca   :  { %v1086_v37 = vadd.f32 %v998_v31, %v762_v27  ;;  %v1088_v38 = vadd.f32 %v1075_v32, %v764_v28 }
 0x1cb   :  { %v1000_v39 = vpop.f32.mrf.mxu0  ;;  %v1077_v40 = vpop.f32.mrf.mxu1 }
 0x1cc   :  { %1094 = vst [vmem:[#allocation12] sm:$0xff] %v1086_v37  ;;  %1096 = vst [vmem:[#allocation12 + $0x10] sm:$0xff] %v1088_v38  ;;  %v1087_v43 = vadd.f32 %v1000_v39, %v763_v35  ;;  %v1089_v44 = vadd.f32 %v1077_v40, %v765_v36  ;;  %v1164_v54 = vmul.f32 %v1086_v37, %v1086_v37 }
 0x1cd   :  { %v1004_v47 = vpop.f32.mrf.mxu0  ;;  %v1081_v48 = vpop.f32.mrf.mxu1  ;;  %v1166_v55 = vmul.f32 %v1088_v38, %v1088_v38 }
 0x1ce   :  { %1095 = vst [vmem:[#allocation12 + $0x8] sm:$0xff] %v1087_v43  ;;  %1097 = vst [vmem:[#allocation12 + $0x18] sm:$0xff] %v1089_v44  ;;  %v1090_v49 = vadd.f32 %v1004_v47, %v766_v41  ;;  %v1092_v50 = vadd.f32 %v1081_v48, %v768_v42  ;;  %v1165_v62 = vmul.f32 %v1087_v43, %v1087_v43 }
 0x1cf   :  { %v1006_v56 = vpop.f32.mrf.mxu0  ;;  %v1083_v57 = vpop.f32.mrf.mxu1  ;;  %v1167_v63 = vmul.f32 %v1089_v44, %v1089_v44 }
 0x1d0   :  { %1098 = vst [vmem:[#allocation12 + $0x20] sm:$0xff] %v1090_v49  ;;  %v1102_v58 = vadd.f32 %v1090_v49, %v1086_v37  ;;  %v1168_v59 = vmul.f32 %v1090_v49, %v1090_v49  ;;  %1100 = vst [vmem:[#allocation12 + $0x30] sm:$0xff] %v1092_v50  ;;  %v1116_v60 = vadd.f32 %v1092_v50, %v1088_v38 }
 0x1d1   :  { %v1170_v61 = vmul.f32 %v1092_v50, %v1092_v50  ;;  %v1091_v1 = vadd.f32 %v1006_v56, %v767_v52  ;;  %v1093_v2 = vadd.f32 %v1083_v57, %v769_v53 }
 0x1d2   :  { %v1103_v3 = vrot.slane %v1102_v58, 4  ;;  %v1172_v4 = vadd.f32 %v1168_v59, %v1164_v54  ;;  %v1117_v6 = vrot.slane %v1116_v60, 4 }
 0x1d3   :  { %v1186_v7 = vadd.f32 %v1170_v61, %v1166_v55  ;;  %1099 = vst [vmem:[#allocation12 + $0x28] sm:$0xff] %v1091_v1  ;;  %v1109_v8 = vadd.f32 %v1091_v1, %v1087_v43  ;;  %v1169_v9 = vmul.f32 %v1091_v1, %v1091_v1  ;;  %1101 = vst [vmem:[#allocation12 + $0x38] sm:$0xff] %v1093_v2 }
 0x1d4   :  { %v1123_v10 = vadd.f32 %v1093_v2, %v1089_v44  ;;  %v1171_v11 = vmul.f32 %v1093_v2, %v1093_v2  ;;  %v1104_v12 = vadd.f32 %v1103_v3, %v1102_v58  ;;  %v1173_v13 = vrot.slane %v1172_v4, 4 }
 0x1d5   :  { %v1118_v14 = vadd.f32 %v1117_v6, %v1116_v60  ;;  %v1187_v15 = vrot.slane %v1186_v7, 4 }
 0x1d6   :  { %1401 = shalt.err (!%p1398_p1)
}
 0x1d7   :  { %1241 = dma.vmem_to_hbm [thread:$0]  %s1236_s4, 1024, %s1580_s5, [#allocation5], %s1462_s9, %s1462_s9, %s1463_s10   ;;  %v1110_v16 = vrot.slane %v1109_v8, 4  ;;  %v1179_v17 = vadd.f32 %v1169_v9, %v1165_v62  ;;  %v1124_v18 = vrot.slane %v1123_v10, 4  ;;  %v1193_v19 = vadd.f32 %v1171_v11, %v1167_v63 }
 0x1d8   :  { %v1105_v20 = vrot.slane %v1104_v12, 2  ;;  %v1174_v21 = vadd.f32 %v1173_v13, %v1172_v4  ;;  %v1119_v22 = vrot.slane %v1118_v14, 2  ;;  %v1188_v23 = vadd.f32 %v1187_v15, %v1186_v7  ;;  %s1472_s5 = smov [#allocation13]   ;;  %s1473_s8 = smov [#allocation15]  }
 0x1d9   :  { %v1111_v24 = vadd.f32 %v1110_v16, %v1109_v8  ;;  %v1180_v25 = vrot.slane %v1179_v17, 4  ;;  %v1125_v26 = vadd.f32 %v1124_v18, %v1123_v10  ;;  %v1194_v27 = vrot.slane %v1193_v19, 4  ;;  %s1248_s30 = sshll.u32 %s1472_s5, 4  ;;  %s1258_s9 = sshll.u32 %s1473_s8, 4  ;;  %s1249_s30 = int_to_ptr.vmem [resolvable:$true] %s1248_s30  ;;  %s1259_s9 = int_to_ptr.vmem [resolvable:$true] %s1258_s9 }
 0x1da   :  { %v1106_v28 = vadd.f32 %v1105_v20, %v1104_v12  ;;  %v1175_v29 = vrot.slane %v1174_v21, 2  ;;  %v1120_v30 = vadd.f32 %v1119_v22, %v1118_v14  ;;  %v1189_v31 = vrot.slane %v1188_v23, 2  ;;  %s1410_s10 = scalar_lea.vmem %s1249_s30, 64  ;;  %p1415_p3 = scmp.lt.s32.totalorder %s1249_s30, %s1249_s30 }
 0x1db   :  { %v1112_v32 = vrot.slane %v1111_v24, 2  ;;  %v1181_v33 = vadd.f32 %v1180_v25, %v1179_v17  ;;  %v1126_v35 = vrot.slane %v1125_v26, 2  ;;  %v1195_v36 = vadd.f32 %v1194_v27, %v1193_v19  ;;  %p1411_p2 = scmp.ne.s32.totalorder %s1249_s30, %s1410_s10  ;;  %p1416_p4 = scmp.lt.s32.totalorder %s1410_s10, %s1410_s10 }
 0x1dc   :  { %v1107_v37 = vrot.slane %v1106_v28, 1  ;;  %v1176_v38 = vadd.f32 %v1175_v29, %v1174_v21  ;;  %v1121_v39 = vrot.slane %v1120_v30, 1  ;;  %v1190_v40 = vadd.f32 %v1189_v31, %v1188_v23 }
 0x1dd   :  { %v1113_v41 = vadd.f32 %v1112_v32, %v1111_v24  ;;  %v1182_v42 = vrot.slane %v1181_v33, 2  ;;  %v1127_v43 = vadd.f32 %v1126_v35, %v1125_v26  ;;  %v1196_v44 = vrot.slane %v1195_v36, 2  ;;  %p1417_p5 = por %p1416_p4, %p1415_p3 }
 0x1de   :  { %v1177_v45 = vrot.slane %v1176_v38, 1  ;;  %v1191_v46 = vrot.slane %v1190_v40, 1  ;;  %v1108_v52 = vadd.f32 %v1107_v37, %v1106_v28  ;;  %v1122_v53 = vadd.f32 %v1121_v39, %v1120_v30 }
 0x1df   :  { %v1114_v47 = vrot.slane %v1113_v41, 1  ;;  %v1183_v48 = vadd.f32 %v1182_v42, %v1181_v33  ;;  %v1128_v49 = vrot.slane %v1127_v43, 1  ;;  %v1197_v50 = vadd.f32 %v1196_v44, %v1195_v36  ;;  %p1418_p6 = pnand %p1417_p5, %p1411_p2 }
 0x1e0   :  { %v1141_v54 = vsub.s32 %v1138_v51, %v1542_v5  ;;  %v1178_v59 = vadd.f32 %v1177_v45, %v1176_v38  ;;  %v1192_v60 = vadd.f32 %v1191_v46, %v1190_v40  ;;  %vm1561_vm3 = vcmp.lt.s32.totalorder %v95_v0, 512 }
 0x1e1   :  { %v1115_v55 = vadd.f32 %v1114_v47, %v1113_v41  ;;  %v1184_v56 = vrot.slane %v1183_v48, 1  ;;  %v1129_v57 = vadd.f32 %v1128_v49, %v1127_v43  ;;  %v1198_v58 = vrot.slane %v1197_v50, 1 }
 0x1e3   :  { %v1185_v61 = vadd.f32 %v1184_v56, %v1183_v48  ;;  %v1199_v62 = vadd.f32 %v1198_v58, %v1197_v50  ;;  %v1134_v63 = vcombine.low %v1108_v52, %v1115_v55  ;;  %v1135_v1 = vcombine.low %v1122_v53, %v1129_v57 }
 0x1e5   :  { %v1142_v2 = vrot.slane %v1134_v63, %v1141_v54  ;;  %v1149_v3 = vrot.slane %v1135_v1, %v1141_v54  ;;  %v1204_v4 = vcombine.low %v1178_v59, %v1185_v61  ;;  %v1205_v6 = vcombine.low %v1192_v60, %v1199_v62 }
 0x1e7   :  { %v1150_v7 = vcombine.low %v1142_v2, %v1149_v3  ;;  %v1212_v8 = vrot.slane %v1204_v4, %v1141_v54  ;;  %v1219_v34 = vrot.slane %v1205_v6, %v1141_v54 }
 0x1e9   :  { %v1157_v51 = vrot.slane %v1150_v7, %v1141_v54  ;;  %v1220_v9 = vcombine.low %v1212_v8, %v1219_v34 }
 0x1eb   :  { %1163 = vst.msk [vmem:[#allocation13] sm:$0xf] %vm1561_vm3, %v1157_v51  ;;  %v1227_v10 = vrot.slane %v1220_v9, %v1141_v54 }
 0x1ec   :  { %1421 = shalt.err (!%p1418_p6)
}
 0x1ed   :  { %1251 = dma.vmem_to_hbm [thread:$0]  %s1249_s30, 64, %s1581_s6, [#allocation14]   ;;  %1229 = vst.msk [vmem:[#allocation15] sm:$0xf] %vm1561_vm3, %v1227_v10 }
 0x1ee   :  { %s1430_s13 = scalar_lea.vmem %s1259_s9, 64  ;;  %p1435_p8 = scmp.lt.s32.totalorder %s1259_s9, %s1259_s9 }
 0x1ef   :  { %p1431_p7 = scmp.ne.s32.totalorder %s1259_s9, %s1430_s13  ;;  %p1436_p9 = scmp.lt.s32.totalorder %s1430_s13, %s1430_s13 }
 0x1f1   :  { %p1437_p10 = por %p1436_p9, %p1435_p8 }
 0x1f3   :  { %p1438_p11 = pnand %p1437_p10, %p1431_p7 }
 0x1f5   :  { %1441 = shalt.err (!%p1438_p11)
}
 0x1f6   :  { %1261 = dma.vmem_to_hbm [thread:$0]  %s1259_s9, 64, %s1582_s7, [#allocation14]  }
 0x1f7   :  { %1456 = dma.done.wait [#allocation5], 1024  }
 0x1f8   :  { %1457 = vsyncadd [#allocation5], 4294966272 }
 0x1f9   :  { %1458 = dma.done.wait [#allocation14], 128  }
 0x1fa   :  { %1459 = vsyncadd [#allocation14], 4294967168 }
 0x1fb   :  { %1271 = vsyncpa [#allocation4], 1 }
 0x1fc   :  { %1272 = vsyncpa [#allocation7], 1 }
 0x1fd   :  { %1273 = vsyncpa [#allocation10], 1 }
 0x1fe   :  { %1274 = vsyncpa [#allocation5], 1 }
 0x1ff   :  { %1275 = vsyncpa [#allocation14], 1 }

// kernel: tpu_custom_call.1
= control target key start
LH: loop header
LB: loop body
LE: loop exit
PB: predicated region body
PF: predicated region fallthrough
CT: control target
= control target key end

     0   :  { %13 = vsyncpa [#allocation4], 0  ;;  %s1575_s0 = inlined_call_operand.hbm [shape: f32[2,8,256], index: 0, kind: input, shape index: {}]   ;;  %s1576_s1 = inlined_call_operand.hbm [shape: f32[1,256], index: 1, kind: input, shape index: {}]   ;;  %s1577_s2 = inlined_call_operand.hbm [shape: f32[1,256], index: 2, kind: input, shape index: {}]   ;;  %s1578_s3 = inlined_call_operand.hbm [shape: f32[3,256,512], index: 3, kind: input, shape index: {}]   ;;  %s1579_s4 = inlined_call_operand.hbm [shape: f32[1,512], index: 4, kind: input, shape index: {}]   ;;  %s1580_s5 = inlined_call_operand.hbm [shape: f32[16,512], index: 5, kind: output, shape index: {0}]   ;;  %s1581_s6 = inlined_call_operand.hbm [shape: f32[1,512], index: 6, kind: output, shape index: {1}]   ;;  %s1582_s7 = inlined_call_operand.hbm [shape: f32[1,512], index: 7, kind: output, shape index: {2}]  }
   0x1   :  { %14 = vsyncpa [#allocation7], 0 }
   0x2   :  { %15 = vsyncpa [#allocation10], 0 }
   0x3   :  { %16 = vsyncpa [#allocation5], 0 }
   0x4   :  { %17 = vsyncpa [#allocation14], 0  ;;  %s1460_s24 = smov [#allocation6]   ;;  %s1461_s26 = smov [#allocation9]  }
   0x5   :  { %s36_s25 = sshll.u32 %s1460_s24, 4  ;;  %s55_s27 = sshll.u32 %s1461_s26, 4  ;;  %s37_s25 = int_to_ptr.vmem [resolvable:$true] %s36_s25  ;;  %s56_s27 = int_to_ptr.vmem [resolvable:$true] %s55_s27 }
   0x6   :  { %s1298_s28 = scalar_lea.vmem %s37_s25, 32  ;;  %p1303_p1 = scmp.lt.s32.totalorder %s37_s25, %s37_s25 }
   0x7   :  { %p1299_p0 = scmp.ne.s32.totalorder %s37_s25, %s1298_s28  ;;  %p1304_p2 = scmp.lt.s32.totalorder %s1298_s28, %s1298_s28 }
   0x9   :  { %p1305_p3 = por %p1304_p2, %p1303_p1 }
   0xb   :  { %p1306_p4 = pnand %p1305_p3, %p1299_p0 }
   0xd   :  { %1309 = shalt.err (!%p1306_p4)
}
   0xe   :  { %39 = dma.hbm_to_vmem [thread:$0]  %s1576_s1, 32, %s37_s25, [#allocation7]  }
   0xf   :  { %s1318_s8 = scalar_lea.vmem %s56_s27, 49152  ;;  %p1323_p6 = scmp.lt.s32.totalorder %s56_s27, %s56_s27 }
  0x10   :  { %p1319_p5 = scmp.ne.s32.totalorder %s56_s27, %s1318_s8  ;;  %p1324_p7 = scmp.lt.s32.totalorder %s1318_s8, %s1318_s8 }
  0x12   :  { %p1325_p8 = por %p1324_p7, %p1323_p6 }
  0x14   :  { %p1326_p9 = pnand %p1325_p8, %p1319_p5 }
  0x16   :  { %1329 = shalt.err (!%p1326_p9)
}
  0x17   :  { %s1462_s9 = smov 512   ;;  %s1463_s10 = smov 32  }
  0x18   :  { %61 = dma.hbm_to_vmem [thread:$0]  %s1578_s3, 49152, %s56_s27, [#allocation10], %s1462_s9, %s1462_s9, %s1463_s10  }
  0x19   :  { %s1464_s13 = smov [#allocation3]  }
  0x1a   :  { %s23_s14 = sshll.u32 %s1464_s13, 4  ;;  %s24_s14 = int_to_ptr.vmem [resolvable:$true] %s23_s14 }
  0x1b   :  { %s1338_s1 = scalar_lea.vmem %s24_s14, 512  ;;  %p1343_p11 = scmp.lt.s32.totalorder %s24_s14, %s24_s14 }
  0x1c   :  { %p1339_p10 = scmp.ne.s32.totalorder %s24_s14, %s1338_s1  ;;  %p1344_p12 = scmp.lt.s32.totalorder %s1338_s1, %s1338_s1 }
  0x1e   :  { %p1345_p13 = por %p1344_p12, %p1343_p11 }
  0x20   :  { %p1346_p0 = pnand %p1345_p13, %p1339_p10 }
  0x22   :  { %1349 = shalt.err (!%p1346_p0)
}
  0x23   :  { %s1465_s15 = smov 256   ;;  %s1466_s16 = smov 16  }
  0x24   :  { %29 = dma.hbm_to_vmem [thread:$0]  %s1575_s0, 512, %s24_s14, [#allocation4], %s1465_s15, %s1465_s15, %s1466_s16  }
  0x25   :  { %s1467_s19 = smov [#allocation8]   ;;  %s1468_s3 = smov [#allocation11]  }
  0x26   :  { %s46_s20 = sshll.u32 %s1467_s19, 4  ;;  %s68_s21 = sshll.u32 %s1468_s3, 4  ;;  %s47_s20 = int_to_ptr.vmem [resolvable:$true] %s46_s20  ;;  %s69_s21 = int_to_ptr.vmem [resolvable:$true] %s68_s21 }
  0x27   :  { %s1358_s22 = scalar_lea.vmem %s47_s20, 32  ;;  %p1363_p2 = scmp.lt.s32.totalorder %s47_s20, %s47_s20 }
  0x28   :  { %p1359_p1 = scmp.ne.s32.totalorder %s47_s20, %s1358_s22  ;;  %p1364_p3 = scmp.lt.s32.totalorder %s1358_s22, %s1358_s22 }
  0x2a   :  { %p1365_p4 = por %p1364_p3, %p1363_p2 }
  0x2c   :  { %p1366_p5 = pnand %p1365_p4, %p1359_p1 }
  0x2e   :  { %1369 = shalt.err (!%p1366_p5)
}
  0x2f   :  { %49 = dma.hbm_to_vmem [thread:$0]  %s1577_s2, 32, %s47_s20, [#allocation7]  }
  0x30   :  { %s1378_s25 = scalar_lea.vmem %s69_s21, 64  ;;  %p1383_p7 = scmp.lt.s32.totalorder %s69_s21, %s69_s21 }
  0x31   :  { %p1379_p6 = scmp.ne.s32.totalorder %s69_s21, %s1378_s25  ;;  %p1384_p8 = scmp.lt.s32.totalorder %s1378_s25, %s1378_s25 }
  0x33   :  { %p1385_p9 = por %p1384_p8, %p1383_p7 }
  0x35   :  { %p1386_p10 = pnand %p1385_p9, %p1379_p6 }
  0x37   :  { %1389 = shalt.err (!%p1386_p10)
}
  0x38   :  { %71 = dma.hbm_to_vmem [thread:$0]  %s1579_s4, 64, %s69_s21, [#allocation10]  }
  0x39   :  { %1450 = dma.done.wait [#allocation4], 512  }
  0x3a   :  { %1451 = vsyncadd [#allocation4], 4294966784 }
  0x3b   :  { %1452 = dma.done.wait [#allocation7], 64  }
  0x3c   :  { %1453 = vsyncadd [#allocation7], 4294967232 }
  0x3d   :  { %1454 = dma.done.wait [#allocation10], 49216  }
  0x3e   :  { %1455 = vsyncadd [#allocation10], 4294918080  ;;  %v95_v0 = vlaneseq  ;;  %v1469_v1 = vmov 0.0   ;;  %v217_v2 = vld [vmem:[#allocation9 + $0x1e8] sm:$0xff]  ;;  %v219_v3 = vld [vmem:[#allocation9 + $0x1f8] sm:$0xff]  ;;  %vm462_vm1 = vcmask 1046528  }
  0x3f   :  { %v216_v4 = vld [vmem:[#allocation9 + $0x1e0] sm:$0xff]  ;;  %284 = vmatprep.subr.mxu0 %v217_v2  ;;  %361 = vmatprep.subr.mxu1 %v219_v3  ;;  %v218_v5 = vld [vmem:[#allocation9 + $0x1f0] sm:$0xff]  ;;  %v213_v6 = vld [vmem:[#allocation9 + $0x1c8] sm:$0xff]  ;;  %vm786_vm2 = vcmask 1045504   ;;  %s1471_s2 = smov [#allocation12]  }
  0x40   :  { %vm97_vm0 = vcmp.lt.s32.totalorder %v95_v0, 256  ;;  %v215_v7 = vld [vmem:[#allocation9 + $0x1d8] sm:$0xff]  ;;  %285 = vmatpush1.msra.mxu0 %v216_v4  ;;  %362 = vmatpush1.msra.mxu1 %v218_v5  ;;  %v212_v8 = vld [vmem:[#allocation9 + $0x1c0] sm:$0xff]  ;;  %v214_v9 = vld [vmem:[#allocation9 + $0x1d0] sm:$0xff]  ;;  %s1235_s4 = sshll.u32 %s1471_s2, 4  ;;  %s1236_s4 = int_to_ptr.vmem [resolvable:$true] %s1235_s4 }
  0x41   :  { %99 = vst.msk [vmem:[#allocation2] ss:$8 sm:$0x3] %vm97_vm0, %v1469_v1  ;;  %102 = vst.msk [vmem:[#allocation2 + $0x20] ss:$8 sm:$0x3] %vm97_vm0, %v1469_v1  ;;  %286 = vmatprep.subr.mxu0 %v213_v6  ;;  %363 = vmatprep.subr.mxu1 %v215_v7  ;;  %p1395_p12 = scmp.lt.s32.totalorder %s1236_s4, %s1236_s4 }
  0x42   :  { %105 = vst.msk [vmem:[#allocation2 + $0x11] ss:$8 sm:$0x3] %vm97_vm0, %v1469_v1  ;;  %108 = vst.msk [vmem:[#allocation2 + $0x31] ss:$8 sm:$0x3] %vm97_vm0, %v1469_v1  ;;  %287 = vmatpush1.msra.mxu0 %v212_v8  ;;  %364 = vmatpush1.msra.mxu1 %v214_v9 }
  0x43   :  { %v209_v10 = vld [vmem:[#allocation9 + $0x1a8] sm:$0xff]  ;;  %v211_v11 = vld [vmem:[#allocation9 + $0x1b8] sm:$0xff]  ;;  %v208_v12 = vld [vmem:[#allocation9 + $0x1a0] sm:$0xff]  ;;  %s1390_s27 = scalar_lea.vmem %s1236_s4, 1024 }
  0x44   :  { %v210_v13 = vld [vmem:[#allocation9 + $0x1b0] sm:$0xff]  ;;  %v205_v14 = vld [vmem:[#allocation9 + $0x188] sm:$0xff]  ;;  %v207_v15 = vld [vmem:[#allocation9 + $0x198] sm:$0xff]  ;;  %288 = vmatprep.subr.mxu0 %v209_v10  ;;  %365 = vmatprep.subr.mxu1 %v211_v11  ;;  %p1391_p11 = scmp.ne.s32.totalorder %s1236_s4, %s1390_s27  ;;  %p1396_p13 = scmp.lt.s32.totalorder %s1390_s27, %s1390_s27 }
  0x45   :  { %v204_v16 = vld [vmem:[#allocation9 + $0x180] sm:$0xff]  ;;  %v206_v17 = vld [vmem:[#allocation9 + $0x190] sm:$0xff]  ;;  %289 = vmatpush1.msra.mxu0 %v208_v12  ;;  %366 = vmatpush1.msra.mxu1 %v210_v13  ;;  %v201_v18 = vld [vmem:[#allocation9 + $0x168] sm:$0xff] }
  0x46   :  { %v203_v19 = vld [vmem:[#allocation9 + $0x178] sm:$0xff]  ;;  %290 = vmatprep.subr.mxu0 %v205_v14  ;;  %367 = vmatprep.subr.mxu1 %v207_v15  ;;  %v200_v20 = vld [vmem:[#allocation9 + $0x160] sm:$0xff]  ;;  %v202_v21 = vld [vmem:[#allocation9 + $0x170] sm:$0xff]  ;;  %p1397_p0 = por %p1396_p13, %p1395_p12 }
  0x47   :  { %291 = vmatpush1.msra.mxu0 %v204_v16  ;;  %368 = vmatpush1.msra.mxu1 %v206_v17  ;;  %v197_v22 = vld [vmem:[#allocation9 + $0x148] sm:$0xff]  ;;  %v199_v23 = vld [vmem:[#allocation9 + $0x158] sm:$0xff]  ;;  %v196_v24 = vld [vmem:[#allocation9 + $0x140] sm:$0xff] }
  0x48   :  { %292 = vmatprep.subr.mxu0 %v201_v18  ;;  %369 = vmatprep.subr.mxu1 %v203_v19  ;;  %v198_v25 = vld [vmem:[#allocation9 + $0x150] sm:$0xff]  ;;  %v193_v26 = vld [vmem:[#allocation9 + $0x128] sm:$0xff]  ;;  %v195_v27 = vld [vmem:[#allocation9 + $0x138] sm:$0xff]  ;;  %p1398_p1 = pnand %p1397_p0, %p1391_p11 }
  0x49   :  { %293 = vmatpush1.msra.mxu0 %v200_v20  ;;  %370 = vmatpush1.msra.mxu1 %v202_v21  ;;  %v192_v28 = vld [vmem:[#allocation9 + $0x120] sm:$0xff]  ;;  %v194_v29 = vld [vmem:[#allocation9 + $0x130] sm:$0xff]  ;;  %v189_v30 = vld [vmem:[#allocation9 + $0x108] sm:$0xff] }
  0x4a   :  { %294 = vmatprep.subr.mxu0 %v197_v22  ;;  %371 = vmatprep.subr.mxu1 %v199_v23  ;;  %v191_v31 = vld [vmem:[#allocation9 + $0x118] sm:$0xff]  ;;  %v188_v32 = vld [vmem:[#allocation9 + $0x100] sm:$0xff]  ;;  %v190_v33 = vld [vmem:[#allocation9 + $0x110] sm:$0xff] }
  0x4b   :  { %295 = vmatpush1.msra.mxu0 %v196_v24  ;;  %372 = vmatpush1.msra.mxu1 %v198_v25  ;;  %v185_v34 = vld [vmem:[#allocation9 + $0xe8] sm:$0xff]  ;;  %v187_v35 = vld [vmem:[#allocation9 + $0xf8] sm:$0xff]  ;;  %v184_v36 = vld [vmem:[#allocation9 + $0xe0] sm:$0xff] }
  0x4c   :  { %296 = vmatprep.subr.mxu0 %v193_v26  ;;  %373 = vmatprep.subr.mxu1 %v195_v27  ;;  %v186_v37 = vld [vmem:[#allocation9 + $0xf0] sm:$0xff]  ;;  %v181_v38 = vld [vmem:[#allocation9 + $0xc8] sm:$0xff]  ;;  %v183_v39 = vld [vmem:[#allocation9 + $0xd8] sm:$0xff] }
  0x4d   :  { %297 = vmatpush1.msra.mxu0 %v192_v28  ;;  %374 = vmatpush1.msra.mxu1 %v194_v29  ;;  %v180_v40 = vld [vmem:[#allocation9 + $0xc0] sm:$0xff]  ;;  %v182_v41 = vld [vmem:[#allocation9 + $0xd0] sm:$0xff]  ;;  %v177_v42 = vld [vmem:[#allocation9 + $0xa8] sm:$0xff] }
  0x4e   :  { %298 = vmatprep.subr.mxu0 %v189_v30  ;;  %375 = vmatprep.subr.mxu1 %v191_v31  ;;  %v179_v43 = vld [vmem:[#allocation9 + $0xb8] sm:$0xff]  ;;  %v176_v44 = vld [vmem:[#allocation9 + $0xa0] sm:$0xff]  ;;  %v178_v45 = vld [vmem:[#allocation9 + $0xb0] sm:$0xff] }
  0x4f   :  { %299 = vmatpush1.msra.mxu0 %v188_v32  ;;  %376 = vmatpush1.msra.mxu1 %v190_v33  ;;  %v173_v46 = vld [vmem:[#allocation9 + $0x88] sm:$0xff]  ;;  %v175_v47 = vld [vmem:[#allocation9 + $0x98] sm:$0xff]  ;;  %v172_v48 = vld [vmem:[#allocation9 + $0x80] sm:$0xff] }
  0x50   :  { %300 = vmatprep.subr.mxu0 %v185_v34  ;;  %377 = vmatprep.subr.mxu1 %v187_v35  ;;  %v174_v49 = vld [vmem:[#allocation9 + $0x90] sm:$0xff]  ;;  %v169_v50 = vld [vmem:[#allocation9 + $0x68] sm:$0xff]  ;;  %v171_v51 = vld [vmem:[#allocation9 + $0x78] sm:$0xff] }
  0x51   :  { %301 = vmatpush1.msra.mxu0 %v184_v36  ;;  %378 = vmatpush1.msra.mxu1 %v186_v37  ;;  %v168_v52 = vld [vmem:[#allocation9 + $0x60] sm:$0xff]  ;;  %v170_v53 = vld [vmem:[#allocation9 + $0x70] sm:$0xff]  ;;  %v165_v54 = vld [vmem:[#allocation9 + $0x48] sm:$0xff] }
  0x52   :  { %302 = vmatprep.subr.mxu0 %v181_v38  ;;  %379 = vmatprep.subr.mxu1 %v183_v39  ;;  %v167_v55 = vld [vmem:[#allocation9 + $0x58] sm:$0xff]  ;;  %v164_v56 = vld [vmem:[#allocation9 + $0x40] sm:$0xff]  ;;  %v166_v57 = vld [vmem:[#allocation9 + $0x50] sm:$0xff] }
  0x53   :  { %303 = vmatpush1.msra.mxu0 %v180_v40  ;;  %380 = vmatpush1.msra.mxu1 %v182_v41  ;;  %v161_v58 = vld [vmem:[#allocation9 + $0x28] sm:$0xff]  ;;  %v163_v59 = vld [vmem:[#allocation9 + $0x38] sm:$0xff]  ;;  %v160_v60 = vld [vmem:[#allocation9 + $0x20] sm:$0xff] }
  0x54   :  { %304 = vmatprep.subr.mxu0 %v177_v42  ;;  %381 = vmatprep.subr.mxu1 %v179_v43  ;;  %v162_v61 = vld [vmem:[#allocation9 + $0x30] sm:$0xff]  ;;  %v157_v62 = vld [vmem:[#allocation9 + $0x8] sm:$0xff]  ;;  %v159_v63 = vld [vmem:[#allocation9 + $0x18] sm:$0xff] }
  0x55   :  { %305 = vmatpush1.msra.mxu0 %v176_v44  ;;  %382 = vmatpush1.msra.mxu1 %v178_v45  ;;  %v156_v1 = vld [vmem:[#allocation9] sm:$0xff]  ;;  %v158_v2 = vld [vmem:[#allocation9 + $0x10] sm:$0xff]  ;;  %v281_v3 = vld [vmem:[#allocation9 + $0x3e8] sm:$0xff] }
  0x56   :  { %306 = vmatprep.subr.mxu0 %v173_v46  ;;  %383 = vmatprep.subr.mxu1 %v175_v47  ;;  %v283_v4 = vld [vmem:[#allocation9 + $0x3f8] sm:$0xff]  ;;  %v280_v5 = vld [vmem:[#allocation9 + $0x3e0] sm:$0xff]  ;;  %v282_v6 = vld [vmem:[#allocation9 + $0x3f0] sm:$0xff] }
  0x57   :  { %307 = vmatpush1.msra.mxu0 %v172_v48  ;;  %384 = vmatpush1.msra.mxu1 %v174_v49  ;;  %v277_v7 = vld [vmem:[#allocation9 + $0x3c8] sm:$0xff]  ;;  %v279_v8 = vld [vmem:[#allocation9 + $0x3d8] sm:$0xff]  ;;  %v276_v9 = vld [vmem:[#allocation9 + $0x3c0] sm:$0xff] }
  0x58   :  { %308 = vmatprep.subr.mxu0 %v169_v50  ;;  %385 = vmatprep.subr.mxu1 %v171_v51  ;;  %v278_v10 = vld [vmem:[#allocation9 + $0x3d0] sm:$0xff]  ;;  %v273_v11 = vld [vmem:[#allocation9 + $0x3a8] sm:$0xff]  ;;  %v275_v12 = vld [vmem:[#allocation9 + $0x3b8] sm:$0xff] }
  0x59   :  { %309 = vmatpush1.msra.mxu0 %v168_v52  ;;  %386 = vmatpush1.msra.mxu1 %v170_v53  ;;  %v272_v13 = vld [vmem:[#allocation9 + $0x3a0] sm:$0xff]  ;;  %v274_v14 = vld [vmem:[#allocation9 + $0x3b0] sm:$0xff]  ;;  %v269_v15 = vld [vmem:[#allocation9 + $0x388] sm:$0xff] }
  0x5a   :  { %310 = vmatprep.subr.mxu0 %v165_v54  ;;  %387 = vmatprep.subr.mxu1 %v167_v55  ;;  %v271_v16 = vld [vmem:[#allocation9 + $0x398] sm:$0xff]  ;;  %v268_v17 = vld [vmem:[#allocation9 + $0x380] sm:$0xff]  ;;  %v270_v18 = vld [vmem:[#allocation9 + $0x390] sm:$0xff] }
  0x5b   :  { %311 = vmatpush1.msra.mxu0 %v164_v56  ;;  %388 = vmatpush1.msra.mxu1 %v166_v57  ;;  %v265_v19 = vld [vmem:[#allocation9 + $0x368] sm:$0xff]  ;;  %v267_v20 = vld [vmem:[#allocation9 + $0x378] sm:$0xff]  ;;  %v264_v21 = vld [vmem:[#allocation9 + $0x360] sm:$0xff] }
  0x5c   :  { %312 = vmatprep.subr.mxu0 %v161_v58  ;;  %389 = vmatprep.subr.mxu1 %v163_v59  ;;  %v266_v22 = vld [vmem:[#allocation9 + $0x370] sm:$0xff]  ;;  %v261_v23 = vld [vmem:[#allocation9 + $0x348] sm:$0xff]  ;;  %v263_v24 = vld [vmem:[#allocation9 + $0x358] sm:$0xff] }
  0x5d   :  { %313 = vmatpush1.msra.mxu0 %v160_v60  ;;  %390 = vmatpush1.msra.mxu1 %v162_v61  ;;  %v260_v25 = vld [vmem:[#allocation9 + $0x340] sm:$0xff]  ;;  %v262_v26 = vld [vmem:[#allocation9 + $0x350] sm:$0xff]  ;;  %v257_v27 = vld [vmem:[#allocation9 + $0x328] sm:$0xff] }
  0x5e   :  { %314 = vmatprep.subr.mxu0 %v157_v62  ;;  %391 = vmatprep.subr.mxu1 %v159_v63  ;;  %v259_v28 = vld [vmem:[#allocation9 + $0x338] sm:$0xff]  ;;  %v88_v29 = vld [vmem:[#allocation3 + $0x8] sm:$0xff]  ;;  %v258_v31 = vld [vmem:[#allocation9 + $0x330] sm:$0xff] }
  0x5f   :  { %315 = vmatpush1.msra.mxu0 %v156_v1  ;;  %392 = vmatpush1.msra.mxu1 %v158_v2  ;;  %v256_v30 = vld [vmem:[#allocation9 + $0x320] sm:$0xff]  ;;  %v115_v32 = vrot.slane %v88_v29, 7  ;;  %v253_v34 = vld [vmem:[#allocation9 + $0x308] sm:$0xff]  ;;  %v255_v35 = vld [vmem:[#allocation9 + $0x318] sm:$0xff] }
  0x60   :  { %316 = vmatprep.subr.mxu0 %v281_v3  ;;  %393 = vmatprep.subr.mxu1 %v283_v4  ;;  %v87_v33 = vld [vmem:[#allocation3] sm:$0xff]  ;;  %v254_v38 = vld [vmem:[#allocation9 + $0x310] sm:$0xff]  ;;  %v249_v39 = vld [vmem:[#allocation9 + $0x2e8] sm:$0xff] }
  0x61   :  { %317 = vmatpush2.msra.mxu0 %v280_v5  ;;  %394 = vmatpush2.msra.mxu1 %v282_v6  ;;  %v114_v36 = vrot.slane %v87_v33, 7  ;;  %v252_v37 = vld [vmem:[#allocation9 + $0x300] sm:$0xff]  ;;  %123 = vst [vmem:[#allocation2 + $0x8] sm:$0xfe] %v115_v32  ;;  %125 = vst [vmem:[#allocation2 + $0x18] sm:$0x1] %v115_v32 }
  0x62   :  { %318 = vmatprep.subr.mxu0 %v277_v7  ;;  %395 = vmatprep.subr.mxu1 %v279_v8  ;;  %v251_v40 = vld [vmem:[#allocation9 + $0x2f8] sm:$0xff]  ;;  %v248_v41 = vld [vmem:[#allocation9 + $0x2e0] sm:$0xff]  ;;  %v250_v42 = vld [vmem:[#allocation9 + $0x2f0] sm:$0xff] }
  0x63   :  { %319 = vmatpush2.msra.mxu0 %v276_v9  ;;  %396 = vmatpush2.msra.mxu1 %v278_v10  ;;  %122 = vst [vmem:[#allocation2] sm:$0xfe] %v114_v36  ;;  %124 = vst [vmem:[#allocation2 + $0x10] sm:$0x1] %v114_v36  ;;  %v245_v43 = vld [vmem:[#allocation9 + $0x2c8] sm:$0xff]  ;;  %v247_v44 = vld [vmem:[#allocation9 + $0x2d8] sm:$0xff] }
  0x64   :  { %320 = vmatprep.subr.mxu0 %v273_v11  ;;  %397 = vmatprep.subr.mxu1 %v275_v12  ;;  %v244_v45 = vld [vmem:[#allocation9 + $0x2c0] sm:$0xff]  ;;  %v246_v46 = vld [vmem:[#allocation9 + $0x2d0] sm:$0xff]  ;;  %v241_v47 = vld [vmem:[#allocation9 + $0x2a8] sm:$0xff] }
  0x65   :  { %321 = vmatpush2.msra.mxu0 %v272_v13  ;;  %398 = vmatpush2.msra.mxu1 %v274_v14  ;;  %v243_v48 = vld [vmem:[#allocation9 + $0x2b8] sm:$0xff]  ;;  %v240_v49 = vld [vmem:[#allocation9 + $0x2a0] sm:$0xff]  ;;  %v242_v50 = vld [vmem:[#allocation9 + $0x2b0] sm:$0xff] }
  0x66   :  { %322 = vmatprep.subr.mxu0 %v269_v15  ;;  %399 = vmatprep.subr.mxu1 %v271_v16  ;;  %v237_v51 = vld [vmem:[#allocation9 + $0x288] sm:$0xff]  ;;  %v239_v52 = vld [vmem:[#allocation9 + $0x298] sm:$0xff]  ;;  %v236_v53 = vld [vmem:[#allocation9 + $0x280] sm:$0xff] }
  0x67   :  { %323 = vmatpush2.msra.mxu0 %v268_v17  ;;  %400 = vmatpush2.msra.mxu1 %v270_v18  ;;  %v238_v54 = vld [vmem:[#allocation9 + $0x290] sm:$0xff]  ;;  %v233_v55 = vld [vmem:[#allocation9 + $0x268] sm:$0xff]  ;;  %v235_v56 = vld [vmem:[#allocation9 + $0x278] sm:$0xff] }
  0x68   :  { %324 = vmatprep.subr.mxu0 %v265_v19  ;;  %401 = vmatprep.subr.mxu1 %v267_v20  ;;  %v232_v57 = vld [vmem:[#allocation9 + $0x260] sm:$0xff]  ;;  %v234_v58 = vld [vmem:[#allocation9 + $0x270] sm:$0xff]  ;;  %v229_v59 = vld [vmem:[#allocation9 + $0x248] sm:$0xff] }
  0x69   :  { %325 = vmatpush2.msra.mxu0 %v264_v21  ;;  %402 = vmatpush2.msra.mxu1 %v266_v22  ;;  %v231_v60 = vld [vmem:[#allocation9 + $0x258] sm:$0xff]  ;;  %v228_v61 = vld [vmem:[#allocation9 + $0x240] sm:$0xff]  ;;  %v230_v62 = vld [vmem:[#allocation9 + $0x250] sm:$0xff] }
  0x6a   :  { %326 = vmatprep.subr.mxu0 %v261_v23  ;;  %403 = vmatprep.subr.mxu1 %v263_v24  ;;  %v225_v63 = vld [vmem:[#allocation9 + $0x228] sm:$0xff]  ;;  %v227_v1 = vld [vmem:[#allocation9 + $0x238] sm:$0xff]  ;;  %v224_v2 = vld [vmem:[#allocation9 + $0x220] sm:$0xff] }
  0x6b   :  { %327 = vmatpush2.msra.mxu0 %v260_v25  ;;  %404 = vmatpush2.msra.mxu1 %v262_v26  ;;  %v226_v3 = vld [vmem:[#allocation9 + $0x230] sm:$0xff]  ;;  %v221_v4 = vld [vmem:[#allocation9 + $0x208] sm:$0xff]  ;;  %v223_v5 = vld [vmem:[#allocation9 + $0x218] sm:$0xff] }
  0x6c   :  { %328 = vmatprep.subr.mxu0 %v257_v27  ;;  %405 = vmatprep.subr.mxu1 %v259_v28  ;;  %v220_v6 = vld [vmem:[#allocation9 + $0x200] sm:$0xff]  ;;  %v222_v8 = vld [vmem:[#allocation9 + $0x210] sm:$0xff]  ;;  %v541_v10 = vld [vmem:[#allocation9 + $0x5e8] sm:$0xff] }
  0x6d   :  { %329 = vmatpush2.msra.mxu0 %v256_v30  ;;  %406 = vmatpush2.msra.mxu1 %v258_v31  ;;  %v153_v7 = vld [vmem:[#allocation2 + $0x8] sm:$0xff]  ;;  %v152_v9 = vld [vmem:[#allocation2] sm:$0xff]  ;;  %v542_v13 = vld [vmem:[#allocation9 + $0x5f0] sm:$0xff] }
  0x6e   :  { %330 = vmatprep.subr.mxu0 %v253_v34  ;;  %407 = vmatprep.subr.mxu1 %v255_v35  ;;  %v543_v11 = vld [vmem:[#allocation9 + $0x5f8] sm:$0xff]  ;;  %v540_v12 = vld [vmem:[#allocation9 + $0x5e0] sm:$0xff]  ;;  %v537_v14 = vld [vmem:[#allocation9 + $0x5c8] sm:$0xff] }
  0x6f   :  { %331 = vmatpush2.msra.mxu0 %v252_v37  ;;  %408 = vmatpush2.msra.mxu1 %v254_v38  ;;  %v539_v15 = vld [vmem:[#allocation9 + $0x5d8] sm:$0xff]  ;;  %v536_v16 = vld [vmem:[#allocation9 + $0x5c0] sm:$0xff]  ;;  %v538_v17 = vld [vmem:[#allocation9 + $0x5d0] sm:$0xff] }
  0x70   :  { %332 = vmatprep.subr.mxu0 %v249_v39  ;;  %409 = vmatprep.subr.mxu1 %v251_v40  ;;  %v533_v18 = vld [vmem:[#allocation9 + $0x5a8] sm:$0xff]  ;;  %v535_v19 = vld [vmem:[#allocation9 + $0x5b8] sm:$0xff]  ;;  %v532_v20 = vld [vmem:[#allocation9 + $0x5a0] sm:$0xff] }
  0x71   :  { %333 = vmatpush2.msra.mxu0 %v248_v41  ;;  %410 = vmatpush2.msra.mxu1 %v250_v42  ;;  %v534_v21 = vld [vmem:[#allocation9 + $0x5b0] sm:$0xff]  ;;  %v529_v22 = vld [vmem:[#allocation9 + $0x588] sm:$0xff]  ;;  %v531_v23 = vld [vmem:[#allocation9 + $0x598] sm:$0xff] }
  0x72   :  { %334 = vmatprep.subr.mxu0 %v245_v43  ;;  %411 = vmatprep.subr.mxu1 %v247_v44  ;;  %v528_v24 = vld [vmem:[#allocation9 + $0x580] sm:$0xff]  ;;  %v530_v25 = vld [vmem:[#allocation9 + $0x590] sm:$0xff]  ;;  %v525_v26 = vld [vmem:[#allocation9 + $0x568] sm:$0xff] }
  0x73   :  { %335 = vmatpush2.msra.mxu0 %v244_v45  ;;  %412 = vmatpush2.msra.mxu1 %v246_v46  ;;  %v527_v27 = vld [vmem:[#allocation9 + $0x578] sm:$0xff]  ;;  %v524_v28 = vld [vmem:[#allocation9 + $0x560] sm:$0xff]  ;;  %v526_v29 = vld [vmem:[#allocation9 + $0x570] sm:$0xff] }
  0x74   :  { %336 = vmatprep.subr.mxu0 %v241_v47  ;;  %413 = vmatprep.subr.mxu1 %v243_v48  ;;  %v521_v30 = vld [vmem:[#allocation9 + $0x548] sm:$0xff]  ;;  %v523_v31 = vld [vmem:[#allocation9 + $0x558] sm:$0xff]  ;;  %v520_v32 = vld [vmem:[#allocation9 + $0x540] sm:$0xff] }
  0x75   :  { %337 = vmatpush2.msra.mxu0 %v240_v49  ;;  %414 = vmatpush2.msra.mxu1 %v242_v50  ;;  %v522_v33 = vld [vmem:[#allocation9 + $0x550] sm:$0xff]  ;;  %v517_v34 = vld [vmem:[#allocation9 + $0x528] sm:$0xff]  ;;  %v519_v35 = vld [vmem:[#allocation9 + $0x538] sm:$0xff] }
  0x76   :  { %338 = vmatprep.subr.mxu0 %v237_v51  ;;  %415 = vmatprep.subr.mxu1 %v239_v52  ;;  %v516_v36 = vld [vmem:[#allocation9 + $0x520] sm:$0xff]  ;;  %v518_v37 = vld [vmem:[#allocation9 + $0x530] sm:$0xff]  ;;  %v513_v38 = vld [vmem:[#allocation9 + $0x508] sm:$0xff] }
  0x77   :  { %339 = vmatpush2.msra.mxu0 %v236_v53  ;;  %416 = vmatpush2.msra.mxu1 %v238_v54  ;;  %v515_v39 = vld [vmem:[#allocation9 + $0x518] sm:$0xff]  ;;  %v512_v40 = vld [vmem:[#allocation9 + $0x500] sm:$0xff]  ;;  %v514_v41 = vld [vmem:[#allocation9 + $0x510] sm:$0xff] }
  0x78   :  { %340 = vmatprep.subr.mxu0 %v233_v55  ;;  %417 = vmatprep.subr.mxu1 %v235_v56  ;;  %v509_v42 = vld [vmem:[#allocation9 + $0x4e8] sm:$0xff]  ;;  %v511_v43 = vld [vmem:[#allocation9 + $0x4f8] sm:$0xff]  ;;  %v508_v44 = vld [vmem:[#allocation9 + $0x4e0] sm:$0xff] }
  0x79   :  { %341 = vmatpush2.msra.mxu0 %v232_v57  ;;  %418 = vmatpush2.msra.mxu1 %v234_v58  ;;  %v510_v45 = vld [vmem:[#allocation9 + $0x4f0] sm:$0xff]  ;;  %v505_v46 = vld [vmem:[#allocation9 + $0x4c8] sm:$0xff]  ;;  %v507_v47 = vld [vmem:[#allocation9 + $0x4d8] sm:$0xff] }
  0x7a   :  { %342 = vmatprep.subr.mxu0 %v229_v59  ;;  %419 = vmatprep.subr.mxu1 %v231_v60  ;;  %v90_v48 = vld [vmem:[#allocation3 + $0x18] sm:$0xff]  ;;  %v504_v49 = vld [vmem:[#allocation9 + $0x4c0] sm:$0xff]  ;;  %v89_v52 = vld [vmem:[#allocation3 + $0x10] sm:$0xff] }
  0x7b   :  { %343 = vmatpush2.msra.mxu0 %v228_v61  ;;  %420 = vmatpush2.msra.mxu1 %v230_v62  ;;  %v506_v50 = vld [vmem:[#allocation9 + $0x4d0] sm:$0xff]  ;;  %v117_v51 = vrot.slane %v90_v48, 7  ;;  %v501_v53 = vld [vmem:[#allocation9 + $0x4a8] sm:$0xff]  ;;  %v503_v54 = vld [vmem:[#allocation9 + $0x4b8] sm:$0xff]  ;;  %v116_v55 = vrot.slane %v89_v52, 7 }
  0x7c   :  { %344 = vmatprep.subr.mxu0 %v225_v63  ;;  %421 = vmatprep.subr.mxu1 %v227_v1  ;;  %v500_v56 = vld [vmem:[#allocation9 + $0x4a0] sm:$0xff]  ;;  %v502_v57 = vld [vmem:[#allocation9 + $0x4b0] sm:$0xff]  ;;  %v497_v58 = vld [vmem:[#allocation9 + $0x488] sm:$0xff] }
  0x7d   :  { %345 = vmatpush2.msra.mxu0 %v224_v2  ;;  %422 = vmatpush2.msra.mxu1 %v226_v3  ;;  %127 = vst [vmem:[#allocation2 + $0x28] sm:$0xfe] %v117_v51  ;;  %129 = vst [vmem:[#allocation2 + $0x38] sm:$0x1] %v117_v51  ;;  %v499_v59 = vld [vmem:[#allocation9 + $0x498] sm:$0xff]  ;;  %v496_v60 = vld [vmem:[#allocation9 + $0x480] sm:$0xff] }
  0x7e   :  { %346 = vmatprep.subr.mxu0 %v221_v4  ;;  %423 = vmatprep.subr.mxu1 %v223_v5  ;;  %126 = vst [vmem:[#allocation2 + $0x20] sm:$0xfe] %v116_v55  ;;  %128 = vst [vmem:[#allocation2 + $0x30] sm:$0x1] %v116_v55  ;;  %v498_v61 = vld [vmem:[#allocation9 + $0x490] sm:$0xff]  ;;  %v493_v62 = vld [vmem:[#allocation9 + $0x468] sm:$0xff] }
  0x7f   :  { %347 = vmatpush2.msra.mxu0 %v220_v6  ;;  %348 = vmatprep.mubr.f32.mxu0 %v153_v7  ;;  %v495_v63 = vld [vmem:[#allocation9 + $0x478] sm:$0xff]  ;;  %v492_v1 = vld [vmem:[#allocation9 + $0x460] sm:$0xff]  ;;  %v494_v2 = vld [vmem:[#allocation9 + $0x470] sm:$0xff] }
  0x80   :  { %424 = vmatpush2.msra.mxu1 %v222_v8  ;;  %425 = vmatprep.mubr.f32.mxu1 %v153_v7  ;;  %v489_v3 = vld [vmem:[#allocation9 + $0x448] sm:$0xff]  ;;  %v491_v4 = vld [vmem:[#allocation9 + $0x458] sm:$0xff]  ;;  %v488_v5 = vld [vmem:[#allocation9 + $0x440] sm:$0xff] }
  0x81   :  { %349 = vmatmul.mubr.f32.vlgmr.msra.gmra.mxu0 %v152_v9  ;;  %426 = vmatmul.mubr.f32.vlgmr.msra.gmra.mxu1 %v152_v9  ;;  %v490_v6 = vld [vmem:[#allocation9 + $0x450] sm:$0xff]  ;;  %v485_v7 = vld [vmem:[#allocation9 + $0x428] sm:$0xff]  ;;  %v487_v8 = vld [vmem:[#allocation9 + $0x438] sm:$0xff] }
  0x82   :  { %608 = vmatprep.subr.mxu0 %v541_v10  ;;  %685 = vmatprep.subr.mxu1 %v543_v11  ;;  %v484_v9 = vld [vmem:[#allocation9 + $0x420] sm:$0xff]  ;;  %v486_v10 = vld [vmem:[#allocation9 + $0x430] sm:$0xff]  ;;  %v481_v11 = vld [vmem:[#allocation9 + $0x408] sm:$0xff] }
  0x83   :  { %609 = vmatpush1.msra.mxu0 %v540_v12  ;;  %686 = vmatpush1.msra.mxu1 %v542_v13  ;;  %v483_v12 = vld [vmem:[#allocation9 + $0x418] sm:$0xff]  ;;  %v480_v13 = vld [vmem:[#allocation9 + $0x400] sm:$0xff]  ;;  %v569_v51 = vld [vmem:[#allocation9 + $0x6c8] sm:$0xff] }
  0x84   :  { %610 = vmatprep.subr.mxu0 %v537_v14  ;;  %687 = vmatprep.subr.mxu1 %v539_v15  ;;  %v482_v14 = vld [vmem:[#allocation9 + $0x410] sm:$0xff]  ;;  %v605_v15 = vld [vmem:[#allocation9 + $0x7e8] sm:$0xff]  ;;  %v575_v48 = vld [vmem:[#allocation9 + $0x6f8] sm:$0xff] }
  0x85   :  { %611 = vmatpush1.msra.mxu0 %v536_v16  ;;  %688 = vmatpush1.msra.mxu1 %v538_v17  ;;  %v607_v16 = vld [vmem:[#allocation9 + $0x7f8] sm:$0xff]  ;;  %v604_v17 = vld [vmem:[#allocation9 + $0x7e0] sm:$0xff]  ;;  %v565_v55 = vld [vmem:[#allocation9 + $0x6a8] sm:$0xff] }
  0x86   :  { %612 = vmatprep.subr.mxu0 %v533_v18  ;;  %689 = vmatprep.subr.mxu1 %v535_v19  ;;  %v606_v18 = vld [vmem:[#allocation9 + $0x7f0] sm:$0xff]  ;;  %v601_v19 = vld [vmem:[#allocation9 + $0x7c8] sm:$0xff]  ;;  %v571_v52 = vld [vmem:[#allocation9 + $0x6d8] sm:$0xff] }
  0x87   :  { %613 = vmatpush1.msra.mxu0 %v532_v20  ;;  %690 = vmatpush1.msra.mxu1 %v534_v21  ;;  %v603_v20 = vld [vmem:[#allocation9 + $0x7d8] sm:$0xff]  ;;  %v600_v21 = vld [vmem:[#allocation9 + $0x7c0] sm:$0xff] }
  0x88   :  { %614 = vmatprep.subr.mxu0 %v529_v22  ;;  %691 = vmatprep.subr.mxu1 %v531_v23  ;;  %v602_v22 = vld [vmem:[#allocation9 + $0x7d0] sm:$0xff]  ;;  %v597_v23 = vld [vmem:[#allocation9 + $0x7a8] sm:$0xff] }
  0x89   :  { %615 = vmatpush1.msra.mxu0 %v528_v24  ;;  %692 = vmatpush1.msra.mxu1 %v530_v25  ;;  %v599_v24 = vld [vmem:[#allocation9 + $0x7b8] sm:$0xff]  ;;  %v596_v25 = vld [vmem:[#allocation9 + $0x7a0] sm:$0xff] }
  0x8a   :  { %616 = vmatprep.subr.mxu0 %v525_v26  ;;  %693 = vmatprep.subr.mxu1 %v527_v27  ;;  %v598_v26 = vld [vmem:[#allocation9 + $0x7b0] sm:$0xff]  ;;  %v593_v27 = vld [vmem:[#allocation9 + $0x788] sm:$0xff] }
  0x8b   :  { %617 = vmatpush1.msra.mxu0 %v524_v28  ;;  %694 = vmatpush1.msra.mxu1 %v526_v29  ;;  %v595_v28 = vld [vmem:[#allocation9 + $0x798] sm:$0xff]  ;;  %v592_v29 = vld [vmem:[#allocation9 + $0x780] sm:$0xff] }
  0x8c   :  { %618 = vmatprep.subr.mxu0 %v521_v30  ;;  %695 = vmatprep.subr.mxu1 %v523_v31  ;;  %v594_v30 = vld [vmem:[#allocation9 + $0x790] sm:$0xff]  ;;  %v589_v31 = vld [vmem:[#allocation9 + $0x768] sm:$0xff] }
  0x8d   :  { %619 = vmatpush1.msra.mxu0 %v520_v32  ;;  %696 = vmatpush1.msra.mxu1 %v522_v33  ;;  %v591_v32 = vld [vmem:[#allocation9 + $0x778] sm:$0xff]  ;;  %v588_v33 = vld [vmem:[#allocation9 + $0x760] sm:$0xff] }
  0x8e   :  { %620 = vmatprep.subr.mxu0 %v517_v34  ;;  %697 = vmatprep.subr.mxu1 %v519_v35  ;;  %v590_v34 = vld [vmem:[#allocation9 + $0x770] sm:$0xff]  ;;  %v585_v35 = vld [vmem:[#allocation9 + $0x748] sm:$0xff] }
  0x8f   :  { %621 = vmatpush1.msra.mxu0 %v516_v36  ;;  %698 = vmatpush1.msra.mxu1 %v518_v37  ;;  %v587_v36 = vld [vmem:[#allocation9 + $0x758] sm:$0xff]  ;;  %v584_v37 = vld [vmem:[#allocation9 + $0x740] sm:$0xff] }
  0x90   :  { %622 = vmatprep.subr.mxu0 %v513_v38  ;;  %699 = vmatprep.subr.mxu1 %v515_v39  ;;  %v586_v38 = vld [vmem:[#allocation9 + $0x750] sm:$0xff]  ;;  %v581_v39 = vld [vmem:[#allocation9 + $0x728] sm:$0xff] }
  0x91   :  { %623 = vmatpush1.msra.mxu0 %v512_v40  ;;  %700 = vmatpush1.msra.mxu1 %v514_v41  ;;  %v583_v40 = vld [vmem:[#allocation9 + $0x738] sm:$0xff]  ;;  %v580_v41 = vld [vmem:[#allocation9 + $0x720] sm:$0xff] }
  0x92   :  { %624 = vmatprep.subr.mxu0 %v509_v42  ;;  %701 = vmatprep.subr.mxu1 %v511_v43  ;;  %v582_v42 = vld [vmem:[#allocation9 + $0x730] sm:$0xff]  ;;  %v577_v43 = vld [vmem:[#allocation9 + $0x708] sm:$0xff] }
  0x93   :  { %625 = vmatpush1.msra.mxu0 %v508_v44  ;;  %702 = vmatpush1.msra.mxu1 %v510_v45  ;;  %v579_v44 = vld [vmem:[#allocation9 + $0x718] sm:$0xff]  ;;  %v576_v45 = vld [vmem:[#allocation9 + $0x700] sm:$0xff] }
  0x94   :  { %626 = vmatprep.subr.mxu0 %v505_v46  ;;  %703 = vmatprep.subr.mxu1 %v507_v47  ;;  %v578_v46 = vld [vmem:[#allocation9 + $0x710] sm:$0xff]  ;;  %v573_v47 = vld [vmem:[#allocation9 + $0x6e8] sm:$0xff] }
  0x95   :  { %627 = vmatpush1.msra.mxu0 %v504_v49  ;;  %704 = vmatpush1.msra.mxu1 %v506_v50  ;;  %v572_v49 = vld [vmem:[#allocation9 + $0x6e0] sm:$0xff]  ;;  %v574_v50 = vld [vmem:[#allocation9 + $0x6f0] sm:$0xff] }
  0x96   :  { %628 = vmatprep.subr.mxu0 %v501_v53  ;;  %705 = vmatprep.subr.mxu1 %v503_v54  ;;  %v568_v53 = vld [vmem:[#allocation9 + $0x6c0] sm:$0xff]  ;;  %v570_v54 = vld [vmem:[#allocation9 + $0x6d0] sm:$0xff] }
  0x97   :  { %629 = vmatpush1.msra.mxu0 %v500_v56  ;;  %706 = vmatpush1.msra.mxu1 %v502_v57  ;;  %v567_v56 = vld [vmem:[#allocation9 + $0x6b8] sm:$0xff]  ;;  %v564_v57 = vld [vmem:[#allocation9 + $0x6a0] sm:$0xff] }
  0x98   :  { %630 = vmatprep.subr.mxu0 %v497_v58  ;;  %707 = vmatprep.subr.mxu1 %v499_v59  ;;  %v566_v58 = vld [vmem:[#allocation9 + $0x6b0] sm:$0xff]  ;;  %v561_v59 = vld [vmem:[#allocation9 + $0x688] sm:$0xff] }
  0x99   :  { %631 = vmatpush1.msra.mxu0 %v496_v60  ;;  %708 = vmatpush1.msra.mxu1 %v498_v61  ;;  %v563_v60 = vld [vmem:[#allocation9 + $0x698] sm:$0xff]  ;;  %v560_v61 = vld [vmem:[#allocation9 + $0x680] sm:$0xff] }
  0x9a   :  { %632 = vmatprep.subr.mxu0 %v493_v62  ;;  %709 = vmatprep.subr.mxu1 %v495_v63  ;;  %v562_v62 = vld [vmem:[#allocation9 + $0x690] sm:$0xff]  ;;  %v557_v63 = vld [vmem:[#allocation9 + $0x668] sm:$0xff] }
  0x9b   :  { %633 = vmatpush1.msra.mxu0 %v492_v1  ;;  %710 = vmatpush1.msra.mxu1 %v494_v2  ;;  %v559_v1 = vld [vmem:[#allocation9 + $0x678] sm:$0xff]  ;;  %v556_v2 = vld [vmem:[#allocation9 + $0x660] sm:$0xff] }
  0x9c   :  { %634 = vmatprep.subr.mxu0 %v489_v3  ;;  %711 = vmatprep.subr.mxu1 %v491_v4  ;;  %v558_v3 = vld [vmem:[#allocation9 + $0x670] sm:$0xff]  ;;  %v155_v4 = vld [vmem:[#allocation2 + $0x28] sm:$0xff] }
  0x9d   :  { %635 = vmatpush1.msra.mxu0 %v488_v5  ;;  %712 = vmatpush1.msra.mxu1 %v490_v6  ;;  %v447_v5 = vld [vmem:[#allocation2 + $0x8] sm:$0xfe]  ;;  %v449_v6 = vld [vmem:[#allocation2 + $0x18] sm:$0x1] }
  0x9e   :  { %636 = vmatprep.subr.mxu0 %v485_v7  ;;  %713 = vmatprep.subr.mxu1 %v487_v8  ;;  %v553_v7 = vld [vmem:[#allocation9 + $0x648] sm:$0xff]  ;;  %v555_v8 = vld [vmem:[#allocation9 + $0x658] sm:$0xff] }
  0x9f   :  { %637 = vmatpush1.msra.mxu0 %v484_v9  ;;  %714 = vmatpush1.msra.mxu1 %v486_v10  ;;  %v154_v9 = vld [vmem:[#allocation2 + $0x20] sm:$0xff] }
  0xa0   :  { %638 = vmatprep.subr.mxu0 %v481_v11  ;;  %715 = vmatprep.subr.mxu1 %v483_v12  ;;  %v446_v10 = vld [vmem:[#allocation2] sm:$0xfe]  ;;  %v448_v11 = vld [vmem:[#allocation2 + $0x10] sm:$0x1] }
  0xa1   :  { %639 = vmatpush1.msra.mxu0 %v480_v13  ;;  %716 = vmatpush1.msra.mxu1 %v482_v14  ;;  %v552_v12 = vld [vmem:[#allocation9 + $0x640] sm:$0xff]  ;;  %v554_v13 = vld [vmem:[#allocation9 + $0x650] sm:$0xff]  ;;  %v466_v14 = vrot.slane %v447_v5, 1 }
  0xa2   :  { %640 = vmatprep.subr.mxu0 %v605_v15  ;;  %717 = vmatprep.subr.mxu1 %v607_v16  ;;  %v467_v15 = vrot.slane %v449_v6, 1  ;;  %v549_v16 = vld [vmem:[#allocation9 + $0x628] sm:$0xff]  ;;  %v836_v5 = vld [vmem:[#allocation9 + $0x900] sm:$0xff]  ;;  %v838_v6 = vld [vmem:[#allocation9 + $0x910] sm:$0xff] }
  0xa3   :  { %641 = vmatpush2.msra.mxu0 %v604_v17  ;;  %718 = vmatpush2.msra.mxu1 %v606_v18  ;;  %v551_v17 = vld [vmem:[#allocation9 + $0x638] sm:$0xff]  ;;  %v548_v18 = vld [vmem:[#allocation9 + $0x620] sm:$0xff] }
  0xa4   :  { %642 = vmatprep.subr.mxu0 %v601_v19  ;;  %719 = vmatprep.subr.mxu1 %v603_v20  ;;  %v550_v19 = vld [vmem:[#allocation9 + $0x630] sm:$0xff]  ;;  %v545_v20 = vld [vmem:[#allocation9 + $0x608] sm:$0xff] }
  0xa5   :  { %643 = vmatpush2.msra.mxu0 %v600_v21  ;;  %720 = vmatpush2.msra.mxu1 %v602_v22  ;;  %v463_v21 = vrot.slane %v446_v10, 1  ;;  %v464_v22 = vrot.slane %v448_v11, 1  ;;  %v834_v10 = vld [vmem:[#allocation9 + $0x8f0] sm:$0xff]  ;;  %v829_v11 = vld [vmem:[#allocation9 + $0x8c8] sm:$0xff] }
  0xa6   :  { %644 = vmatprep.subr.mxu0 %v597_v23  ;;  %721 = vmatprep.subr.mxu1 %v599_v24  ;;  %v547_v23 = vld [vmem:[#allocation9 + $0x618] sm:$0xff]  ;;  %v451_v24 = vld [vmem:[#allocation2 + $0x28] sm:$0xfe] }
  0xa7   :  { %645 = vmatpush2.msra.mxu0 %v596_v25  ;;  %722 = vmatpush2.msra.mxu1 %v598_v26  ;;  %v453_v25 = vld [vmem:[#allocation2 + $0x38] sm:$0x1]  ;;  %v544_v26 = vld [vmem:[#allocation9 + $0x600] sm:$0xff] }
  0xa8   :  { %646 = vmatprep.subr.mxu0 %v593_v27  ;;  %723 = vmatprep.subr.mxu1 %v595_v28  ;;  %v468_v27 = vsel %vm462_vm1, %v466_v14, %v467_v15  ;;  %v546_v28 = vld [vmem:[#allocation9 + $0x610] sm:$0xff]  ;;  %v825_v15 = vld [vmem:[#allocation9 + $0x8a8] sm:$0xff] }
  0xa9   :  { %647 = vmatpush2.msra.mxu0 %v592_v29  ;;  %724 = vmatpush2.msra.mxu1 %v594_v30  ;;  %v450_v29 = vld [vmem:[#allocation2 + $0x20] sm:$0xfe]  ;;  %v452_v30 = vld [vmem:[#allocation2 + $0x30] sm:$0x1]  ;;  %v830_v14 = vld [vmem:[#allocation9 + $0x8d0] sm:$0xff] }
  0xaa   :  { %648 = vmatprep.subr.mxu0 %v589_v31  ;;  %725 = vmatprep.subr.mxu1 %v591_v32  ;;  %v465_v31 = vsel %vm462_vm1, %v463_v21, %v464_v22  ;;  %v472_v32 = vrot.slane %v451_v24, 1  ;;  %v820_v21 = vld [vmem:[#allocation9 + $0x880] sm:$0xff]  ;;  %v822_v22 = vld [vmem:[#allocation9 + $0x890] sm:$0xff]  ;;  %v819_v24 = vld [vmem:[#allocation9 + $0x878] sm:$0xff] }
  0xab   :  { %649 = vmatpush2.msra.mxu0 %v588_v33  ;;  %726 = vmatpush2.msra.mxu1 %v590_v34  ;;  %v473_v33 = vrot.slane %v453_v25, 1  ;;  %v865_v34 = vld [vmem:[#allocation9 + $0x9e8] sm:$0xff]  ;;  %v816_v25 = vld [vmem:[#allocation9 + $0x860] sm:$0xff] }
  0xac   :  { %650 = vmatprep.subr.mxu0 %v585_v35  ;;  %727 = vmatprep.subr.mxu1 %v587_v36  ;;  %v867_v35 = vld [vmem:[#allocation9 + $0x9f8] sm:$0xff]  ;;  %v864_v36 = vld [vmem:[#allocation9 + $0x9e0] sm:$0xff] }
  0xad   :  { %651 = vmatpush2.msra.mxu0 %v584_v37  ;;  %728 = vmatpush2.msra.mxu1 %v586_v38  ;;  %v866_v37 = vld [vmem:[#allocation9 + $0x9f0] sm:$0xff]  ;;  %v469_v38 = vrot.slane %v450_v29, 1  ;;  %v812_v29 = vld [vmem:[#allocation9 + $0x840] sm:$0xff] }
  0xae   :  { %652 = vmatprep.subr.mxu0 %v581_v39  ;;  %729 = vmatprep.subr.mxu1 %v583_v40  ;;  %v470_v39 = vrot.slane %v452_v30, 1  ;;  %v861_v40 = vld [vmem:[#allocation9 + $0x9c8] sm:$0xff]  ;;  %v814_v30 = vld [vmem:[#allocation9 + $0x850] sm:$0xff] }
  0xaf   :  { %653 = vmatpush2.msra.mxu0 %v580_v41  ;;  %730 = vmatpush2.msra.mxu1 %v582_v42  ;;  %v863_v41 = vld [vmem:[#allocation9 + $0x9d8] sm:$0xff]  ;;  %v474_v42 = vsel %vm462_vm1, %v472_v32, %v473_v33  ;;  %v808_v33 = vld [vmem:[#allocation9 + $0x820] sm:$0xff] }
  0xb0   :  { %654 = vmatprep.subr.mxu0 %v577_v43  ;;  %731 = vmatprep.subr.mxu1 %v579_v44  ;;  %v860_v43 = vld [vmem:[#allocation9 + $0x9c0] sm:$0xff]  ;;  %v862_v44 = vld [vmem:[#allocation9 + $0x9d0] sm:$0xff]  ;;  %v811_v32 = vld [vmem:[#allocation9 + $0x838] sm:$0xff] }
  0xb1   :  { %655 = vmatpush2.msra.mxu0 %v576_v45  ;;  %732 = vmatpush2.msra.mxu1 %v578_v46  ;;  %v471_v45 = vsel %vm462_vm1, %v469_v38, %v470_v39  ;;  %v857_v46 = vld [vmem:[#allocation9 + $0x9a8] sm:$0xff]  ;;  %v806_v38 = vld [vmem:[#allocation9 + $0x810] sm:$0xff] }
  0xb2   :  { %656 = vmatprep.subr.mxu0 %v573_v47  ;;  %733 = vmatprep.subr.mxu1 %v575_v48  ;;  %v859_v47 = vld [vmem:[#allocation9 + $0x9b8] sm:$0xff]  ;;  %v856_v48 = vld [vmem:[#allocation9 + $0x9a0] sm:$0xff]  ;;  %v929_v39 = vld [vmem:[#allocation9 + $0xbe8] sm:$0xff] }
  0xb3   :  { %657 = vmatpush2.msra.mxu0 %v572_v49  ;;  %734 = vmatpush2.msra.mxu1 %v574_v50  ;;  %v858_v49 = vld [vmem:[#allocation9 + $0x9b0] sm:$0xff]  ;;  %v853_v50 = vld [vmem:[#allocation9 + $0x988] sm:$0xff] }
  0xb4   :  { %658 = vmatprep.subr.mxu0 %v569_v51  ;;  %735 = vmatprep.subr.mxu1 %v571_v52  ;;  %v855_v51 = vld [vmem:[#allocation9 + $0x998] sm:$0xff]  ;;  %v852_v52 = vld [vmem:[#allocation9 + $0x980] sm:$0xff] }
  0xb5   :  { %659 = vmatpush2.msra.mxu0 %v568_v53  ;;  %736 = vmatpush2.msra.mxu1 %v570_v54  ;;  %v854_v53 = vld [vmem:[#allocation9 + $0x990] sm:$0xff]  ;;  %v849_v54 = vld [vmem:[#allocation9 + $0x968] sm:$0xff] }
  0xb6   :  { %660 = vmatprep.subr.mxu0 %v565_v55  ;;  %737 = vmatprep.subr.mxu1 %v567_v56  ;;  %v851_v55 = vld [vmem:[#allocation9 + $0x978] sm:$0xff]  ;;  %v848_v56 = vld [vmem:[#allocation9 + $0x960] sm:$0xff] }
  0xb7   :  { %661 = vmatpush2.msra.mxu0 %v564_v57  ;;  %738 = vmatpush2.msra.mxu1 %v566_v58  ;;  %v850_v57 = vld [vmem:[#allocation9 + $0x970] sm:$0xff]  ;;  %v845_v58 = vld [vmem:[#allocation9 + $0x948] sm:$0xff] }
  0xb8   :  { %662 = vmatprep.subr.mxu0 %v561_v59  ;;  %739 = vmatprep.subr.mxu1 %v563_v60  ;;  %v847_v59 = vld [vmem:[#allocation9 + $0x958] sm:$0xff]  ;;  %v844_v60 = vld [vmem:[#allocation9 + $0x940] sm:$0xff] }
  0xb9   :  { %663 = vmatpush2.msra.mxu0 %v560_v61  ;;  %740 = vmatpush2.msra.mxu1 %v562_v62  ;;  %v846_v61 = vld [vmem:[#allocation9 + $0x950] sm:$0xff]  ;;  %v841_v62 = vld [vmem:[#allocation9 + $0x928] sm:$0xff] }
  0xba   :  { %664 = vmatprep.subr.mxu0 %v557_v63  ;;  %741 = vmatprep.subr.mxu1 %v559_v1  ;;  %v843_v63 = vld [vmem:[#allocation9 + $0x938] sm:$0xff]  ;;  %v840_v1 = vld [vmem:[#allocation9 + $0x920] sm:$0xff] }
  0xbb   :  { %665 = vmatpush2.msra.mxu0 %v556_v2  ;;  %742 = vmatpush2.msra.mxu1 %v558_v3  ;;  %v842_v2 = vld [vmem:[#allocation9 + $0x930] sm:$0xff]  ;;  %v837_v3 = vld [vmem:[#allocation9 + $0x908] sm:$0xff] }
  0xbc   :  { %354 = vmatprep.mubr.f32.mxu0 %v155_v4  ;;  %431 = vmatprep.mubr.f32.mxu1 %v155_v4  ;;  %v839_v4 = vld [vmem:[#allocation9 + $0x918] sm:$0xff] }
  0xbd   :  { %666 = vmatprep.subr.mxu0 %v553_v7  ;;  %743 = vmatprep.subr.mxu1 %v555_v8  ;;  %v833_v7 = vld [vmem:[#allocation9 + $0x8e8] sm:$0xff]  ;;  %v835_v8 = vld [vmem:[#allocation9 + $0x8f8] sm:$0xff] }
  0xbe   :  { %355 = vmatmul.mubr.f32.gmra.mxu0 %v154_v9  ;;  %432 = vmatmul.mubr.f32.gmra.mxu1 %v154_v9  ;;  %v832_v9 = vld [vmem:[#allocation9 + $0x8e0] sm:$0xff] }
  0xbf   :  { %667 = vmatpush2.msra.mxu0 %v552_v12  ;;  %744 = vmatpush2.msra.mxu1 %v554_v13  ;;  %v831_v12 = vld [vmem:[#allocation9 + $0x8d8] sm:$0xff]  ;;  %v828_v13 = vld [vmem:[#allocation9 + $0x8c0] sm:$0xff] }
  0xc0   :  { %668 = vmatprep.subr.mxu0 %v549_v16  ;;  %745 = vmatprep.subr.mxu1 %v551_v17  ;;  %v827_v16 = vld [vmem:[#allocation9 + $0x8b8] sm:$0xff]  ;;  %v824_v17 = vld [vmem:[#allocation9 + $0x8a0] sm:$0xff] }
  0xc1   :  { %669 = vmatpush2.msra.mxu0 %v548_v18  ;;  %746 = vmatpush2.msra.mxu1 %v550_v19  ;;  %v826_v18 = vld [vmem:[#allocation9 + $0x8b0] sm:$0xff]  ;;  %v821_v19 = vld [vmem:[#allocation9 + $0x888] sm:$0xff] }
  0xc2   :  { %670 = vmatprep.subr.mxu0 %v545_v20  ;;  %747 = vmatprep.subr.mxu1 %v547_v23  ;;  %v823_v20 = vld [vmem:[#allocation9 + $0x898] sm:$0xff]  ;;  %v817_v23 = vld [vmem:[#allocation9 + $0x868] sm:$0xff] }
  0xc3   :  { %671 = vmatpush2.msra.mxu0 %v544_v26  ;;  %672 = vmatprep.mubr.f32.mxu0 %v468_v27  ;;  %v818_v26 = vld [vmem:[#allocation9 + $0x870] sm:$0xff] }
  0xc4   :  { %748 = vmatpush2.msra.mxu1 %v546_v28  ;;  %749 = vmatprep.mubr.f32.mxu1 %v468_v27  ;;  %v813_v27 = vld [vmem:[#allocation9 + $0x848] sm:$0xff]  ;;  %v815_v28 = vld [vmem:[#allocation9 + $0x858] sm:$0xff] }
  0xc5   :  { %673 = vmatmul.mubr.f32.vlgmr.msra.gmra.mxu0 %v465_v31  ;;  %750 = vmatmul.mubr.f32.vlgmr.msra.gmra.mxu1 %v465_v31  ;;  %v809_v31 = vld [vmem:[#allocation9 + $0x828] sm:$0xff] }
  0xc6   :  { %932 = vmatprep.subr.mxu0 %v865_v34  ;;  %1009 = vmatprep.subr.mxu1 %v867_v35  ;;  %v810_v34 = vld [vmem:[#allocation9 + $0x830] sm:$0xff]  ;;  %v805_v35 = vld [vmem:[#allocation9 + $0x808] sm:$0xff] }
  0xc7   :  { %933 = vmatpush1.msra.mxu0 %v864_v36  ;;  %1010 = vmatpush1.msra.mxu1 %v866_v37  ;;  %v807_v36 = vld [vmem:[#allocation9 + $0x818] sm:$0xff]  ;;  %v804_v37 = vld [vmem:[#allocation9 + $0x800] sm:$0xff] }
  0xc8   :  { %934 = vmatprep.subr.mxu0 %v861_v40  ;;  %1011 = vmatprep.subr.mxu1 %v863_v41  ;;  %v931_v40 = vld [vmem:[#allocation9 + $0xbf8] sm:$0xff]  ;;  %v928_v41 = vld [vmem:[#allocation9 + $0xbe0] sm:$0xff] }
  0xc9   :  { %678 = vmatprep.mubr.f32.mxu0 %v474_v42  ;;  %755 = vmatprep.mubr.f32.mxu1 %v474_v42  ;;  %v930_v42 = vld [vmem:[#allocation9 + $0xbf0] sm:$0xff] }
  0xca   :  { %935 = vmatpush1.msra.mxu0 %v860_v43  ;;  %1012 = vmatpush1.msra.mxu1 %v862_v44  ;;  %v925_v43 = vld [vmem:[#allocation9 + $0xbc8] sm:$0xff]  ;;  %v927_v44 = vld [vmem:[#allocation9 + $0xbd8] sm:$0xff] }
  0xcb   :  { %679 = vmatmul.mubr.f32.gmra.mxu0 %v471_v45  ;;  %756 = vmatmul.mubr.f32.gmra.mxu1 %v471_v45  ;;  %v924_v45 = vld [vmem:[#allocation9 + $0xbc0] sm:$0xff] }
  0xcc   :  { %936 = vmatprep.subr.mxu0 %v857_v46  ;;  %1013 = vmatprep.subr.mxu1 %v859_v47  ;;  %v926_v46 = vld [vmem:[#allocation9 + $0xbd0] sm:$0xff]  ;;  %v921_v47 = vld [vmem:[#allocation9 + $0xba8] sm:$0xff] }
  0xcd   :  { %937 = vmatpush1.msra.mxu0 %v856_v48  ;;  %1014 = vmatpush1.msra.mxu1 %v858_v49  ;;  %v923_v48 = vld [vmem:[#allocation9 + $0xbb8] sm:$0xff]  ;;  %v920_v49 = vld [vmem:[#allocation9 + $0xba0] sm:$0xff] }
  0xce   :  { %938 = vmatprep.subr.mxu0 %v853_v50  ;;  %1015 = vmatprep.subr.mxu1 %v855_v51  ;;  %v922_v50 = vld [vmem:[#allocation9 + $0xbb0] sm:$0xff]  ;;  %v917_v51 = vld [vmem:[#allocation9 + $0xb88] sm:$0xff] }
  0xcf   :  { %939 = vmatpush1.msra.mxu0 %v852_v52  ;;  %1016 = vmatpush1.msra.mxu1 %v854_v53  ;;  %v919_v52 = vld [vmem:[#allocation9 + $0xb98] sm:$0xff]  ;;  %v916_v53 = vld [vmem:[#allocation9 + $0xb80] sm:$0xff] }
  0xd0   :  { %940 = vmatprep.subr.mxu0 %v849_v54  ;;  %1017 = vmatprep.subr.mxu1 %v851_v55  ;;  %v918_v54 = vld [vmem:[#allocation9 + $0xb90] sm:$0xff]  ;;  %v913_v55 = vld [vmem:[#allocation9 + $0xb68] sm:$0xff] }
  0xd1   :  { %941 = vmatpush1.msra.mxu0 %v848_v56  ;;  %1018 = vmatpush1.msra.mxu1 %v850_v57  ;;  %v915_v56 = vld [vmem:[#allocation9 + $0xb78] sm:$0xff]  ;;  %v912_v57 = vld [vmem:[#allocation9 + $0xb60] sm:$0xff] }
  0xd2   :  { %942 = vmatprep.subr.mxu0 %v845_v58  ;;  %1019 = vmatprep.subr.mxu1 %v847_v59  ;;  %v914_v58 = vld [vmem:[#allocation9 + $0xb70] sm:$0xff]  ;;  %v909_v59 = vld [vmem:[#allocation9 + $0xb48] sm:$0xff] }
  0xd3   :  { %943 = vmatpush1.msra.mxu0 %v844_v60  ;;  %1020 = vmatpush1.msra.mxu1 %v846_v61  ;;  %v911_v60 = vld [vmem:[#allocation9 + $0xb58] sm:$0xff]  ;;  %v908_v61 = vld [vmem:[#allocation9 + $0xb40] sm:$0xff] }
  0xd4   :  { %944 = vmatprep.subr.mxu0 %v841_v62  ;;  %1021 = vmatprep.subr.mxu1 %v843_v63  ;;  %v910_v62 = vld [vmem:[#allocation9 + $0xb50] sm:$0xff]  ;;  %v905_v63 = vld [vmem:[#allocation9 + $0xb28] sm:$0xff] }
  0xd5   :  { %945 = vmatpush1.msra.mxu0 %v840_v1  ;;  %1022 = vmatpush1.msra.mxu1 %v842_v2  ;;  %v907_v1 = vld [vmem:[#allocation9 + $0xb38] sm:$0xff]  ;;  %v904_v2 = vld [vmem:[#allocation9 + $0xb20] sm:$0xff] }
  0xd6   :  { %946 = vmatprep.subr.mxu0 %v837_v3  ;;  %1023 = vmatprep.subr.mxu1 %v839_v4  ;;  %v906_v3 = vld [vmem:[#allocation9 + $0xb30] sm:$0xff]  ;;  %v901_v4 = vld [vmem:[#allocation9 + $0xb08] sm:$0xff] }
  0xd7   :  { %947 = vmatpush1.msra.mxu0 %v836_v5  ;;  %1024 = vmatpush1.msra.mxu1 %v838_v6  ;;  %v903_v5 = vld [vmem:[#allocation9 + $0xb18] sm:$0xff]  ;;  %v900_v6 = vld [vmem:[#allocation9 + $0xb00] sm:$0xff] }
  0xd8   :  { %948 = vmatprep.subr.mxu0 %v833_v7  ;;  %1025 = vmatprep.subr.mxu1 %v835_v8  ;;  %v902_v7 = vld [vmem:[#allocation9 + $0xb10] sm:$0xff]  ;;  %v897_v8 = vld [vmem:[#allocation9 + $0xae8] sm:$0xff] }
  0xd9   :  { %949 = vmatpush1.msra.mxu0 %v832_v9  ;;  %1026 = vmatpush1.msra.mxu1 %v834_v10  ;;  %v899_v9 = vld [vmem:[#allocation9 + $0xaf8] sm:$0xff]  ;;  %v896_v10 = vld [vmem:[#allocation9 + $0xae0] sm:$0xff] }
  0xda   :  { %950 = vmatprep.subr.mxu0 %v829_v11  ;;  %1027 = vmatprep.subr.mxu1 %v831_v12  ;;  %v898_v11 = vld [vmem:[#allocation9 + $0xaf0] sm:$0xff]  ;;  %v893_v12 = vld [vmem:[#allocation9 + $0xac8] sm:$0xff] }
  0xdb   :  { %951 = vmatpush1.msra.mxu0 %v828_v13  ;;  %1028 = vmatpush1.msra.mxu1 %v830_v14  ;;  %v895_v13 = vld [vmem:[#allocation9 + $0xad8] sm:$0xff]  ;;  %v892_v14 = vld [vmem:[#allocation9 + $0xac0] sm:$0xff] }
  0xdc   :  { %952 = vmatprep.subr.mxu0 %v825_v15  ;;  %1029 = vmatprep.subr.mxu1 %v827_v16  ;;  %v894_v15 = vld [vmem:[#allocation9 + $0xad0] sm:$0xff]  ;;  %v889_v16 = vld [vmem:[#allocation9 + $0xaa8] sm:$0xff] }
  0xdd   :  { %953 = vmatpush1.msra.mxu0 %v824_v17  ;;  %1030 = vmatpush1.msra.mxu1 %v826_v18  ;;  %v891_v17 = vld [vmem:[#allocation9 + $0xab8] sm:$0xff]  ;;  %v888_v18 = vld [vmem:[#allocation9 + $0xaa0] sm:$0xff] }
  0xde   :  { %954 = vmatprep.subr.mxu0 %v821_v19  ;;  %1031 = vmatprep.subr.mxu1 %v823_v20  ;;  %v890_v19 = vld [vmem:[#allocation9 + $0xab0] sm:$0xff]  ;;  %v885_v20 = vld [vmem:[#allocation9 + $0xa88] sm:$0xff] }
  0xdf   :  { %955 = vmatpush1.msra.mxu0 %v820_v21  ;;  %1032 = vmatpush1.msra.mxu1 %v822_v22  ;;  %v887_v21 = vld [vmem:[#allocation9 + $0xa98] sm:$0xff]  ;;  %v884_v22 = vld [vmem:[#allocation9 + $0xa80] sm:$0xff] }
  0xe0   :  { %956 = vmatprep.subr.mxu0 %v817_v23  ;;  %1033 = vmatprep.subr.mxu1 %v819_v24  ;;  %v886_v23 = vld [vmem:[#allocation9 + $0xa90] sm:$0xff]  ;;  %v881_v24 = vld [vmem:[#allocation9 + $0xa68] sm:$0xff] }
  0xe1   :  { %957 = vmatpush1.msra.mxu0 %v816_v25  ;;  %1034 = vmatpush1.msra.mxu1 %v818_v26  ;;  %v883_v25 = vld [vmem:[#allocation9 + $0xa78] sm:$0xff]  ;;  %v880_v26 = vld [vmem:[#allocation9 + $0xa60] sm:$0xff] }
  0xe2   :  { %958 = vmatprep.subr.mxu0 %v813_v27  ;;  %1035 = vmatprep.subr.mxu1 %v815_v28  ;;  %v882_v27 = vld [vmem:[#allocation9 + $0xa70] sm:$0xff]  ;;  %v771_v28 = vld [vmem:[#allocation2 + $0x8] sm:$0xfc] }
  0xe3   :  { %959 = vmatpush1.msra.mxu0 %v812_v29  ;;  %1036 = vmatpush1.msra.mxu1 %v814_v30  ;;  %v773_v29 = vld [vmem:[#allocation2 + $0x18] sm:$0x3]  ;;  %v877_v30 = vld [vmem:[#allocation9 + $0xa48] sm:$0xff] }
  0xe4   :  { %960 = vmatprep.subr.mxu0 %v809_v31  ;;  %1037 = vmatprep.subr.mxu1 %v811_v32  ;;  %v879_v31 = vld [vmem:[#allocation9 + $0xa58] sm:$0xff]  ;;  %v876_v32 = vld [vmem:[#allocation9 + $0xa40] sm:$0xff] }
  0xe5   :  { %961 = vmatpush1.msra.mxu0 %v808_v33  ;;  %1038 = vmatpush1.msra.mxu1 %v810_v34  ;;  %v878_v33 = vld [vmem:[#allocation9 + $0xa50] sm:$0xff]  ;;  %v770_v34 = vld [vmem:[#allocation2] sm:$0xfc] }
  0xe6   :  { %962 = vmatprep.subr.mxu0 %v805_v35  ;;  %1039 = vmatprep.subr.mxu1 %v807_v36  ;;  %v772_v35 = vld [vmem:[#allocation2 + $0x10] sm:$0x3]  ;;  %v790_v36 = vrot.slane %v771_v28, 2 }
  0xe7   :  { %963 = vmatpush1.msra.mxu0 %v804_v37  ;;  %1040 = vmatpush1.msra.mxu1 %v806_v38  ;;  %v791_v37 = vrot.slane %v773_v29, 2  ;;  %v775_v38 = vld [vmem:[#allocation2 + $0x28] sm:$0xfc] }
  0xe8   :  { %964 = vmatprep.subr.mxu0 %v929_v39  ;;  %1041 = vmatprep.subr.mxu1 %v931_v40  ;;  %v777_v39 = vld [vmem:[#allocation2 + $0x38] sm:$0x3]  ;;  %v873_v40 = vld [vmem:[#allocation9 + $0xa28] sm:$0xff] }
  0xe9   :  { %965 = vmatpush2.msra.mxu0 %v928_v41  ;;  %1042 = vmatpush2.msra.mxu1 %v930_v42  ;;  %v875_v41 = vld [vmem:[#allocation9 + $0xa38] sm:$0xff]  ;;  %v872_v42 = vld [vmem:[#allocation9 + $0xa20] sm:$0xff] }
  0xea   :  { %966 = vmatprep.subr.mxu0 %v925_v43  ;;  %1043 = vmatprep.subr.mxu1 %v927_v44  ;;  %v874_v43 = vld [vmem:[#allocation9 + $0xa30] sm:$0xff]  ;;  %v869_v44 = vld [vmem:[#allocation9 + $0xa08] sm:$0xff] }
  0xeb   :  { %967 = vmatpush2.msra.mxu0 %v924_v45  ;;  %1044 = vmatpush2.msra.mxu1 %v926_v46  ;;  %v871_v45 = vld [vmem:[#allocation9 + $0xa18] sm:$0xff]  ;;  %v787_v46 = vrot.slane %v770_v34, 2 }
  0xec   :  { %968 = vmatprep.subr.mxu0 %v921_v47  ;;  %1045 = vmatprep.subr.mxu1 %v923_v48  ;;  %v788_v47 = vrot.slane %v772_v35, 2  ;;  %v796_v48 = vrot.slane %v775_v38, 2 }
  0xed   :  { %969 = vmatpush2.msra.mxu0 %v920_v49  ;;  %1046 = vmatpush2.msra.mxu1 %v922_v50  ;;  %v797_v49 = vrot.slane %v777_v39, 2  ;;  %v774_v50 = vld [vmem:[#allocation2 + $0x20] sm:$0xfc] }
  0xee   :  { %970 = vmatprep.subr.mxu0 %v917_v51  ;;  %1047 = vmatprep.subr.mxu1 %v919_v52  ;;  %v776_v51 = vld [vmem:[#allocation2 + $0x30] sm:$0x3]  ;;  %v868_v52 = vld [vmem:[#allocation9 + $0xa00] sm:$0xff] }
  0xef   :  { %971 = vmatpush2.msra.mxu0 %v916_v53  ;;  %1048 = vmatpush2.msra.mxu1 %v918_v54  ;;  %v792_v53 = vsel %vm786_vm2, %v790_v36, %v791_v37  ;;  %v870_v54 = vld [vmem:[#allocation9 + $0xa10] sm:$0xff] }
  0xf0   :  { %972 = vmatprep.subr.mxu0 %v913_v55  ;;  %1049 = vmatprep.subr.mxu1 %v915_v56  ;;  %v789_v55 = vsel %vm786_vm2, %v787_v46, %v788_v47  ;;  %v793_v56 = vrot.slane %v774_v50, 2 }
  0xf1   :  { %973 = vmatpush2.msra.mxu0 %v912_v57  ;;  %1050 = vmatpush2.msra.mxu1 %v914_v58  ;;  %v794_v57 = vrot.slane %v776_v51, 2  ;;  %v798_v58 = vsel %vm786_vm2, %v796_v48, %v797_v49 }
  0xf2   :  { %974 = vmatprep.subr.mxu0 %v909_v59  ;;  %1051 = vmatprep.subr.mxu1 %v911_v60 }
  0xf3   :  { %975 = vmatpush2.msra.mxu0 %v908_v61  ;;  %1052 = vmatpush2.msra.mxu1 %v910_v62  ;;  %v795_v59 = vsel %vm786_vm2, %v793_v56, %v794_v57 }
  0xf4   :  { %976 = vmatprep.subr.mxu0 %v905_v63  ;;  %1053 = vmatprep.subr.mxu1 %v907_v1 }
  0xf5   :  { %977 = vmatpush2.msra.mxu0 %v904_v2  ;;  %1054 = vmatpush2.msra.mxu1 %v906_v3 }
  0xf6   :  { %978 = vmatprep.subr.mxu0 %v901_v4  ;;  %1055 = vmatprep.subr.mxu1 %v903_v5  ;;  %v1542_v5 = vshrl.u32 %v95_v0, 7 }
  0xf7   :  { %979 = vmatpush2.msra.mxu0 %v900_v6  ;;  %1056 = vmatpush2.msra.mxu1 %v902_v7 }
  0xf8   :  { %980 = vmatprep.subr.mxu0 %v897_v8  ;;  %1057 = vmatprep.subr.mxu1 %v899_v9  ;;  %v134_v8 = vsub.s32 0, %v1542_v5  ;;  %v142_v9 = vsub.s32 2, %v1542_v5 }
  0xf9   :  { %981 = vmatpush2.msra.mxu0 %v896_v10  ;;  %1058 = vmatpush2.msra.mxu1 %v898_v11  ;;  %v130_v10 = vld [vmem:[#allocation11] sm:$0xf] }
  0xfa   :  { %982 = vmatprep.subr.mxu0 %v893_v12  ;;  %1059 = vmatprep.subr.mxu1 %v895_v13  ;;  %v138_v13 = vsub.s32 1, %v1542_v5 }
  0xfb   :  { %983 = vmatpush2.msra.mxu0 %v892_v14  ;;  %1060 = vmatpush2.msra.mxu1 %v894_v15  ;;  %v146_v14 = vsub.s32 3, %v1542_v5  ;;  %v135_v15 = vrot.slane %v130_v10, %v134_v8 }
  0xfc   :  { %984 = vmatprep.subr.mxu0 %v889_v16  ;;  %1061 = vmatprep.subr.mxu1 %v891_v17  ;;  %v143_v16 = vrot.slane %v130_v10, %v142_v9 }
  0xfd   :  { %985 = vmatpush2.msra.mxu0 %v888_v18  ;;  %1062 = vmatpush2.msra.mxu1 %v890_v19  ;;  %v139_v19 = vrot.slane %v130_v10, %v138_v13 }
  0xfe   :  { %986 = vmatprep.subr.mxu0 %v885_v20  ;;  %1063 = vmatprep.subr.mxu1 %v887_v21  ;;  %v147_v20 = vrot.slane %v130_v10, %v146_v14 }
  0xff   :  { %987 = vmatpush2.msra.mxu0 %v884_v22  ;;  %1064 = vmatpush2.msra.mxu1 %v886_v23 }
 0x100   :  { %988 = vmatprep.subr.mxu0 %v881_v24  ;;  %1065 = vmatprep.subr.mxu1 %v883_v25 }
 0x101   :  { %989 = vmatpush2.msra.mxu0 %v880_v26  ;;  %1066 = vmatpush2.msra.mxu1 %v882_v27 }
 0x102   :  { %990 = vmatprep.subr.mxu0 %v877_v30  ;;  %1067 = vmatprep.subr.mxu1 %v879_v31 }
 0x103   :  { %991 = vmatpush2.msra.mxu0 %v876_v32  ;;  %1068 = vmatpush2.msra.mxu1 %v878_v33  ;;  %v1470_v33 = vmov 1966171168  }
 0x104   :  { %992 = vmatprep.subr.mxu0 %v873_v40  ;;  %1069 = vmatprep.subr.mxu1 %v875_v41  ;;  %v1548_v34 = vunpack.c.l.s4 %v1470_v33 }
 0x105   :  { %993 = vmatpush2.msra.mxu0 %v872_v42  ;;  %1070 = vmatpush2.msra.mxu1 %v874_v43 }
 0x106   :  { %994 = vmatprep.subr.mxu0 %v869_v44  ;;  %1071 = vmatprep.subr.mxu1 %v871_v45  ;;  %v1138_v51 = vunpack.c.0.s8 %v1548_v34 }
 0x107   :  { %995 = vmatpush2.msra.mxu0 %v868_v52  ;;  %996 = vmatprep.mubr.f32.mxu0 %v792_v53 }
 0x108   :  { %1072 = vmatpush2.msra.mxu1 %v870_v54  ;;  %1073 = vmatprep.mubr.f32.mxu1 %v792_v53 }
 0x109   :  { %997 = vmatmul.mubr.f32.vlgmr.msra.gmra.mxu0 %v789_v55  ;;  %1074 = vmatmul.mubr.f32.vlgmr.msra.gmra.mxu1 %v789_v55 }
 0x10a   :  { %1002 = vmatprep.mubr.f32.mxu0 %v798_v58  ;;  %1079 = vmatprep.mubr.f32.mxu1 %v798_v58 }
 0x10d   :  { %1003 = vmatmul.mubr.f32.gmra.mxu0 %v795_v59  ;;  %1080 = vmatmul.mubr.f32.gmra.mxu1 %v795_v59 }
 0x141   :  { %v350_v60 = vpop.f32.mrf.mxu0  ;;  %v427_v61 = vpop.f32.mrf.mxu1 }
 0x142   :  { %v438_v21 = vadd.f32 %v350_v60, %v135_v15  ;;  %v440_v22 = vadd.f32 %v427_v61, %v143_v16 }
 0x143   :  { %v352_v62 = vpop.f32.mrf.mxu0  ;;  %v429_v63 = vpop.f32.mrf.mxu1 }
 0x144   :  { %v439_v25 = vadd.f32 %v352_v62, %v139_v19  ;;  %v441_v26 = vadd.f32 %v429_v63, %v147_v20 }
 0x17e   :  { %v356_v1 = vpop.f32.mrf.mxu0  ;;  %v433_v2 = vpop.f32.mrf.mxu1 }
 0x17f   :  { %v442_v29 = vadd.f32 %v356_v1, %v135_v15  ;;  %v444_v30 = vadd.f32 %v433_v2, %v143_v16 }
 0x180   :  { %v358_v3 = vpop.f32.mrf.mxu0  ;;  %v435_v4 = vpop.f32.mrf.mxu1 }
 0x181   :  { %v443_v45 = vadd.f32 %v358_v3, %v139_v19  ;;  %v445_v46 = vadd.f32 %v435_v4, %v147_v20 }
 0x185   :  { %v674_v6 = vpop.f32.mrf.mxu0  ;;  %v751_v7 = vpop.f32.mrf.mxu1 }
 0x186   :  { %v762_v27 = vadd.f32 %v674_v6, %v438_v21  ;;  %v764_v28 = vadd.f32 %v751_v7, %v440_v22 }
 0x187   :  { %v676_v11 = vpop.f32.mrf.mxu0  ;;  %v753_v12 = vpop.f32.mrf.mxu1 }
 0x188   :  { %v763_v35 = vadd.f32 %v676_v11, %v439_v25  ;;  %v765_v36 = vadd.f32 %v753_v12, %v441_v26 }
 0x18b   :  { %v680_v17 = vpop.f32.mrf.mxu0  ;;  %v757_v18 = vpop.f32.mrf.mxu1 }
 0x18c   :  { %v766_v41 = vadd.f32 %v680_v17, %v442_v29  ;;  %v768_v42 = vadd.f32 %v757_v18, %v444_v30 }
 0x18d   :  { %v682_v23 = vpop.f32.mrf.mxu0  ;;  %v759_v24 = vpop.f32.mrf.mxu1 }
 0x18e   :  { %v767_v52 = vadd.f32 %v682_v23, %v443_v45  ;;  %v769_v53 = vadd.f32 %v759_v24, %v445_v46 }
 0x1c9   :  { %v998_v31 = vpop.f32.mrf.mxu0  ;;  %v1075_v32 = vpop.f32.mrf.mxu1 }
 0x1ca   :  { %v1086_v37 = vadd.f32 %v998_v31, %v762_v27  ;;  %v1088_v38 = vadd.f32 %v1075_v32, %v764_v28 }
 0x1cb   :  { %v1000_v39 = vpop.f32.mrf.mxu0  ;;  %v1077_v40 = vpop.f32.mrf.mxu1 }
 0x1cc   :  { %1094 = vst [vmem:[#allocation12] sm:$0xff] %v1086_v37  ;;  %1096 = vst [vmem:[#allocation12 + $0x10] sm:$0xff] %v1088_v38  ;;  %v1087_v43 = vadd.f32 %v1000_v39, %v763_v35  ;;  %v1089_v44 = vadd.f32 %v1077_v40, %v765_v36  ;;  %v1164_v54 = vmul.f32 %v1086_v37, %v1086_v37 }
 0x1cd   :  { %v1004_v47 = vpop.f32.mrf.mxu0  ;;  %v1081_v48 = vpop.f32.mrf.mxu1  ;;  %v1166_v55 = vmul.f32 %v1088_v38, %v1088_v38 }
 0x1ce   :  { %1095 = vst [vmem:[#allocation12 + $0x8] sm:$0xff] %v1087_v43  ;;  %1097 = vst [vmem:[#allocation12 + $0x18] sm:$0xff] %v1089_v44  ;;  %v1090_v49 = vadd.f32 %v1004_v47, %v766_v41  ;;  %v1092_v50 = vadd.f32 %v1081_v48, %v768_v42  ;;  %v1165_v62 = vmul.f32 %v1087_v43, %v1087_v43 }
 0x1cf   :  { %v1006_v56 = vpop.f32.mrf.mxu0  ;;  %v1083_v57 = vpop.f32.mrf.mxu1  ;;  %v1167_v63 = vmul.f32 %v1089_v44, %v1089_v44 }
 0x1d0   :  { %1098 = vst [vmem:[#allocation12 + $0x20] sm:$0xff] %v1090_v49  ;;  %v1102_v58 = vadd.f32 %v1090_v49, %v1086_v37  ;;  %v1168_v59 = vmul.f32 %v1090_v49, %v1090_v49  ;;  %1100 = vst [vmem:[#allocation12 + $0x30] sm:$0xff] %v1092_v50  ;;  %v1116_v60 = vadd.f32 %v1092_v50, %v1088_v38 }
 0x1d1   :  { %v1170_v61 = vmul.f32 %v1092_v50, %v1092_v50  ;;  %v1091_v1 = vadd.f32 %v1006_v56, %v767_v52  ;;  %v1093_v2 = vadd.f32 %v1083_v57, %v769_v53 }
 0x1d2   :  { %v1103_v3 = vrot.slane %v1102_v58, 4  ;;  %v1172_v4 = vadd.f32 %v1168_v59, %v1164_v54  ;;  %v1117_v6 = vrot.slane %v1116_v60, 4 }
 0x1d3   :  { %v1186_v7 = vadd.f32 %v1170_v61, %v1166_v55  ;;  %1099 = vst [vmem:[#allocation12 + $0x28] sm:$0xff] %v1091_v1  ;;  %v1109_v8 = vadd.f32 %v1091_v1, %v1087_v43  ;;  %v1169_v9 = vmul.f32 %v1091_v1, %v1091_v1  ;;  %1101 = vst [vmem:[#allocation12 + $0x38] sm:$0xff] %v1093_v2 }
 0x1d4   :  { %v1123_v10 = vadd.f32 %v1093_v2, %v1089_v44  ;;  %v1171_v11 = vmul.f32 %v1093_v2, %v1093_v2  ;;  %v1104_v12 = vadd.f32 %v1103_v3, %v1102_v58  ;;  %v1173_v13 = vrot.slane %v1172_v4, 4 }
 0x1d5   :  { %v1118_v14 = vadd.f32 %v1117_v6, %v1116_v60  ;;  %v1187_v15 = vrot.slane %v1186_v7, 4 }
 0x1d6   :  { %1401 = shalt.err (!%p1398_p1)
}
 0x1d7   :  { %1241 = dma.vmem_to_hbm [thread:$0]  %s1236_s4, 1024, %s1580_s5, [#allocation5], %s1462_s9, %s1462_s9, %s1463_s10   ;;  %v1110_v16 = vrot.slane %v1109_v8, 4  ;;  %v1179_v17 = vadd.f32 %v1169_v9, %v1165_v62  ;;  %v1124_v18 = vrot.slane %v1123_v10, 4  ;;  %v1193_v19 = vadd.f32 %v1171_v11, %v1167_v63 }
 0x1d8   :  { %v1105_v20 = vrot.slane %v1104_v12, 2  ;;  %v1174_v21 = vadd.f32 %v1173_v13, %v1172_v4  ;;  %v1119_v22 = vrot.slane %v1118_v14, 2  ;;  %v1188_v23 = vadd.f32 %v1187_v15, %v1186_v7  ;;  %s1472_s5 = smov [#allocation13]   ;;  %s1473_s8 = smov [#allocation15]  }
 0x1d9   :  { %v1111_v24 = vadd.f32 %v1110_v16, %v1109_v8  ;;  %v1180_v25 = vrot.slane %v1179_v17, 4  ;;  %v1125_v26 = vadd.f32 %v1124_v18, %v1123_v10  ;;  %v1194_v27 = vrot.slane %v1193_v19, 4  ;;  %s1248_s30 = sshll.u32 %s1472_s5, 4  ;;  %s1258_s9 = sshll.u32 %s1473_s8, 4  ;;  %s1249_s30 = int_to_ptr.vmem [resolvable:$true] %s1248_s30  ;;  %s1259_s9 = int_to_ptr.vmem [resolvable:$true] %s1258_s9 }
 0x1da   :  { %v1106_v28 = vadd.f32 %v1105_v20, %v1104_v12  ;;  %v1175_v29 = vrot.slane %v1174_v21, 2  ;;  %v1120_v30 = vadd.f32 %v1119_v22, %v1118_v14  ;;  %v1189_v31 = vrot.slane %v1188_v23, 2  ;;  %s1410_s10 = scalar_lea.vmem %s1249_s30, 64  ;;  %p1415_p3 = scmp.lt.s32.totalorder %s1249_s30, %s1249_s30 }
 0x1db   :  { %v1112_v32 = vrot.slane %v1111_v24, 2  ;;  %v1181_v33 = vadd.f32 %v1180_v25, %v1179_v17  ;;  %v1126_v35 = vrot.slane %v1125_v26, 2  ;;  %v1195_v36 = vadd.f32 %v1194_v27, %v1193_v19  ;;  %p1411_p2 = scmp.ne.s32.totalorder %s1249_s30, %s1410_s10  ;;  %p1416_p4 = scmp.lt.s32.totalorder %s1410_s10, %s1410_s10 }
 0x1dc   :  { %v1107_v37 = vrot.slane %v1106_v28, 1  ;;  %v1176_v38 = vadd.f32 %v1175_v29, %v1174_v21  ;;  %v1121_v39 = vrot.slane %v1120_v30, 1  ;;  %v1190_v40 = vadd.f32 %v1189_v31, %v1188_v23 }
 0x1dd   :  { %v1113_v41 = vadd.f32 %v1112_v32, %v1111_v24  ;;  %v1182_v42 = vrot.slane %v1181_v33, 2  ;;  %v1127_v43 = vadd.f32 %v1126_v35, %v1125_v26  ;;  %v1196_v44 = vrot.slane %v1195_v36, 2  ;;  %p1417_p5 = por %p1416_p4, %p1415_p3 }
 0x1de   :  { %v1177_v45 = vrot.slane %v1176_v38, 1  ;;  %v1191_v46 = vrot.slane %v1190_v40, 1  ;;  %v1108_v52 = vadd.f32 %v1107_v37, %v1106_v28  ;;  %v1122_v53 = vadd.f32 %v1121_v39, %v1120_v30 }
 0x1df   :  { %v1114_v47 = vrot.slane %v1113_v41, 1  ;;  %v1183_v48 = vadd.f32 %v1182_v42, %v1181_v33  ;;  %v1128_v49 = vrot.slane %v1127_v43, 1  ;;  %v1197_v50 = vadd.f32 %v1196_v44, %v1195_v36  ;;  %p1418_p6 = pnand %p1417_p5, %p1411_p2 }
 0x1e0   :  { %v1141_v54 = vsub.s32 %v1138_v51, %v1542_v5  ;;  %v1178_v59 = vadd.f32 %v1177_v45, %v1176_v38  ;;  %v1192_v60 = vadd.f32 %v1191_v46, %v1190_v40  ;;  %vm1561_vm3 = vcmp.lt.s32.totalorder %v95_v0, 512 }
 0x1e1   :  { %v1115_v55 = vadd.f32 %v1114_v47, %v1113_v41  ;;  %v1184_v56 = vrot.slane %v1183_v48, 1  ;;  %v1129_v57 = vadd.f32 %v1128_v49, %v1127_v43  ;;  %v1198_v58 = vrot.slane %v1197_v50, 1 }
 0x1e3   :  { %v1185_v61 = vadd.f32 %v1184_v56, %v1183_v48  ;;  %v1199_v62 = vadd.f32 %v1198_v58, %v1197_v50  ;;  %v1134_v63 = vcombine.low %v1108_v52, %v1115_v55  ;;  %v1135_v1 = vcombine.low %v1122_v53, %v1129_v57 }
 0x1e5   :  { %v1142_v2 = vrot.slane %v1134_v63, %v1141_v54  ;;  %v1149_v3 = vrot.slane %v1135_v1, %v1141_v54  ;;  %v1204_v4 = vcombine.low %v1178_v59, %v1185_v61  ;;  %v1205_v6 = vcombine.low %v1192_v60, %v1199_v62 }
 0x1e7   :  { %v1150_v7 = vcombine.low %v1142_v2, %v1149_v3  ;;  %v1212_v8 = vrot.slane %v1204_v4, %v1141_v54  ;;  %v1219_v34 = vrot.slane %v1205_v6, %v1141_v54 }
 0x1e9   :  { %v1157_v51 = vrot.slane %v1150_v7, %v1141_v54  ;;  %v1220_v9 = vcombine.low %v1212_v8, %v1219_v34 }
 0x1eb   :  { %1163 = vst.msk [vmem:[#allocation13] sm:$0xf] %vm1561_vm3, %v1157_v51  ;;  %v1227_v10 = vrot.slane %v1220_v9, %v1141_v54 }
 0x1ec   :  { %1421 = shalt.err (!%p1418_p6)
}
 0x1ed   :  { %1251 = dma.vmem_to_hbm [thread:$0]  %s1249_s30, 64, %s1581_s6, [#allocation14]   ;;  %1229 = vst.msk [vmem:[#allocation15] sm:$0xf] %vm1561_vm3, %v1227_v10 }
 0x1ee   :  { %s1430_s13 = scalar_lea.vmem %s1259_s9, 64  ;;  %p1435_p8 = scmp.lt.s32.totalorder %s1259_s9, %s1259_s9 }
 0x1ef   :  { %p1431_p7 = scmp.ne.s32.totalorder %s1259_s9, %s1430_s13  ;;  %p1436_p9 = scmp.lt.s32.totalorder %s1430_s13, %s1430_s13 }
 0x1f1   :  { %p1437_p10 = por %p1436_p9, %p1435_p8 }
 0x1f3   :  { %p1438_p11 = pnand %p1437_p10, %p1431_p7 }
 0x1f5   :  { %1441 = shalt.err (!%p1438_p11)
}
 0x1f6   :  { %1261 = dma.vmem_to_hbm [thread:$0]  %s1259_s9, 64, %s1582_s7, [#allocation14]  }
 0x1f7   :  { %1456 = dma.done.wait [#allocation5], 1024  }
 0x1f8   :  { %1457 = vsyncadd [#allocation5], 4294966272 }
 0x1f9   :  { %1458 = dma.done.wait [#allocation14], 128  }
 0x1fa   :  { %1459 = vsyncadd [#allocation14], 4294967168 }
 0x1fb   :  { %1271 = vsyncpa [#allocation4], 1 }
 0x1fc   :  { %1272 = vsyncpa [#allocation7], 1 }
 0x1fd   :  { %1273 = vsyncpa [#allocation10], 1 }
 0x1fe   :  { %1274 = vsyncpa [#allocation5], 1 }
 0x1ff   :  { %1275 = vsyncpa [#allocation14], 1 }

</bundles_post_ra>
